<compile_context>
chip_gen: v7x
topology: tpu7x:2x2x1
jax: 0.10.0
libtpu: 0.0.40
codegen_flags: <defaults>
</compile_context>

<pallas_src>
import math

import jax
import jax.numpy as jnp
from jax.experimental import pallas as pl
from jax.experimental.pallas import tpu as pltpu


# ----------------------------- helpers -----------------------------

def _choose_tile(n, preferred, align):
    """Largest tile <= preferred that divides n and is a multiple of align; n if n <= preferred."""
    if n <= preferred:
        return n
    t = (preferred // align) * align
    while t >= align:
        if n % t == 0:
            return t
        t -= align
    return n


# ----------------------------- tiled linear kernel -----------------------------

def _make_linear_kernel(has_bias):
    def kernel(x_ref, w_ref, *rest):
        if has_bias:
            b_ref, o_ref, acc_ref = rest
        else:
            b_ref = None
            o_ref, acc_ref = rest

        k = pl.program_id(2)

        @pl.when(k == 0)
        def _():
            acc_ref[...] = jnp.zeros_like(acc_ref)

        acc_ref[...] += jnp.dot(x_ref[...], w_ref[...],
                                preferred_element_type=jnp.float32)

        @pl.when(k == pl.num_programs(2) - 1)
        def _():
            out = acc_ref[...]
            if has_bias:
                out = out + b_ref[...]
            o_ref[...] = out.astype(o_ref.dtype)

    return kernel


def linear(x, w, b=None):
    """y = x @ w (+ b).  x:[M,K], w:[K,Nout], b:[Nout] or None -> [M,Nout] f32.

    bf16 MXU operands, f32 accumulation, tiled (M, Nout, K) grid with a VMEM
    f32 accumulator; K is the reduction axis.
    """
    M, K = x.shape
    K2, Nout = w.shape
    assert K == K2

    tm = _choose_tile(M, 256, 8)
    tn = _choose_tile(Nout, 512, 128)
    tk = _choose_tile(K, 512, 128)
    grid = (M // tm, Nout // tn, K // tk)

    in_specs = [
        pl.BlockSpec((tm, tk), lambda i, j, k: (i, k)),
        pl.BlockSpec((tk, tn), lambda i, j, k: (k, j)),
    ]
    inputs = [x.astype(jnp.bfloat16), w.astype(jnp.bfloat16)]
    has_bias = b is not None
    if has_bias:
        in_specs.append(pl.BlockSpec((1, tn), lambda i, j, k: (0, j)))
        inputs.append(b.reshape(1, Nout).astype(jnp.float32))

    return pl.pallas_call(
        _make_linear_kernel(has_bias),
        out_shape=jax.ShapeDtypeStruct((M, Nout), jnp.float32),
        grid=grid,
        in_specs=in_specs,
        out_specs=pl.BlockSpec((tm, tn), lambda i, j, k: (i, j)),
        scratch_shapes=[pltpu.VMEM((tm, tn), jnp.float32)],
        compiler_params=pltpu.CompilerParams(
            dimension_semantics=("parallel", "parallel", "arbitrary")),
    )(*inputs)


# ----------------------------- GAT attention kernel -----------------------------

def _make_gat_attn_kernel(negative_slope, has_residual, apply_act):
    def kernel(*refs):
        if has_residual:
            (el_ref, er_ref, adj_ref, fsrc_ref, bias_ref, res_ref,
             o_ref, m_sc, l_sc, acc_sc) = refs
        else:
            (el_ref, er_ref, adj_ref, fsrc_ref, bias_ref,
             o_ref, m_sc, l_sc, acc_sc) = refs
            res_ref = None

        k = pl.program_id(2)

        @pl.when(k == 0)
        def _():
            m_sc[...] = jnp.full_like(m_sc, -1e30)
            l_sc[...] = jnp.zeros_like(l_sc)
            acc_sc[...] = jnp.zeros_like(acc_sc)

        el = el_ref[...]                       # (1, tile_src)   f32
        er = er_ref[...]                       # (tile_dst, 1)   f32
        s = er + el                            # (tile_dst, tile_src)
        s = jnp.where(s > 0.0, s, negative_slope * s)          # leaky relu
        mask = adj_ref[...] > 0                                  # bf16 adj -> bool
        s = jnp.where(mask, s, -1e30)

        # online softmax over src tiles
        m_prev = m_sc[...]
        m_cur = jnp.max(s, axis=1, keepdims=True)
        m_new = jnp.maximum(m_prev, m_cur)
        corr = jnp.exp(m_prev - m_new)
        p = jnp.where(mask, jnp.exp(s - m_new), 0.0)             # masked probs (unnormalized)

        l_sc[...] = corr * l_sc[...] + jnp.sum(p, axis=1, keepdims=True)
        acc_sc[...] = corr * acc_sc[...] + jnp.dot(
            p.astype(fsrc_ref.dtype), fsrc_ref[...],
            preferred_element_type=jnp.float32)
        m_sc[...] = m_new

        @pl.when(k == pl.num_programs(2) - 1)
        def _():
            denom = l_sc[...]
            inv = pl.reciprocal(jnp.where(denom > 0.0, denom, 1.0), approx=True)
            out = acc_sc[...] * inv + bias_ref[...]
            if has_residual:
                out = out + res_ref[...]
            if apply_act:
                out = jnp.where(out > 0.0, out,
                                jnp.exp(jnp.minimum(out, 0.0)) - 1.0)   # ELU
            o_ref[...] = out.astype(o_ref.dtype)

    return kernel


def gat_attention(feat, el, er, adj, bias, residual, negative_slope, apply_act):
    """feat:[N,H*D] f32 slab, el:[H,1,N], er:[H,N,1], adj:[N,N] (bf16 mask),
    bias:[H,1,D], residual:[N,H*D] or None -> [N,H*D] f32."""
    N, HD = feat.shape
    H = el.shape[0]
    D = HD // H
    assert (D % 128 == 0) or (H == 1), (
        "per-head width D must be a multiple of 128 (or H == 1) for head-column slab blocks")

    tile_dst = _choose_tile(N, 256, 8)
    tile_src = _choose_tile(N, 512, 128)
    n_dst = N // tile_dst
    n_src = N // tile_src

    feat_bf = feat.astype(jnp.bfloat16)        # halves the O(N*H*D) DMA; MXU runs bf16

    in_specs = [
        pl.BlockSpec((None, 1, tile_src), lambda h, i, k: (h, 0, k)),    # el
        pl.BlockSpec((None, tile_dst, 1), lambda h, i, k: (h, i, 0)),    # er
        pl.BlockSpec((tile_dst, tile_src), lambda h, i, k: (i, k)),      # adj (bf16)
        pl.BlockSpec((tile_src, D), lambda h, i, k: (k, h)),             # feat src column slab
        pl.BlockSpec((None, 1, D), lambda h, i, k: (h, 0, 0)),           # bias
    ]
    inputs = [el.astype(jnp.float32), er.astype(jnp.float32),
              adj.astype(jnp.bfloat16), feat_bf, bias.astype(jnp.float32)]

    has_res = residual is not None
    if has_res:
        in_specs.append(pl.BlockSpec((tile_dst, D), lambda h, i, k: (i, h)))
        inputs.append(residual.astype(jnp.float32))

    return pl.pallas_call(
        _make_gat_attn_kernel(negative_slope, has_res, apply_act),
        out_shape=jax.ShapeDtypeStruct((N, HD), jnp.float32),
        grid=(H, n_dst, n_src),
        in_specs=in_specs,
        out_specs=pl.BlockSpec((tile_dst, D), lambda h, i, k: (i, h)),
        scratch_shapes=[pltpu.VMEM((tile_dst, 1), jnp.float32),   # running max
                        pltpu.VMEM((tile_dst, 1), jnp.float32),   # running denom
                        pltpu.VMEM((tile_dst, D), jnp.float32)],  # running numerator
        compiler_params=pltpu.CompilerParams(
            dimension_semantics=("parallel", "parallel", "arbitrary")),
    )(*inputs)


# ----------------------------- GATConv / GAT forward -----------------------------

def gat_conv(adj_bf, h, p, negative_slope, apply_act):
    """DGL-style GATConv forward.  h:[N, in_feats] -> [N, H*D] (flattened heads)."""
    # TODO(synk): feat_drop / attn_drop omitted (eval-mode identity, p interpreted as 0).
    N = h.shape[0]
    H, D = p["attn_l"].shape

    feat = linear(h, p["fc_w"].T)                                  # [N, H*D] f32 (no bias)

    # el/er for all heads at once (cheap mul+reduce, keeps the MXU out of it)
    feat_h = feat.reshape(N, H, D)
    el = jnp.einsum("nhd,hd->hn", feat_h, p["attn_l"]).reshape(H, 1, N)
    er = jnp.einsum("nhd,hd->hn", feat_h, p["attn_r"]).reshape(H, N, 1)
    bias = p["bias"].reshape(H, 1, D)

    residual = None
    if "res_fc_w" in p:
        residual = linear(h, p["res_fc_w"].T)                      # [N, H*D]
    elif p.get("res_identity", False):
        residual = h                                               # in_feats == H*D

    # attention + edge softmax + aggregate + (residual, bias, ELU) fused epilogue
    return gat_attention(feat, el, er, adj_bf, bias, residual,
                         negative_slope, apply_act)                # [N, H*D]


def gat_forward(params, adj, features_list, out, num_layers, negative_slope):
    keys = list(features_list.keys())
    keys_index = []
    total = 0
    for key in keys:
        total += features_list[key].shape[0]
        keys_index.append(total)

    adj_bf = adj.astype(jnp.bfloat16)

    # per-node-type input projection, then concat along node axis
    h_parts = [linear(features_list[key], w.T, b)
               for (w, b), key in zip(params["fc_list"], keys)]
    h = jnp.concatenate(h_parts, axis=0)                           # [N, num_hidden]

    for l in range(num_layers):
        h = gat_conv(adj_bf, h, params["gat_layers"][l], negative_slope,
                     apply_act=True)                               # [N, H_l*D] (already flat)

    p_last = params["gat_layers"][-1]
    H_last, D_last = p_last["attn_l"].shape
    rst = gat_conv(adj_bf, h, p_last, negative_slope, apply_act=False)   # [N, H_last*D]
    logits = rst.reshape(rst.shape[0], H_last, D_last).mean(axis=1)      # mean over heads

    if out:
        w, b = params["predict"]
        logits = linear(logits, w.T, b)

    res = {}
    for i, key in enumerate(keys):
        lo = 0 if i == 0 else keys_index[i - 1]
        res[key] = logits[lo:keys_index[i]]
    return res


# ----------------------------- deterministic parameter init -----------------------------

def init_params(key, in_dims, num_hidden, num_classes, num_layers, heads, residual):
    ks = jax.random.split(key, 64)
    it = iter(range(64))
    nxt = lambda: ks[next(it)]

    def xavier(k, shape, gain=1.0):  # shape = (fan_out, fan_in), torch Linear convention
        fan_out, fan_in = shape
        std = gain * math.sqrt(2.0 / (fan_in + fan_out))
        return (std * jax.random.normal(k, shape)).astype(jnp.float32)

    params = {}
    params["fc_list"] = [
        (xavier(nxt(), (num_hidden, d), gain=1.414),
         (0.1 * jax.random.normal(nxt(), (num_hidden,))).astype(jnp.float32))
        for d in in_dims
    ]

    gat_layers = []
    gain = math.sqrt(2.0)
    for l in range(num_layers + 1):
        in_feats = num_hidden if l == 0 else num_hidden * heads[l - 1]
        H, D = heads[l], num_hidden
        layer = {
            "fc_w": xavier(nxt(), (H * D, in_feats), gain),
            "attn_l": xavier(nxt(), (H, D), gain),
            "attn_r": xavier(nxt(), (H, D), gain),
            "bias": (0.05 * jax.random.normal(nxt(), (H * D,))).astype(jnp.float32),
        }
        use_residual = residual and (l > 0)      # first GATConv built with residual=False
        if use_residual:
            if in_feats != H * D:
                layer["res_fc_w"] = xavier(nxt(), (H * D, in_feats), gain)
            else:
                layer["res_identity"] = True
        gat_layers.append(layer)
    params["gat_layers"] = gat_layers

    params["predict"] = (
        xavier(nxt(), (num_classes, num_hidden)),
        jnp.zeros((num_classes,), jnp.float32),
    )
    return params


# ----------------------------- main -----------------------------

if __name__ == "__main__":
    key = jax.random.PRNGKey(0)
    in_dims = [6, 10]            # two node types with different raw feature dims
    n_per_type = [8, 16]         # nodes per type -> N = 24
    num_hidden = 128             # per-head width D = 128 -> lane-dense head columns
    num_classes = 5
    num_layers = 2
    heads = [2, 2, 1]            # len == num_layers + 1
    negative_slope = 0.2
    residual = True

    k1, k2, k3, kp = jax.random.split(key, 4)
    features_list = {
        "type0": jax.random.normal(k1, (n_per_type[0], in_dims[0]), jnp.float32),
        "type1": jax.random.normal(k2, (n_per_type[1], in_dims[1]), jnp.float32),
    }
    N = sum(n_per_type)

    # dense adjacency mask, adj[i, j] = 1 iff edge j -> i; include self-loops
    rand = jax.random.uniform(k3, (N, N))
    adj = jnp.minimum((rand < 0.25).astype(jnp.float32) + jnp.eye(N, dtype=jnp.float32), 1.0)

    params = init_params(kp, in_dims, num_hidden, num_classes, num_layers, heads, residual)

    # params are closed over (static structure: optional residual keys stay Python-side)
    fwd = jax.jit(lambda a, f: gat_forward(params, a, f, out=True,
                                           num_layers=num_layers,
                                           negative_slope=negative_slope))
    res = fwd(adj, features_list)
    res = jax.block_until_ready(res)

    assert res["type0"].shape == (n_per_type[0], num_classes)
    assert res["type1"].shape == (n_per_type[1], num_classes)
    assert all(bool(jnp.all(jnp.isfinite(v))) for v in res.values())
    print("KERNEL_OK")
</pallas_src>

<mosaic_0001>
module attributes {stable_mosaic.version = 11 : i64} {
  func.func @kernel(%arg0: i32, %arg1: i32, %arg2: i32, %arg3: memref<16x10xbf16, #tpu.memory_space<vmem>>, %arg4: memref<10x128xbf16, #tpu.memory_space<vmem>>, %arg5: memref<1x128xf32, #tpu.memory_space<vmem>>, %arg6: memref<16x128xf32, #tpu.memory_space<vmem>>, %arg7: memref<16x128xf32, #tpu.memory_space<vmem>>) attributes {dimension_semantics = [#tpu.dimension_semantics<parallel>, #tpu.dimension_semantics<parallel>, #tpu.dimension_semantics<arbitrary>], iteration_bounds = array<i64: 1, 1, 1>, scalar_prefetch = 0 : i64, scratch_operands = 1 : i64, tpu.core_type = #tpu.core_type<tc>, window_params = [{transform_indices = @transform_0, window_bounds = array<i64: 16, 10>}, {transform_indices = @transform_1, window_bounds = array<i64: 10, 128>}, {transform_indices = @transform_2, window_bounds = array<i64: 1, 128>}, {transform_indices = @transform_3, window_bounds = array<i64: 16, 128>}]} {
    %c0_i32 = arith.constant 0 : i32
    %0 = arith.cmpi eq, %arg2, %c0_i32 : i32
    %1 = arith.extui %0 : i1 to i32
    %c0_i32_0 = arith.constant 0 : i32
    %2 = arith.cmpi ne, %1, %c0_i32_0 : i32
    scf.if %2 {
      %cst_10 = arith.constant 0.000000e+00 : f32
      %12 = vector.broadcast %cst_10 : f32 to vector<16x128xf32>
      %c0_11 = arith.constant 0 : index
      %c0_12 = arith.constant 0 : index
      %13 = vector.load %arg7[%c0_11, %c0_12] : memref<16x128xf32, #tpu.memory_space<vmem>>, vector<16x128xf32>
      tpu.vector_store %arg7[%c0_11, %c0_12], %12 {strides = array<i32>} : memref<16x128xf32, #tpu.memory_space<vmem>>, vector<16x128xf32>,
    } else {
    }
    %c0 = arith.constant 0 : index
    %c0_1 = arith.constant 0 : index
    %3 = vector.load %arg7[%c0, %c0_1] : memref<16x128xf32, #tpu.memory_space<vmem>>, vector<16x128xf32>
    %c0_2 = arith.constant 0 : index
    %c0_3 = arith.constant 0 : index
    %4 = vector.load %arg3[%c0_2, %c0_3] : memref<16x10xbf16, #tpu.memory_space<vmem>>, vector<16x10xbf16>
    %c0_4 = arith.constant 0 : index
    %c0_5 = arith.constant 0 : index
    %5 = vector.load %arg4[%c0_4, %c0_5] : memref<10x128xbf16, #tpu.memory_space<vmem>>, vector<10x128xbf16>
    %cst = arith.constant dense<0.000000e+00> : vector<16x128xf32>
    %6 = tpu.matmul %4, %5, %cst {dimension_numbers = #tpu.dot_dimension_numbers<[1], [0], [0], [1], [0, 0, 1, 1], [], []>} : vector<16x10xbf16>, vector<10x128xbf16>, vector<16x128xf32> -> vector<16x128xf32>
    %7 = arith.addf %3, %6 : vector<16x128xf32>
    %c0_6 = arith.constant 0 : index
    %c0_7 = arith.constant 0 : index
    %8 = vector.load %arg7[%c0_6, %c0_7] : memref<16x128xf32, #tpu.memory_space<vmem>>, vector<16x128xf32>
    tpu.vector_store %arg7[%c0_6, %c0_7], %7 {strides = array<i32>} : memref<16x128xf32, #tpu.memory_space<vmem>>, vector<16x128xf32>,
    %c0_i32_8 = arith.constant 0 : i32
    %9 = arith.cmpi eq, %arg2, %c0_i32_8 : i32
    %10 = arith.extui %9 : i1 to i32
    %c0_i32_9 = arith.constant 0 : i32
    %11 = arith.cmpi ne, %10, %c0_i32_9 : i32
    scf.if %11 {
      %c0_10 = arith.constant 0 : index
      %c0_11 = arith.constant 0 : index
      %12 = vector.load %arg7[%c0_10, %c0_11] : memref<16x128xf32, #tpu.memory_space<vmem>>, vector<16x128xf32>
      %c0_12 = arith.constant 0 : index
      %c0_13 = arith.constant 0 : index
      %13 = vector.load %arg5[%c0_12, %c0_13] : memref<1x128xf32, #tpu.memory_space<vmem>>, vector<1x128xf32>
      %14 = vector.broadcast %13 : vector<1x128xf32> to vector<16x128xf32>
      %15 = arith.addf %12, %14 : vector<16x128xf32>
      %c0_14 = arith.constant 0 : index
      %c0_15 = arith.constant 0 : index
      %16 = vector.load %arg6[%c0_14, %c0_15] : memref<16x128xf32, #tpu.memory_space<vmem>>, vector<16x128xf32>
      tpu.vector_store %arg6[%c0_14, %c0_15], %15 {strides = array<i32>} : memref<16x128xf32, #tpu.memory_space<vmem>>, vector<16x128xf32>,
    } else {
    }
    return
  }
  func.func @transform_0(%arg0: i32, %arg1: i32, %arg2: i32) -> (i32, i32) {
    %c0_i32 = arith.constant 0 : i32
    return %arg0, %arg2 : i32, i32
  }
  func.func @transform_1(%arg0: i32, %arg1: i32, %arg2: i32) -> (i32, i32) {
    %c0_i32 = arith.constant 0 : i32
    return %arg2, %arg1 : i32, i32
  }
  func.func @transform_2(%arg0: i32, %arg1: i32, %arg2: i32) -> (i32, i32) {
    %c0_i32 = arith.constant 0 : i32
    %c0_i32_0 = arith.constant 0 : i32
    return %c0_i32, %arg1 : i32, i32
  }
  func.func @transform_3(%arg0: i32, %arg1: i32, %arg2: i32) -> (i32, i32) {
    %c0_i32 = arith.constant 0 : i32
    return %arg0, %arg1 : i32, i32
  }
}

module attributes {stable_mosaic.version = 11 : i64} {
  func.func @kernel(%arg0: i32, %arg1: i32, %arg2: i32, %arg3: memref<24x128xbf16, #tpu.memory_space<vmem>>, %arg4: memref<128x256xbf16, #tpu.memory_space<vmem>>, %arg5: memref<24x256xf32, #tpu.memory_space<vmem>>, %arg6: memref<24x256xf32, #tpu.memory_space<vmem>>) attributes {dimension_semantics = [#tpu.dimension_semantics<parallel>, #tpu.dimension_semantics<parallel>, #tpu.dimension_semantics<arbitrary>], iteration_bounds = array<i64: 1, 1, 1>, scalar_prefetch = 0 : i64, scratch_operands = 1 : i64, tpu.core_type = #tpu.core_type<tc>, window_params = [{transform_indices = @transform_0, window_bounds = array<i64: 24, 128>}, {transform_indices = @transform_1, window_bounds = array<i64: 128, 256>}, {transform_indices = @transform_2, window_bounds = array<i64: 24, 256>}]} {
    %c0_i32 = arith.constant 0 : i32
    %0 = arith.cmpi eq, %arg2, %c0_i32 : i32
    %1 = arith.extui %0 : i1 to i32
    %c0_i32_0 = arith.constant 0 : i32
    %2 = arith.cmpi ne, %1, %c0_i32_0 : i32
    scf.if %2 {
      %cst_10 = arith.constant 0.000000e+00 : f32
      %12 = vector.broadcast %cst_10 : f32 to vector<24x256xf32>
      %c0_11 = arith.constant 0 : index
      %c0_12 = arith.constant 0 : index
      %13 = vector.load %arg6[%c0_11, %c0_12] : memref<24x256xf32, #tpu.memory_space<vmem>>, vector<24x256xf32>
      tpu.vector_store %arg6[%c0_11, %c0_12], %12 {strides = array<i32>} : memref<24x256xf32, #tpu.memory_space<vmem>>, vector<24x256xf32>,
    } else {
    }
    %c0 = arith.constant 0 : index
    %c0_1 = arith.constant 0 : index
    %3 = vector.load %arg6[%c0, %c0_1] : memref<24x256xf32, #tpu.memory_space<vmem>>, vector<24x256xf32>
    %c0_2 = arith.constant 0 : index
    %c0_3 = arith.constant 0 : index
    %4 = vector.load %arg3[%c0_2, %c0_3] : memref<24x128xbf16, #tpu.memory_space<vmem>>, vector<24x128xbf16>
    %c0_4 = arith.constant 0 : index
    %c0_5 = arith.constant 0 : index
    %5 = vector.load %arg4[%c0_4, %c0_5] : memref<128x256xbf16, #tpu.memory_space<vmem>>, vector<128x256xbf16>
    %cst = arith.constant dense<0.000000e+00> : vector<24x256xf32>
    %6 = tpu.matmul %4, %5, %cst {dimension_numbers = #tpu.dot_dimension_numbers<[1], [0], [0], [1], [0, 0, 1, 1], [], []>} : vector<24x128xbf16>, vector<128x256xbf16>, vector<24x256xf32> -> vector<24x256xf32>
    %7 = arith.addf %3, %6 : vector<24x256xf32>
    %c0_6 = arith.constant 0 : index
    %c0_7 = arith.constant 0 : index
    %8 = vector.load %arg6[%c0_6, %c0_7] : memref<24x256xf32, #tpu.memory_space<vmem>>, vector<24x256xf32>
    tpu.vector_store %arg6[%c0_6, %c0_7], %7 {strides = array<i32>} : memref<24x256xf32, #tpu.memory_space<vmem>>, vector<24x256xf32>,
    %c0_i32_8 = arith.constant 0 : i32
    %9 = arith.cmpi eq, %arg2, %c0_i32_8 : i32
    %10 = arith.extui %9 : i1 to i32
    %c0_i32_9 = arith.constant 0 : i32
    %11 = arith.cmpi ne, %10, %c0_i32_9 : i32
    scf.if %11 {
      %c0_10 = arith.constant 0 : index
      %c0_11 = arith.constant 0 : index
      %12 = vector.load %arg6[%c0_10, %c0_11] : memref<24x256xf32, #tpu.memory_space<vmem>>, vector<24x256xf32>
      %c0_12 = arith.constant 0 : index
      %c0_13 = arith.constant 0 : index
      %13 = vector.load %arg5[%c0_12, %c0_13] : memref<24x256xf32, #tpu.memory_space<vmem>>, vector<24x256xf32>
      tpu.vector_store %arg5[%c0_12, %c0_13], %12 {strides = array<i32>} : memref<24x256xf32, #tpu.memory_space<vmem>>, vector<24x256xf32>,
    } else {
    }
    return
  }
  func.func @transform_0(%arg0: i32, %arg1: i32, %arg2: i32) -> (i32, i32) {
    %c0_i32 = arith.constant 0 : i32
    return %arg0, %arg2 : i32, i32
  }
  func.func @transform_1(%arg0: i32, %arg1: i32, %arg2: i32) -> (i32, i32) {
    %c0_i32 = arith.constant 0 : i32
    return %arg2, %arg1 : i32, i32
  }
  func.func @transform_2(%arg0: i32, %arg1: i32, %arg2: i32) -> (i32, i32) {
    %c0_i32 = arith.constant 0 : i32
    return %arg0, %arg1 : i32, i32
  }
}

module attributes {stable_mosaic.version = 11 : i64} {
  func.func @kernel(%arg0: i32, %arg1: i32, %arg2: i32, %arg3: memref<8x6xbf16, #tpu.memory_space<vmem>>, %arg4: memref<6x128xbf16, #tpu.memory_space<vmem>>, %arg5: memref<1x128xf32, #tpu.memory_space<vmem>>, %arg6: memref<8x128xf32, #tpu.memory_space<vmem>>, %arg7: memref<8x128xf32, #tpu.memory_space<vmem>>) attributes {dimension_semantics = [#tpu.dimension_semantics<parallel>, #tpu.dimension_semantics<parallel>, #tpu.dimension_semantics<arbitrary>], iteration_bounds = array<i64: 1, 1, 1>, scalar_prefetch = 0 : i64, scratch_operands = 1 : i64, tpu.core_type = #tpu.core_type<tc>, window_params = [{transform_indices = @transform_0, window_bounds = array<i64: 8, 6>}, {transform_indices = @transform_1, window_bounds = array<i64: 6, 128>}, {transform_indices = @transform_2, window_bounds = array<i64: 1, 128>}, {transform_indices = @transform_3, window_bounds = array<i64: 8, 128>}]} {
    %c0_i32 = arith.constant 0 : i32
    %0 = arith.cmpi eq, %arg2, %c0_i32 : i32
    %1 = arith.extui %0 : i1 to i32
    %c0_i32_0 = arith.constant 0 : i32
    %2 = arith.cmpi ne, %1, %c0_i32_0 : i32
    scf.if %2 {
      %cst_10 = arith.constant 0.000000e+00 : f32
      %12 = vector.broadcast %cst_10 : f32 to vector<8x128xf32>
      %c0_11 = arith.constant 0 : index
      %c0_12 = arith.constant 0 : index
      %13 = vector.load %arg7[%c0_11, %c0_12] : memref<8x128xf32, #tpu.memory_space<vmem>>, vector<8x128xf32>
      tpu.vector_store %arg7[%c0_11, %c0_12], %12 {strides = array<i32>} : memref<8x128xf32, #tpu.memory_space<vmem>>, vector<8x128xf32>,
    } else {
    }
    %c0 = arith.constant 0 : index
    %c0_1 = arith.constant 0 : index
    %3 = vector.load %arg7[%c0, %c0_1] : memref<8x128xf32, #tpu.memory_space<vmem>>, vector<8x128xf32>
    %c0_2 = arith.constant 0 : index
    %c0_3 = arith.constant 0 : index
    %4 = vector.load %arg3[%c0_2, %c0_3] : memref<8x6xbf16, #tpu.memory_space<vmem>>, vector<8x6xbf16>
    %c0_4 = arith.constant 0 : index
    %c0_5 = arith.constant 0 : index
    %5 = vector.load %arg4[%c0_4, %c0_5] : memref<6x128xbf16, #tpu.memory_space<vmem>>, vector<6x128xbf16>
    %cst = arith.constant dense<0.000000e+00> : vector<8x128xf32>
    %6 = tpu.matmul %4, %5, %cst {dimension_numbers = #tpu.dot_dimension_numbers<[1], [0], [0], [1], [0, 0, 1, 1], [], []>} : vector<8x6xbf16>, vector<6x128xbf16>, vector<8x128xf32> -> vector<8x128xf32>
    %7 = arith.addf %3, %6 : vector<8x128xf32>
    %c0_6 = arith.constant 0 : index
    %c0_7 = arith.constant 0 : index
    %8 = vector.load %arg7[%c0_6, %c0_7] : memref<8x128xf32, #tpu.memory_space<vmem>>, vector<8x128xf32>
    tpu.vector_store %arg7[%c0_6, %c0_7], %7 {strides = array<i32>} : memref<8x128xf32, #tpu.memory_space<vmem>>, vector<8x128xf32>,
    %c0_i32_8 = arith.constant 0 : i32
    %9 = arith.cmpi eq, %arg2, %c0_i32_8 : i32
    %10 = arith.extui %9 : i1 to i32
    %c0_i32_9 = arith.constant 0 : i32
    %11 = arith.cmpi ne, %10, %c0_i32_9 : i32
    scf.if %11 {
      %c0_10 = arith.constant 0 : index
      %c0_11 = arith.constant 0 : index
      %12 = vector.load %arg7[%c0_10, %c0_11] : memref<8x128xf32, #tpu.memory_space<vmem>>, vector<8x128xf32>
      %c0_12 = arith.constant 0 : index
      %c0_13 = arith.constant 0 : index
      %13 = vector.load %arg5[%c0_12, %c0_13] : memref<1x128xf32, #tpu.memory_space<vmem>>, vector<1x128xf32>
      %14 = vector.broadcast %13 : vector<1x128xf32> to vector<8x128xf32>
      %15 = arith.addf %12, %14 : vector<8x128xf32>
      %c0_14 = arith.constant 0 : index
      %c0_15 = arith.constant 0 : index
      %16 = vector.load %arg6[%c0_14, %c0_15] : memref<8x128xf32, #tpu.memory_space<vmem>>, vector<8x128xf32>
      tpu.vector_store %arg6[%c0_14, %c0_15], %15 {strides = array<i32>} : memref<8x128xf32, #tpu.memory_space<vmem>>, vector<8x128xf32>,
    } else {
    }
    return
  }
  func.func @transform_0(%arg0: i32, %arg1: i32, %arg2: i32) -> (i32, i32) {
    %c0_i32 = arith.constant 0 : i32
    return %arg0, %arg2 : i32, i32
  }
  func.func @transform_1(%arg0: i32, %arg1: i32, %arg2: i32) -> (i32, i32) {
    %c0_i32 = arith.constant 0 : i32
    return %arg2, %arg1 : i32, i32
  }
  func.func @transform_2(%arg0: i32, %arg1: i32, %arg2: i32) -> (i32, i32) {
    %c0_i32 = arith.constant 0 : i32
    %c0_i32_0 = arith.constant 0 : i32
    return %c0_i32, %arg1 : i32, i32
  }
  func.func @transform_3(%arg0: i32, %arg1: i32, %arg2: i32) -> (i32, i32) {
    %c0_i32 = arith.constant 0 : i32
    return %arg0, %arg1 : i32, i32
  }
}

module attributes {stable_mosaic.version = 11 : i64} {
  func.func @kernel(%arg0: i32, %arg1: i32, %arg2: i32, %arg3: memref<24x256xbf16, #tpu.memory_space<vmem>>, %arg4: memref<256x256xbf16, #tpu.memory_space<vmem>>, %arg5: memref<24x256xf32, #tpu.memory_space<vmem>>, %arg6: memref<24x256xf32, #tpu.memory_space<vmem>>) attributes {dimension_semantics = [#tpu.dimension_semantics<parallel>, #tpu.dimension_semantics<parallel>, #tpu.dimension_semantics<arbitrary>], iteration_bounds = array<i64: 1, 1, 1>, scalar_prefetch = 0 : i64, scratch_operands = 1 : i64, tpu.core_type = #tpu.core_type<tc>, window_params = [{transform_indices = @transform_0, window_bounds = array<i64: 24, 256>}, {transform_indices = @transform_1, window_bounds = array<i64: 256, 256>}, {transform_indices = @transform_2, window_bounds = array<i64: 24, 256>}]} {
    %c0_i32 = arith.constant 0 : i32
    %0 = arith.cmpi eq, %arg2, %c0_i32 : i32
    %1 = arith.extui %0 : i1 to i32
    %c0_i32_0 = arith.constant 0 : i32
    %2 = arith.cmpi ne, %1, %c0_i32_0 : i32
    scf.if %2 {
      %cst_10 = arith.constant 0.000000e+00 : f32
      %12 = vector.broadcast %cst_10 : f32 to vector<24x256xf32>
      %c0_11 = arith.constant 0 : index
      %c0_12 = arith.constant 0 : index
      %13 = vector.load %arg6[%c0_11, %c0_12] : memref<24x256xf32, #tpu.memory_space<vmem>>, vector<24x256xf32>
      tpu.vector_store %arg6[%c0_11, %c0_12], %12 {strides = array<i32>} : memref<24x256xf32, #tpu.memory_space<vmem>>, vector<24x256xf32>,
    } else {
    }
    %c0 = arith.constant 0 : index
    %c0_1 = arith.constant 0 : index
    %3 = vector.load %arg6[%c0, %c0_1] : memref<24x256xf32, #tpu.memory_space<vmem>>, vector<24x256xf32>
    %c0_2 = arith.constant 0 : index
    %c0_3 = arith.constant 0 : index
    %4 = vector.load %arg3[%c0_2, %c0_3] : memref<24x256xbf16, #tpu.memory_space<vmem>>, vector<24x256xbf16>
    %c0_4 = arith.constant 0 : index
    %c0_5 = arith.constant 0 : index
    %5 = vector.load %arg4[%c0_4, %c0_5] : memref<256x256xbf16, #tpu.memory_space<vmem>>, vector<256x256xbf16>
    %cst = arith.constant dense<0.000000e+00> : vector<24x256xf32>
    %6 = tpu.matmul %4, %5, %cst {dimension_numbers = #tpu.dot_dimension_numbers<[1], [0], [0], [1], [0, 0, 1, 1], [], []>} : vector<24x256xbf16>, vector<256x256xbf16>, vector<24x256xf32> -> vector<24x256xf32>
    %7 = arith.addf %3, %6 : vector<24x256xf32>
    %c0_6 = arith.constant 0 : index
    %c0_7 = arith.constant 0 : index
    %8 = vector.load %arg6[%c0_6, %c0_7] : memref<24x256xf32, #tpu.memory_space<vmem>>, vector<24x256xf32>
    tpu.vector_store %arg6[%c0_6, %c0_7], %7 {strides = array<i32>} : memref<24x256xf32, #tpu.memory_space<vmem>>, vector<24x256xf32>,
    %c0_i32_8 = arith.constant 0 : i32
    %9 = arith.cmpi eq, %arg2, %c0_i32_8 : i32
    %10 = arith.extui %9 : i1 to i32
    %c0_i32_9 = arith.constant 0 : i32
    %11 = arith.cmpi ne, %10, %c0_i32_9 : i32
    scf.if %11 {
      %c0_10 = arith.constant 0 : index
      %c0_11 = arith.constant 0 : index
      %12 = vector.load %arg6[%c0_10, %c0_11] : memref<24x256xf32, #tpu.memory_space<vmem>>, vector<24x256xf32>
      %c0_12 = arith.constant 0 : index
      %c0_13 = arith.constant 0 : index
      %13 = vector.load %arg5[%c0_12, %c0_13] : memref<24x256xf32, #tpu.memory_space<vmem>>, vector<24x256xf32>
      tpu.vector_store %arg5[%c0_12, %c0_13], %12 {strides = array<i32>} : memref<24x256xf32, #tpu.memory_space<vmem>>, vector<24x256xf32>,
    } else {
    }
    return
  }
  func.func @transform_0(%arg0: i32, %arg1: i32, %arg2: i32) -> (i32, i32) {
    %c0_i32 = arith.constant 0 : i32
    return %arg0, %arg2 : i32, i32
  }
  func.func @transform_1(%arg0: i32, %arg1: i32, %arg2: i32) -> (i32, i32) {
    %c0_i32 = arith.constant 0 : i32
    return %arg2, %arg1 : i32, i32
  }
  func.func @transform_2(%arg0: i32, %arg1: i32, %arg2: i32) -> (i32, i32) {
    %c0_i32 = arith.constant 0 : i32
    return %arg0, %arg1 : i32, i32
  }
}

module attributes {stable_mosaic.version = 11 : i64} {
  func.func @kernel(%arg0: i32, %arg1: i32, %arg2: i32, %arg3: memref<1x1x24xf32, #tpu.memory_space<vmem>>, %arg4: memref<1x24x1xf32, #tpu.memory_space<vmem>>, %arg5: memref<24x24xbf16, #tpu.memory_space<vmem>>, %arg6: memref<24x128xbf16, #tpu.memory_space<vmem>>, %arg7: memref<1x1x128xf32, #tpu.memory_space<vmem>>, %arg8: memref<24x128xf32, #tpu.memory_space<vmem>>, %arg9: memref<24x128xf32, #tpu.memory_space<vmem>>, %arg10: memref<24x1xf32, #tpu.memory_space<vmem>>, %arg11: memref<24x1xf32, #tpu.memory_space<vmem>>, %arg12: memref<24x128xf32, #tpu.memory_space<vmem>>) attributes {dimension_semantics = [#tpu.dimension_semantics<parallel>, #tpu.dimension_semantics<parallel>, #tpu.dimension_semantics<arbitrary>], iteration_bounds = array<i64: 2, 1, 1>, scalar_prefetch = 0 : i64, scratch_operands = 3 : i64, tpu.core_type = #tpu.core_type<tc>, window_params = [{transform_indices = @transform_0, window_bounds = array<i64: 1, 1, 24>}, {transform_indices = @transform_1, window_bounds = array<i64: 1, 24, 1>}, {transform_indices = @transform_2, window_bounds = array<i64: 24, 24>}, {transform_indices = @transform_3, window_bounds = array<i64: 24, 128>}, {transform_indices = @transform_4, window_bounds = array<i64: 1, 1, 128>}, {transform_indices = @transform_5, window_bounds = array<i64: 24, 128>}, {transform_indices = @transform_6, window_bounds = array<i64: 24, 128>}]} {
    %c0_i32 = arith.constant 0 : i32
    %0 = arith.cmpi eq, %arg2, %c0_i32 : i32
    %1 = arith.extui %0 : i1 to i32
    %c0_i32_0 = arith.constant 0 : i32
    %2 = arith.cmpi ne, %1, %c0_i32_0 : i32
    scf.if %2 {
      %cst_31 = arith.constant -1.000000e+30 : f32
      %49 = vector.broadcast %cst_31 : f32 to vector<24x1xf32>
      %c0_32 = arith.constant 0 : index
      %c0_33 = arith.constant 0 : index
      %50 = vector.load %arg10[%c0_32, %c0_33] : memref<24x1xf32, #tpu.memory_space<vmem>>, vector<24x1xf32>
      tpu.vector_store %arg10[%c0_32, %c0_33], %49 {strides = array<i32>} : memref<24x1xf32, #tpu.memory_space<vmem>>, vector<24x1xf32>,
      %cst_34 = arith.constant 0.000000e+00 : f32
      %51 = vector.broadcast %cst_34 : f32 to vector<24x1xf32>
      %c0_35 = arith.constant 0 : index
      %c0_36 = arith.constant 0 : index
      %52 = vector.load %arg11[%c0_35, %c0_36] : memref<24x1xf32, #tpu.memory_space<vmem>>, vector<24x1xf32>
      tpu.vector_store %arg11[%c0_35, %c0_36], %51 {strides = array<i32>} : memref<24x1xf32, #tpu.memory_space<vmem>>, vector<24x1xf32>,
      %cst_37 = arith.constant 0.000000e+00 : f32
      %53 = vector.broadcast %cst_37 : f32 to vector<24x128xf32>
      %c0_38 = arith.constant 0 : index
      %c0_39 = arith.constant 0 : index
      %54 = vector.load %arg12[%c0_38, %c0_39] : memref<24x128xf32, #tpu.memory_space<vmem>>, vector<24x128xf32>
      tpu.vector_store %arg12[%c0_38, %c0_39], %53 {strides = array<i32>} : memref<24x128xf32, #tpu.memory_space<vmem>>, vector<24x128xf32>,
    } else {
    }
    %c0 = arith.constant 0 : index
    %c0_1 = arith.constant 0 : index
    %c0_2 = arith.constant 0 : index
    %3 = vector.load %arg3[%c0, %c0_1, %c0_2] : memref<1x1x24xf32, #tpu.memory_space<vmem>>, vector<1x1x24xf32>
    %4 = vector.shape_cast %3 : vector<1x1x24xf32> to vector<1x24xf32>
    %c0_3 = arith.constant 0 : index
    %c0_4 = arith.constant 0 : index
    %c0_5 = arith.constant 0 : index
    %5 = vector.load %arg4[%c0_3, %c0_4, %c0_5] : memref<1x24x1xf32, #tpu.memory_space<vmem>>, vector<1x24x1xf32>
    %6 = vector.shape_cast %5 : vector<1x24x1xf32> to vector<24x1xf32>
    %7 = vector.broadcast %6 : vector<24x1xf32> to vector<24x24xf32>
    %8 = vector.broadcast %4 : vector<1x24xf32> to vector<24x24xf32>
    %9 = arith.addf %7, %8 : vector<24x24xf32>
    %cst = arith.constant 0.000000e+00 : f32
    %10 = vector.broadcast %cst : f32 to vector<24x24xf32>
    %11 = arith.cmpf ogt, %9, %10 : vector<24x24xf32>
    %cst_6 = arith.constant 2.000000e-01 : f32
    %12 = vector.broadcast %cst_6 : f32 to vector<24x24xf32>
    %13 = arith.mulf %12, %9 : vector<24x24xf32>
    %14 = arith.select %11, %9, %13 : vector<24x24xi1>, vector<24x24xf32>
    %c0_7 = arith.constant 0 : index
    %c0_8 = arith.constant 0 : index
    %15 = vector.load %arg5[%c0_7, %c0_8] : memref<24x24xbf16, #tpu.memory_space<vmem>>, vector<24x24xbf16>
    %cst_9 = arith.constant 0.000000e+00 : bf16
    %16 = vector.broadcast %cst_9 : bf16 to vector<24x24xbf16>
    %17 = arith.cmpf ogt, %15, %16 : vector<24x24xbf16>
    %cst_10 = arith.constant -1.000000e+30 : f32
    %18 = vector.broadcast %cst_10 : f32 to vector<24x24xf32>
    %19 = arith.select %17, %14, %18 : vector<24x24xi1>, vector<24x24xf32>
    %c0_11 = arith.constant 0 : index
    %c0_12 = arith.constant 0 : index
    %20 = vector.load %arg10[%c0_11, %c0_12] : memref<24x1xf32, #tpu.memory_space<vmem>>, vector<24x1xf32>
    %cst_13 = arith.constant dense<0xFF800000> : vector<24xf32>
    %21 = vector.multi_reduction <maximumf>, %19, %cst_13 [1] : vector<24x24xf32> to vector<24xf32>
    %22 = vector.shape_cast %21 : vector<24xf32> to vector<24x1xf32>
    %23 = arith.maximumf %20, %22 : vector<24x1xf32>
    %24 = arith.subf %20, %23 : vector<24x1xf32>
    %25 = math.exp %24 : vector<24x1xf32>
    %26 = vector.broadcast %23 : vector<24x1xf32> to vector<24x24xf32>
    %27 = arith.subf %19, %26 : vector<24x24xf32>
    %28 = math.exp %27 : vector<24x24xf32>
    %cst_14 = arith.constant 0.000000e+00 : f32
    %29 = vector.broadcast %cst_14 : f32 to vector<24x24xf32>
    %30 = arith.select %17, %28, %29 : vector<24x24xi1>, vector<24x24xf32>
    %c0_15 = arith.constant 0 : index
    %c0_16 = arith.constant 0 : index
    %31 = vector.load %arg11[%c0_15, %c0_16] : memref<24x1xf32, #tpu.memory_space<vmem>>, vector<24x1xf32>
    %32 = arith.mulf %25, %31 : vector<24x1xf32>
    %cst_17 = arith.constant dense<0.000000e+00> : vector<24xf32>
    %33 = vector.multi_reduction <add>, %30, %cst_17 [1] : vector<24x24xf32> to vector<24xf32>
    %34 = vector.shape_cast %33 : vector<24xf32> to vector<24x1xf32>
    %35 = arith.addf %32, %34 : vector<24x1xf32>
    %c0_18 = arith.constant 0 : index
    %c0_19 = arith.constant 0 : index
    %36 = vector.load %arg11[%c0_18, %c0_19] : memref<24x1xf32, #tpu.memory_space<vmem>>, vector<24x1xf32>
    tpu.vector_store %arg11[%c0_18, %c0_19], %35 {strides = array<i32>} : memref<24x1xf32, #tpu.memory_space<vmem>>, vector<24x1xf32>,
    %c0_20 = arith.constant 0 : index
    %c0_21 = arith.constant 0 : index
    %37 = vector.load %arg12[%c0_20, %c0_21] : memref<24x128xf32, #tpu.memory_space<vmem>>, vector<24x128xf32>
    %38 = vector.broadcast %25 : vector<24x1xf32> to vector<24x128xf32>
    %39 = arith.mulf %38, %37 : vector<24x128xf32>
    %40 = arith.truncf %30 : vector<24x24xf32> to vector<24x24xbf16>
    %c0_22 = arith.constant 0 : index
    %c0_23 = arith.constant 0 : index
    %41 = vector.load %arg6[%c0_22, %c0_23] : memref<24x128xbf16, #tpu.memory_space<vmem>>, vector<24x128xbf16>
    %cst_24 = arith.constant dense<0.000000e+00> : vector<24x128xf32>
    %42 = tpu.matmul %40, %41, %cst_24 {dimension_numbers = #tpu.dot_dimension_numbers<[1], [0], [0], [1], [0, 0, 1, 1], [], []>} : vector<24x24xbf16>, vector<24x128xbf16>, vector<24x128xf32> -> vector<24x128xf32>
    %43 = arith.addf %39, %42 : vector<24x128xf32>
    %c0_25 = arith.constant 0 : index
    %c0_26 = arith.constant 0 : index
    %44 = vector.load %arg12[%c0_25, %c0_26] : memref<24x128xf32, #tpu.memory_space<vmem>>, vector<24x128xf32>
    tpu.vector_store %arg12[%c0_25, %c0_26], %43 {strides = array<i32>} : memref<24x128xf32, #tpu.memory_space<vmem>>, vector<24x128xf32>,
    %c0_27 = arith.constant 0 : index
    %c0_28 = arith.constant 0 : index
    %45 = vector.load %arg10[%c0_27, %c0_28] : memref<24x1xf32, #tpu.memory_space<vmem>>, vector<24x1xf32>
    tpu.vector_store %arg10[%c0_27, %c0_28], %23 {strides = array<i32>} : memref<24x1xf32, #tpu.memory_space<vmem>>, vector<24x1xf32>,
    %c0_i32_29 = arith.constant 0 : i32
    %46 = arith.cmpi eq, %arg2, %c0_i32_29 : i32
    %47 = arith.extui %46 : i1 to i32
    %c0_i32_30 = arith.constant 0 : i32
    %48 = arith.cmpi ne, %47, %c0_i32_30 : i32
    scf.if %48 {
      %c0_31 = arith.constant 0 : index
      %c0_32 = arith.constant 0 : index
      %49 = vector.load %arg11[%c0_31, %c0_32] : memref<24x1xf32, #tpu.memory_space<vmem>>, vector<24x1xf32>
      %cst_33 = arith.constant 0.000000e+00 : f32
      %50 = vector.broadcast %cst_33 : f32 to vector<24x1xf32>
      %51 = arith.cmpf ogt, %49, %50 : vector<24x1xf32>
      %cst_34 = arith.constant 1.000000e+00 : f32
      %52 = vector.broadcast %cst_34 : f32 to vector<24x1xf32>
      %53 = arith.select %51, %49, %52 : vector<24x1xi1>, vector<24x1xf32>
      %54 = tpu.reciprocal %53 {approx = true} : vector<24x1xf32> -> vector<24x1xf32>
      %c0_35 = arith.constant 0 : index
      %c0_36 = arith.constant 0 : index
      %55 = vector.load %arg12[%c0_35, %c0_36] : memref<24x128xf32, #tpu.memory_space<vmem>>, vector<24x128xf32>
      %56 = vector.broadcast %54 : vector<24x1xf32> to vector<24x128xf32>
      %57 = arith.mulf %55, %56 : vector<24x128xf32>
      %c0_37 = arith.constant 0 : index
      %c0_38 = arith.constant 0 : index
      %c0_39 = arith.constant 0 : index
      %58 = vector.load %arg7[%c0_37, %c0_38, %c0_39] : memref<1x1x128xf32, #tpu.memory_space<vmem>>, vector<1x1x128xf32>
      %59 = vector.shape_cast %58 : vector<1x1x128xf32> to vector<1x128xf32>
      %60 = vector.broadcast %59 : vector<1x128xf32> to vector<24x128xf32>
      %61 = arith.addf %57, %60 : vector<24x128xf32>
      %c0_40 = arith.constant 0 : index
      %c0_41 = arith.constant 0 : index
      %62 = vector.load %arg8[%c0_40, %c0_41] : memref<24x128xf32, #tpu.memory_space<vmem>>, vector<24x128xf32>
      %63 = arith.addf %61, %62 : vector<24x128xf32>
      %cst_42 = arith.constant 0.000000e+00 : f32
      %64 = vector.broadcast %cst_42 : f32 to vector<24x128xf32>
      %65 = arith.cmpf ogt, %63, %64 : vector<24x128xf32>
      %cst_43 = arith.constant 0.000000e+00 : f32
      %66 = vector.broadcast %cst_43 : f32 to vector<24x128xf32>
      %67 = arith.minimumf %63, %66 : vector<24x128xf32>
      %68 = math.exp %67 : vector<24x128xf32>
      %cst_44 = arith.constant 1.000000e+00 : f32
      %69 = vector.broadcast %cst_44 : f32 to vector<24x128xf32>
      %70 = arith.subf %68, %69 : vector<24x128xf32>
      %71 = arith.select %65, %63, %70 : vector<24x128xi1>, vector<24x128xf32>
      %c0_45 = arith.constant 0 : index
      %c0_46 = arith.constant 0 : index
      %72 = vector.load %arg9[%c0_45, %c0_46] : memref<24x128xf32, #tpu.memory_space<vmem>>, vector<24x128xf32>
      tpu.vector_store %arg9[%c0_45, %c0_46], %71 {strides = array<i32>} : memref<24x128xf32, #tpu.memory_space<vmem>>, vector<24x128xf32>,
    } else {
    }
    return
  }
  func.func @transform_0(%arg0: i32, %arg1: i32, %arg2: i32) -> (i32, i32, i32) {
    %c0_i32 = arith.constant 0 : i32
    %c0_i32_0 = arith.constant 0 : i32
    return %arg0, %c0_i32, %arg2 : i32, i32, i32
  }
  func.func @transform_1(%arg0: i32, %arg1: i32, %arg2: i32) -> (i32, i32, i32) {
    %c0_i32 = arith.constant 0 : i32
    %c0_i32_0 = arith.constant 0 : i32
    return %arg0, %arg1, %c0_i32 : i32, i32, i32
  }
  func.func @transform_2(%arg0: i32, %arg1: i32, %arg2: i32) -> (i32, i32) {
    %c0_i32 = arith.constant 0 : i32
    return %arg1, %arg2 : i32, i32
  }
  func.func @transform_3(%arg0: i32, %arg1: i32, %arg2: i32) -> (i32, i32) {
    %c0_i32 = arith.constant 0 : i32
    return %arg2, %arg0 : i32, i32
  }
  func.func @transform_4(%arg0: i32, %arg1: i32, %arg2: i32) -> (i32, i32, i32) {
    %c0_i32 = arith.constant 0 : i32
    %c0_i32_0 = arith.constant 0 : i32
    %c0_i32_1 = arith.constant 0 : i32
    return %arg0, %c0_i32, %c0_i32_0 : i32, i32, i32
  }
  func.func @transform_5(%arg0: i32, %arg1: i32, %arg2: i32) -> (i32, i32) {
    %c0_i32 = arith.constant 0 : i32
    return %arg1, %arg0 : i32, i32
  }
  func.func @transform_6(%arg0: i32, %arg1: i32, %arg2: i32) -> (i32, i32) {
    %c0_i32 = arith.constant 0 : i32
    return %arg1, %arg0 : i32, i32
  }
}

module attributes {stable_mosaic.version = 11 : i64} {
  func.func @kernel(%arg0: i32, %arg1: i32, %arg2: i32, %arg3: memref<1x1x24xf32, #tpu.memory_space<vmem>>, %arg4: memref<1x24x1xf32, #tpu.memory_space<vmem>>, %arg5: memref<24x24xbf16, #tpu.memory_space<vmem>>, %arg6: memref<24x128xbf16, #tpu.memory_space<vmem>>, %arg7: memref<1x1x128xf32, #tpu.memory_space<vmem>>, %arg8: memref<24x128xf32, #tpu.memory_space<vmem>>, %arg9: memref<24x1xf32, #tpu.memory_space<vmem>>, %arg10: memref<24x1xf32, #tpu.memory_space<vmem>>, %arg11: memref<24x128xf32, #tpu.memory_space<vmem>>) attributes {dimension_semantics = [#tpu.dimension_semantics<parallel>, #tpu.dimension_semantics<parallel>, #tpu.dimension_semantics<arbitrary>], iteration_bounds = array<i64: 2, 1, 1>, scalar_prefetch = 0 : i64, scratch_operands = 3 : i64, tpu.core_type = #tpu.core_type<tc>, window_params = [{transform_indices = @transform_0, window_bounds = array<i64: 1, 1, 24>}, {transform_indices = @transform_1, window_bounds = array<i64: 1, 24, 1>}, {transform_indices = @transform_2, window_bounds = array<i64: 24, 24>}, {transform_indices = @transform_3, window_bounds = array<i64: 24, 128>}, {transform_indices = @transform_4, window_bounds = array<i64: 1, 1, 128>}, {transform_indices = @transform_5, window_bounds = array<i64: 24, 128>}]} {
    %c0_i32 = arith.constant 0 : i32
    %0 = arith.cmpi eq, %arg2, %c0_i32 : i32
    %1 = arith.extui %0 : i1 to i32
    %c0_i32_0 = arith.constant 0 : i32
    %2 = arith.cmpi ne, %1, %c0_i32_0 : i32
    scf.if %2 {
      %cst_31 = arith.constant -1.000000e+30 : f32
      %49 = vector.broadcast %cst_31 : f32 to vector<24x1xf32>
      %c0_32 = arith.constant 0 : index
      %c0_33 = arith.constant 0 : index
      %50 = vector.load %arg9[%c0_32, %c0_33] : memref<24x1xf32, #tpu.memory_space<vmem>>, vector<24x1xf32>
      tpu.vector_store %arg9[%c0_32, %c0_33], %49 {strides = array<i32>} : memref<24x1xf32, #tpu.memory_space<vmem>>, vector<24x1xf32>,
      %cst_34 = arith.constant 0.000000e+00 : f32
      %51 = vector.broadcast %cst_34 : f32 to vector<24x1xf32>
      %c0_35 = arith.constant 0 : index
      %c0_36 = arith.constant 0 : index
      %52 = vector.load %arg10[%c0_35, %c0_36] : memref<24x1xf32, #tpu.memory_space<vmem>>, vector<24x1xf32>
      tpu.vector_store %arg10[%c0_35, %c0_36], %51 {strides = array<i32>} : memref<24x1xf32, #tpu.memory_space<vmem>>, vector<24x1xf32>,
      %cst_37 = arith.constant 0.000000e+00 : f32
      %53 = vector.broadcast %cst_37 : f32 to vector<24x128xf32>
      %c0_38 = arith.constant 0 : index
      %c0_39 = arith.constant 0 : index
      %54 = vector.load %arg11[%c0_38, %c0_39] : memref<24x128xf32, #tpu.memory_space<vmem>>, vector<24x128xf32>
      tpu.vector_store %arg11[%c0_38, %c0_39], %53 {strides = array<i32>} : memref<24x128xf32, #tpu.memory_space<vmem>>, vector<24x128xf32>,
    } else {
    }
    %c0 = arith.constant 0 : index
    %c0_1 = arith.constant 0 : index
    %c0_2 = arith.constant 0 : index
    %3 = vector.load %arg3[%c0, %c0_1, %c0_2] : memref<1x1x24xf32, #tpu.memory_space<vmem>>, vector<1x1x24xf32>
    %4 = vector.shape_cast %3 : vector<1x1x24xf32> to vector<1x24xf32>
    %c0_3 = arith.constant 0 : index
    %c0_4 = arith.constant 0 : index
    %c0_5 = arith.constant 0 : index
    %5 = vector.load %arg4[%c0_3, %c0_4, %c0_5] : memref<1x24x1xf32, #tpu.memory_space<vmem>>, vector<1x24x1xf32>
    %6 = vector.shape_cast %5 : vector<1x24x1xf32> to vector<24x1xf32>
    %7 = vector.broadcast %6 : vector<24x1xf32> to vector<24x24xf32>
    %8 = vector.broadcast %4 : vector<1x24xf32> to vector<24x24xf32>
    %9 = arith.addf %7, %8 : vector<24x24xf32>
    %cst = arith.constant 0.000000e+00 : f32
    %10 = vector.broadcast %cst : f32 to vector<24x24xf32>
    %11 = arith.cmpf ogt, %9, %10 : vector<24x24xf32>
    %cst_6 = arith.constant 2.000000e-01 : f32
    %12 = vector.broadcast %cst_6 : f32 to vector<24x24xf32>
    %13 = arith.mulf %12, %9 : vector<24x24xf32>
    %14 = arith.select %11, %9, %13 : vector<24x24xi1>, vector<24x24xf32>
    %c0_7 = arith.constant 0 : index
    %c0_8 = arith.constant 0 : index
    %15 = vector.load %arg5[%c0_7, %c0_8] : memref<24x24xbf16, #tpu.memory_space<vmem>>, vector<24x24xbf16>
    %cst_9 = arith.constant 0.000000e+00 : bf16
    %16 = vector.broadcast %cst_9 : bf16 to vector<24x24xbf16>
    %17 = arith.cmpf ogt, %15, %16 : vector<24x24xbf16>
    %cst_10 = arith.constant -1.000000e+30 : f32
    %18 = vector.broadcast %cst_10 : f32 to vector<24x24xf32>
    %19 = arith.select %17, %14, %18 : vector<24x24xi1>, vector<24x24xf32>
    %c0_11 = arith.constant 0 : index
    %c0_12 = arith.constant 0 : index
    %20 = vector.load %arg9[%c0_11, %c0_12] : memref<24x1xf32, #tpu.memory_space<vmem>>, vector<24x1xf32>
    %cst_13 = arith.constant dense<0xFF800000> : vector<24xf32>
    %21 = vector.multi_reduction <maximumf>, %19, %cst_13 [1] : vector<24x24xf32> to vector<24xf32>
    %22 = vector.shape_cast %21 : vector<24xf32> to vector<24x1xf32>
    %23 = arith.maximumf %20, %22 : vector<24x1xf32>
    %24 = arith.subf %20, %23 : vector<24x1xf32>
    %25 = math.exp %24 : vector<24x1xf32>
    %26 = vector.broadcast %23 : vector<24x1xf32> to vector<24x24xf32>
    %27 = arith.subf %19, %26 : vector<24x24xf32>
    %28 = math.exp %27 : vector<24x24xf32>
    %cst_14 = arith.constant 0.000000e+00 : f32
    %29 = vector.broadcast %cst_14 : f32 to vector<24x24xf32>
    %30 = arith.select %17, %28, %29 : vector<24x24xi1>, vector<24x24xf32>
    %c0_15 = arith.constant 0 : index
    %c0_16 = arith.constant 0 : index
    %31 = vector.load %arg10[%c0_15, %c0_16] : memref<24x1xf32, #tpu.memory_space<vmem>>, vector<24x1xf32>
    %32 = arith.mulf %25, %31 : vector<24x1xf32>
    %cst_17 = arith.constant dense<0.000000e+00> : vector<24xf32>
    %33 = vector.multi_reduction <add>, %30, %cst_17 [1] : vector<24x24xf32> to vector<24xf32>
    %34 = vector.shape_cast %33 : vector<24xf32> to vector<24x1xf32>
    %35 = arith.addf %32, %34 : vector<24x1xf32>
    %c0_18 = arith.constant 0 : index
    %c0_19 = arith.constant 0 : index
    %36 = vector.load %arg10[%c0_18, %c0_19] : memref<24x1xf32, #tpu.memory_space<vmem>>, vector<24x1xf32>
    tpu.vector_store %arg10[%c0_18, %c0_19], %35 {strides = array<i32>} : memref<24x1xf32, #tpu.memory_space<vmem>>, vector<24x1xf32>,
    %c0_20 = arith.constant 0 : index
    %c0_21 = arith.constant 0 : index
    %37 = vector.load %arg11[%c0_20, %c0_21] : memref<24x128xf32, #tpu.memory_space<vmem>>, vector<24x128xf32>
    %38 = vector.broadcast %25 : vector<24x1xf32> to vector<24x128xf32>
    %39 = arith.mulf %38, %37 : vector<24x128xf32>
    %40 = arith.truncf %30 : vector<24x24xf32> to vector<24x24xbf16>
    %c0_22 = arith.constant 0 : index
    %c0_23 = arith.constant 0 : index
    %41 = vector.load %arg6[%c0_22, %c0_23] : memref<24x128xbf16, #tpu.memory_space<vmem>>, vector<24x128xbf16>
    %cst_24 = arith.constant dense<0.000000e+00> : vector<24x128xf32>
    %42 = tpu.matmul %40, %41, %cst_24 {dimension_numbers = #tpu.dot_dimension_numbers<[1], [0], [0], [1], [0, 0, 1, 1], [], []>} : vector<24x24xbf16>, vector<24x128xbf16>, vector<24x128xf32> -> vector<24x128xf32>
    %43 = arith.addf %39, %42 : vector<24x128xf32>
    %c0_25 = arith.constant 0 : index
    %c0_26 = arith.constant 0 : index
    %44 = vector.load %arg11[%c0_25, %c0_26] : memref<24x128xf32, #tpu.memory_space<vmem>>, vector<24x128xf32>
    tpu.vector_store %arg11[%c0_25, %c0_26], %43 {strides = array<i32>} : memref<24x128xf32, #tpu.memory_space<vmem>>, vector<24x128xf32>,
    %c0_27 = arith.constant 0 : index
    %c0_28 = arith.constant 0 : index
    %45 = vector.load %arg9[%c0_27, %c0_28] : memref<24x1xf32, #tpu.memory_space<vmem>>, vector<24x1xf32>
    tpu.vector_store %arg9[%c0_27, %c0_28], %23 {strides = array<i32>} : memref<24x1xf32, #tpu.memory_space<vmem>>, vector<24x1xf32>,
    %c0_i32_29 = arith.constant 0 : i32
    %46 = arith.cmpi eq, %arg2, %c0_i32_29 : i32
    %47 = arith.extui %46 : i1 to i32
    %c0_i32_30 = arith.constant 0 : i32
    %48 = arith.cmpi ne, %47, %c0_i32_30 : i32
    scf.if %48 {
      %c0_31 = arith.constant 0 : index
      %c0_32 = arith.constant 0 : index
      %49 = vector.load %arg10[%c0_31, %c0_32] : memref<24x1xf32, #tpu.memory_space<vmem>>, vector<24x1xf32>
      %cst_33 = arith.constant 0.000000e+00 : f32
      %50 = vector.broadcast %cst_33 : f32 to vector<24x1xf32>
      %51 = arith.cmpf ogt, %49, %50 : vector<24x1xf32>
      %cst_34 = arith.constant 1.000000e+00 : f32
      %52 = vector.broadcast %cst_34 : f32 to vector<24x1xf32>
      %53 = arith.select %51, %49, %52 : vector<24x1xi1>, vector<24x1xf32>
      %54 = tpu.reciprocal %53 {approx = true} : vector<24x1xf32> -> vector<24x1xf32>
      %c0_35 = arith.constant 0 : index
      %c0_36 = arith.constant 0 : index
      %55 = vector.load %arg11[%c0_35, %c0_36] : memref<24x128xf32, #tpu.memory_space<vmem>>, vector<24x128xf32>
      %56 = vector.broadcast %54 : vector<24x1xf32> to vector<24x128xf32>
      %57 = arith.mulf %55, %56 : vector<24x128xf32>
      %c0_37 = arith.constant 0 : index
      %c0_38 = arith.constant 0 : index
      %c0_39 = arith.constant 0 : index
      %58 = vector.load %arg7[%c0_37, %c0_38, %c0_39] : memref<1x1x128xf32, #tpu.memory_space<vmem>>, vector<1x1x128xf32>
      %59 = vector.shape_cast %58 : vector<1x1x128xf32> to vector<1x128xf32>
      %60 = vector.broadcast %59 : vector<1x128xf32> to vector<24x128xf32>
      %61 = arith.addf %57, %60 : vector<24x128xf32>
      %cst_40 = arith.constant 0.000000e+00 : f32
      %62 = vector.broadcast %cst_40 : f32 to vector<24x128xf32>
      %63 = arith.cmpf ogt, %61, %62 : vector<24x128xf32>
      %cst_41 = arith.constant 0.000000e+00 : f32
      %64 = vector.broadcast %cst_41 : f32 to vector<24x128xf32>
      %65 = arith.minimumf %61, %64 : vector<24x128xf32>
      %66 = math.exp %65 : vector<24x128xf32>
      %cst_42 = arith.constant 1.000000e+00 : f32
      %67 = vector.broadcast %cst_42 : f32 to vector<24x128xf32>
      %68 = arith.subf %66, %67 : vector<24x128xf32>
      %69 = arith.select %63, %61, %68 : vector<24x128xi1>, vector<24x128xf32>
      %c0_43 = arith.constant 0 : index
      %c0_44 = arith.constant 0 : index
      %70 = vector.load %arg8[%c0_43, %c0_44] : memref<24x128xf32, #tpu.memory_space<vmem>>, vector<24x128xf32>
      tpu.vector_store %arg8[%c0_43, %c0_44], %69 {strides = array<i32>} : memref<24x128xf32, #tpu.memory_space<vmem>>, vector<24x128xf32>,
    } else {
    }
    return
  }
  func.func @transform_0(%arg0: i32, %arg1: i32, %arg2: i32) -> (i32, i32, i32) {
    %c0_i32 = arith.constant 0 : i32
    %c0_i32_0 = arith.constant 0 : i32
    return %arg0, %c0_i32, %arg2 : i32, i32, i32
  }
  func.func @transform_1(%arg0: i32, %arg1: i32, %arg2: i32) -> (i32, i32, i32) {
    %c0_i32 = arith.constant 0 : i32
    %c0_i32_0 = arith.constant 0 : i32
    return %arg0, %arg1, %c0_i32 : i32, i32, i32
  }
  func.func @transform_2(%arg0: i32, %arg1: i32, %arg2: i32) -> (i32, i32) {
    %c0_i32 = arith.constant 0 : i32
    return %arg1, %arg2 : i32, i32
  }
  func.func @transform_3(%arg0: i32, %arg1: i32, %arg2: i32) -> (i32, i32) {
    %c0_i32 = arith.constant 0 : i32
    return %arg2, %arg0 : i32, i32
  }
  func.func @transform_4(%arg0: i32, %arg1: i32, %arg2: i32) -> (i32, i32, i32) {
    %c0_i32 = arith.constant 0 : i32
    %c0_i32_0 = arith.constant 0 : i32
    %c0_i32_1 = arith.constant 0 : i32
    return %arg0, %c0_i32, %c0_i32_0 : i32, i32, i32
  }
  func.func @transform_5(%arg0: i32, %arg1: i32, %arg2: i32) -> (i32, i32) {
    %c0_i32 = arith.constant 0 : i32
    return %arg1, %arg0 : i32, i32
  }
}

module attributes {stable_mosaic.version = 11 : i64} {
  func.func @kernel(%arg0: i32, %arg1: i32, %arg2: i32, %arg3: memref<24x256xbf16, #tpu.memory_space<vmem>>, %arg4: memref<256x128xbf16, #tpu.memory_space<vmem>>, %arg5: memref<24x128xf32, #tpu.memory_space<vmem>>, %arg6: memref<24x128xf32, #tpu.memory_space<vmem>>) attributes {dimension_semantics = [#tpu.dimension_semantics<parallel>, #tpu.dimension_semantics<parallel>, #tpu.dimension_semantics<arbitrary>], iteration_bounds = array<i64: 1, 1, 1>, scalar_prefetch = 0 : i64, scratch_operands = 1 : i64, tpu.core_type = #tpu.core_type<tc>, window_params = [{transform_indices = @transform_0, window_bounds = array<i64: 24, 256>}, {transform_indices = @transform_1, window_bounds = array<i64: 256, 128>}, {transform_indices = @transform_2, window_bounds = array<i64: 24, 128>}]} {
    %c0_i32 = arith.constant 0 : i32
    %0 = arith.cmpi eq, %arg2, %c0_i32 : i32
    %1 = arith.extui %0 : i1 to i32
    %c0_i32_0 = arith.constant 0 : i32
    %2 = arith.cmpi ne, %1, %c0_i32_0 : i32
    scf.if %2 {
      %cst_10 = arith.constant 0.000000e+00 : f32
      %12 = vector.broadcast %cst_10 : f32 to vector<24x128xf32>
      %c0_11 = arith.constant 0 : index
      %c0_12 = arith.constant 0 : index
      %13 = vector.load %arg6[%c0_11, %c0_12] : memref<24x128xf32, #tpu.memory_space<vmem>>, vector<24x128xf32>
      tpu.vector_store %arg6[%c0_11, %c0_12], %12 {strides = array<i32>} : memref<24x128xf32, #tpu.memory_space<vmem>>, vector<24x128xf32>,
    } else {
    }
    %c0 = arith.constant 0 : index
    %c0_1 = arith.constant 0 : index
    %3 = vector.load %arg6[%c0, %c0_1] : memref<24x128xf32, #tpu.memory_space<vmem>>, vector<24x128xf32>
    %c0_2 = arith.constant 0 : index
    %c0_3 = arith.constant 0 : index
    %4 = vector.load %arg3[%c0_2, %c0_3] : memref<24x256xbf16, #tpu.memory_space<vmem>>, vector<24x256xbf16>
    %c0_4 = arith.constant 0 : index
    %c0_5 = arith.constant 0 : index
    %5 = vector.load %arg4[%c0_4, %c0_5] : memref<256x128xbf16, #tpu.memory_space<vmem>>, vector<256x128xbf16>
    %cst = arith.constant dense<0.000000e+00> : vector<24x128xf32>
    %6 = tpu.matmul %4, %5, %cst {dimension_numbers = #tpu.dot_dimension_numbers<[1], [0], [0], [1], [0, 0, 1, 1], [], []>} : vector<24x256xbf16>, vector<256x128xbf16>, vector<24x128xf32> -> vector<24x128xf32>
    %7 = arith.addf %3, %6 : vector<24x128xf32>
    %c0_6 = arith.constant 0 : index
    %c0_7 = arith.constant 0 : index
    %8 = vector.load %arg6[%c0_6, %c0_7] : memref<24x128xf32, #tpu.memory_space<vmem>>, vector<24x128xf32>
    tpu.vector_store %arg6[%c0_6, %c0_7], %7 {strides = array<i32>} : memref<24x128xf32, #tpu.memory_space<vmem>>, vector<24x128xf32>,
    %c0_i32_8 = arith.constant 0 : i32
    %9 = arith.cmpi eq, %arg2, %c0_i32_8 : i32
    %10 = arith.extui %9 : i1 to i32
    %c0_i32_9 = arith.constant 0 : i32
    %11 = arith.cmpi ne, %10, %c0_i32_9 : i32
    scf.if %11 {
      %c0_10 = arith.constant 0 : index
      %c0_11 = arith.constant 0 : index
      %12 = vector.load %arg6[%c0_10, %c0_11] : memref<24x128xf32, #tpu.memory_space<vmem>>, vector<24x128xf32>
      %c0_12 = arith.constant 0 : index
      %c0_13 = arith.constant 0 : index
      %13 = vector.load %arg5[%c0_12, %c0_13] : memref<24x128xf32, #tpu.memory_space<vmem>>, vector<24x128xf32>
      tpu.vector_store %arg5[%c0_12, %c0_13], %12 {strides = array<i32>} : memref<24x128xf32, #tpu.memory_space<vmem>>, vector<24x128xf32>,
    } else {
    }
    return
  }
  func.func @transform_0(%arg0: i32, %arg1: i32, %arg2: i32) -> (i32, i32) {
    %c0_i32 = arith.constant 0 : i32
    return %arg0, %arg2 : i32, i32
  }
  func.func @transform_1(%arg0: i32, %arg1: i32, %arg2: i32) -> (i32, i32) {
    %c0_i32 = arith.constant 0 : i32
    return %arg2, %arg1 : i32, i32
  }
  func.func @transform_2(%arg0: i32, %arg1: i32, %arg2: i32) -> (i32, i32) {
    %c0_i32 = arith.constant 0 : i32
    return %arg0, %arg1 : i32, i32
  }
}

module attributes {stable_mosaic.version = 11 : i64} {
  func.func @kernel(%arg0: i32, %arg1: i32, %arg2: i32, %arg3: memref<1x1x24xf32, #tpu.memory_space<vmem>>, %arg4: memref<1x24x1xf32, #tpu.memory_space<vmem>>, %arg5: memref<24x24xbf16, #tpu.memory_space<vmem>>, %arg6: memref<24x128xbf16, #tpu.memory_space<vmem>>, %arg7: memref<1x1x128xf32, #tpu.memory_space<vmem>>, %arg8: memref<24x128xf32, #tpu.memory_space<vmem>>, %arg9: memref<24x128xf32, #tpu.memory_space<vmem>>, %arg10: memref<24x1xf32, #tpu.memory_space<vmem>>, %arg11: memref<24x1xf32, #tpu.memory_space<vmem>>, %arg12: memref<24x128xf32, #tpu.memory_space<vmem>>) attributes {dimension_semantics = [#tpu.dimension_semantics<parallel>, #tpu.dimension_semantics<parallel>, #tpu.dimension_semantics<arbitrary>], iteration_bounds = array<i64: 1, 1, 1>, scalar_prefetch = 0 : i64, scratch_operands = 3 : i64, tpu.core_type = #tpu.core_type<tc>, window_params = [{transform_indices = @transform_0, window_bounds = array<i64: 1, 1, 24>}, {transform_indices = @transform_1, window_bounds = array<i64: 1, 24, 1>}, {transform_indices = @transform_2, window_bounds = array<i64: 24, 24>}, {transform_indices = @transform_3, window_bounds = array<i64: 24, 128>}, {transform_indices = @transform_4, window_bounds = array<i64: 1, 1, 128>}, {transform_indices = @transform_5, window_bounds = array<i64: 24, 128>}, {transform_indices = @transform_6, window_bounds = array<i64: 24, 128>}]} {
    %c0_i32 = arith.constant 0 : i32
    %0 = arith.cmpi eq, %arg2, %c0_i32 : i32
    %1 = arith.extui %0 : i1 to i32
    %c0_i32_0 = arith.constant 0 : i32
    %2 = arith.cmpi ne, %1, %c0_i32_0 : i32
    scf.if %2 {
      %cst_31 = arith.constant -1.000000e+30 : f32
      %49 = vector.broadcast %cst_31 : f32 to vector<24x1xf32>
      %c0_32 = arith.constant 0 : index
      %c0_33 = arith.constant 0 : index
      %50 = vector.load %arg10[%c0_32, %c0_33] : memref<24x1xf32, #tpu.memory_space<vmem>>, vector<24x1xf32>
      tpu.vector_store %arg10[%c0_32, %c0_33], %49 {strides = array<i32>} : memref<24x1xf32, #tpu.memory_space<vmem>>, vector<24x1xf32>,
      %cst_34 = arith.constant 0.000000e+00 : f32
      %51 = vector.broadcast %cst_34 : f32 to vector<24x1xf32>
      %c0_35 = arith.constant 0 : index
      %c0_36 = arith.constant 0 : index
      %52 = vector.load %arg11[%c0_35, %c0_36] : memref<24x1xf32, #tpu.memory_space<vmem>>, vector<24x1xf32>
      tpu.vector_store %arg11[%c0_35, %c0_36], %51 {strides = array<i32>} : memref<24x1xf32, #tpu.memory_space<vmem>>, vector<24x1xf32>,
      %cst_37 = arith.constant 0.000000e+00 : f32
      %53 = vector.broadcast %cst_37 : f32 to vector<24x128xf32>
      %c0_38 = arith.constant 0 : index
      %c0_39 = arith.constant 0 : index
      %54 = vector.load %arg12[%c0_38, %c0_39] : memref<24x128xf32, #tpu.memory_space<vmem>>, vector<24x128xf32>
      tpu.vector_store %arg12[%c0_38, %c0_39], %53 {strides = array<i32>} : memref<24x128xf32, #tpu.memory_space<vmem>>, vector<24x128xf32>,
    } else {
    }
    %c0 = arith.constant 0 : index
    %c0_1 = arith.constant 0 : index
    %c0_2 = arith.constant 0 : index
    %3 = vector.load %arg3[%c0, %c0_1, %c0_2] : memref<1x1x24xf32, #tpu.memory_space<vmem>>, vector<1x1x24xf32>
    %4 = vector.shape_cast %3 : vector<1x1x24xf32> to vector<1x24xf32>
    %c0_3 = arith.constant 0 : index
    %c0_4 = arith.constant 0 : index
    %c0_5 = arith.constant 0 : index
    %5 = vector.load %arg4[%c0_3, %c0_4, %c0_5] : memref<1x24x1xf32, #tpu.memory_space<vmem>>, vector<1x24x1xf32>
    %6 = vector.shape_cast %5 : vector<1x24x1xf32> to vector<24x1xf32>
    %7 = vector.broadcast %6 : vector<24x1xf32> to vector<24x24xf32>
    %8 = vector.broadcast %4 : vector<1x24xf32> to vector<24x24xf32>
    %9 = arith.addf %7, %8 : vector<24x24xf32>
    %cst = arith.constant 0.000000e+00 : f32
    %10 = vector.broadcast %cst : f32 to vector<24x24xf32>
    %11 = arith.cmpf ogt, %9, %10 : vector<24x24xf32>
    %cst_6 = arith.constant 2.000000e-01 : f32
    %12 = vector.broadcast %cst_6 : f32 to vector<24x24xf32>
    %13 = arith.mulf %12, %9 : vector<24x24xf32>
    %14 = arith.select %11, %9, %13 : vector<24x24xi1>, vector<24x24xf32>
    %c0_7 = arith.constant 0 : index
    %c0_8 = arith.constant 0 : index
    %15 = vector.load %arg5[%c0_7, %c0_8] : memref<24x24xbf16, #tpu.memory_space<vmem>>, vector<24x24xbf16>
    %cst_9 = arith.constant 0.000000e+00 : bf16
    %16 = vector.broadcast %cst_9 : bf16 to vector<24x24xbf16>
    %17 = arith.cmpf ogt, %15, %16 : vector<24x24xbf16>
    %cst_10 = arith.constant -1.000000e+30 : f32
    %18 = vector.broadcast %cst_10 : f32 to vector<24x24xf32>
    %19 = arith.select %17, %14, %18 : vector<24x24xi1>, vector<24x24xf32>
    %c0_11 = arith.constant 0 : index
    %c0_12 = arith.constant 0 : index
    %20 = vector.load %arg10[%c0_11, %c0_12] : memref<24x1xf32, #tpu.memory_space<vmem>>, vector<24x1xf32>
    %cst_13 = arith.constant dense<0xFF800000> : vector<24xf32>
    %21 = vector.multi_reduction <maximumf>, %19, %cst_13 [1] : vector<24x24xf32> to vector<24xf32>
    %22 = vector.shape_cast %21 : vector<24xf32> to vector<24x1xf32>
    %23 = arith.maximumf %20, %22 : vector<24x1xf32>
    %24 = arith.subf %20, %23 : vector<24x1xf32>
    %25 = math.exp %24 : vector<24x1xf32>
    %26 = vector.broadcast %23 : vector<24x1xf32> to vector<24x24xf32>
    %27 = arith.subf %19, %26 : vector<24x24xf32>
    %28 = math.exp %27 : vector<24x24xf32>
    %cst_14 = arith.constant 0.000000e+00 : f32
    %29 = vector.broadcast %cst_14 : f32 to vector<24x24xf32>
    %30 = arith.select %17, %28, %29 : vector<24x24xi1>, vector<24x24xf32>
    %c0_15 = arith.constant 0 : index
    %c0_16 = arith.constant 0 : index
    %31 = vector.load %arg11[%c0_15, %c0_16] : memref<24x1xf32, #tpu.memory_space<vmem>>, vector<24x1xf32>
    %32 = arith.mulf %25, %31 : vector<24x1xf32>
    %cst_17 = arith.constant dense<0.000000e+00> : vector<24xf32>
    %33 = vector.multi_reduction <add>, %30, %cst_17 [1] : vector<24x24xf32> to vector<24xf32>
    %34 = vector.shape_cast %33 : vector<24xf32> to vector<24x1xf32>
    %35 = arith.addf %32, %34 : vector<24x1xf32>
    %c0_18 = arith.constant 0 : index
    %c0_19 = arith.constant 0 : index
    %36 = vector.load %arg11[%c0_18, %c0_19] : memref<24x1xf32, #tpu.memory_space<vmem>>, vector<24x1xf32>
    tpu.vector_store %arg11[%c0_18, %c0_19], %35 {strides = array<i32>} : memref<24x1xf32, #tpu.memory_space<vmem>>, vector<24x1xf32>,
    %c0_20 = arith.constant 0 : index
    %c0_21 = arith.constant 0 : index
    %37 = vector.load %arg12[%c0_20, %c0_21] : memref<24x128xf32, #tpu.memory_space<vmem>>, vector<24x128xf32>
    %38 = vector.broadcast %25 : vector<24x1xf32> to vector<24x128xf32>
    %39 = arith.mulf %38, %37 : vector<24x128xf32>
    %40 = arith.truncf %30 : vector<24x24xf32> to vector<24x24xbf16>
    %c0_22 = arith.constant 0 : index
    %c0_23 = arith.constant 0 : index
    %41 = vector.load %arg6[%c0_22, %c0_23] : memref<24x128xbf16, #tpu.memory_space<vmem>>, vector<24x128xbf16>
    %cst_24 = arith.constant dense<0.000000e+00> : vector<24x128xf32>
    %42 = tpu.matmul %40, %41, %cst_24 {dimension_numbers = #tpu.dot_dimension_numbers<[1], [0], [0], [1], [0, 0, 1, 1], [], []>} : vector<24x24xbf16>, vector<24x128xbf16>, vector<24x128xf32> -> vector<24x128xf32>
    %43 = arith.addf %39, %42 : vector<24x128xf32>
    %c0_25 = arith.constant 0 : index
    %c0_26 = arith.constant 0 : index
    %44 = vector.load %arg12[%c0_25, %c0_26] : memref<24x128xf32, #tpu.memory_space<vmem>>, vector<24x128xf32>
    tpu.vector_store %arg12[%c0_25, %c0_26], %43 {strides = array<i32>} : memref<24x128xf32, #tpu.memory_space<vmem>>, vector<24x128xf32>,
    %c0_27 = arith.constant 0 : index
    %c0_28 = arith.constant 0 : index
    %45 = vector.load %arg10[%c0_27, %c0_28] : memref<24x1xf32, #tpu.memory_space<vmem>>, vector<24x1xf32>
    tpu.vector_store %arg10[%c0_27, %c0_28], %23 {strides = array<i32>} : memref<24x1xf32, #tpu.memory_space<vmem>>, vector<24x1xf32>,
    %c0_i32_29 = arith.constant 0 : i32
    %46 = arith.cmpi eq, %arg2, %c0_i32_29 : i32
    %47 = arith.extui %46 : i1 to i32
    %c0_i32_30 = arith.constant 0 : i32
    %48 = arith.cmpi ne, %47, %c0_i32_30 : i32
    scf.if %48 {
      %c0_31 = arith.constant 0 : index
      %c0_32 = arith.constant 0 : index
      %49 = vector.load %arg11[%c0_31, %c0_32] : memref<24x1xf32, #tpu.memory_space<vmem>>, vector<24x1xf32>
      %cst_33 = arith.constant 0.000000e+00 : f32
      %50 = vector.broadcast %cst_33 : f32 to vector<24x1xf32>
      %51 = arith.cmpf ogt, %49, %50 : vector<24x1xf32>
      %cst_34 = arith.constant 1.000000e+00 : f32
      %52 = vector.broadcast %cst_34 : f32 to vector<24x1xf32>
      %53 = arith.select %51, %49, %52 : vector<24x1xi1>, vector<24x1xf32>
      %54 = tpu.reciprocal %53 {approx = true} : vector<24x1xf32> -> vector<24x1xf32>
      %c0_35 = arith.constant 0 : index
      %c0_36 = arith.constant 0 : index
      %55 = vector.load %arg12[%c0_35, %c0_36] : memref<24x128xf32, #tpu.memory_space<vmem>>, vector<24x128xf32>
      %56 = vector.broadcast %54 : vector<24x1xf32> to vector<24x128xf32>
      %57 = arith.mulf %55, %56 : vector<24x128xf32>
      %c0_37 = arith.constant 0 : index
      %c0_38 = arith.constant 0 : index
      %c0_39 = arith.constant 0 : index
      %58 = vector.load %arg7[%c0_37, %c0_38, %c0_39] : memref<1x1x128xf32, #tpu.memory_space<vmem>>, vector<1x1x128xf32>
      %59 = vector.shape_cast %58 : vector<1x1x128xf32> to vector<1x128xf32>
      %60 = vector.broadcast %59 : vector<1x128xf32> to vector<24x128xf32>
      %61 = arith.addf %57, %60 : vector<24x128xf32>
      %c0_40 = arith.constant 0 : index
      %c0_41 = arith.constant 0 : index
      %62 = vector.load %arg8[%c0_40, %c0_41] : memref<24x128xf32, #tpu.memory_space<vmem>>, vector<24x128xf32>
      %63 = arith.addf %61, %62 : vector<24x128xf32>
      %c0_42 = arith.constant 0 : index
      %c0_43 = arith.constant 0 : index
      %64 = vector.load %arg9[%c0_42, %c0_43] : memref<24x128xf32, #tpu.memory_space<vmem>>, vector<24x128xf32>
      tpu.vector_store %arg9[%c0_42, %c0_43], %63 {strides = array<i32>} : memref<24x128xf32, #tpu.memory_space<vmem>>, vector<24x128xf32>,
    } else {
    }
    return
  }
  func.func @transform_0(%arg0: i32, %arg1: i32, %arg2: i32) -> (i32, i32, i32) {
    %c0_i32 = arith.constant 0 : i32
    %c0_i32_0 = arith.constant 0 : i32
    return %arg0, %c0_i32, %arg2 : i32, i32, i32
  }
  func.func @transform_1(%arg0: i32, %arg1: i32, %arg2: i32) -> (i32, i32, i32) {
    %c0_i32 = arith.constant 0 : i32
    %c0_i32_0 = arith.constant 0 : i32
    return %arg0, %arg1, %c0_i32 : i32, i32, i32
  }
  func.func @transform_2(%arg0: i32, %arg1: i32, %arg2: i32) -> (i32, i32) {
    %c0_i32 = arith.constant 0 : i32
    return %arg1, %arg2 : i32, i32
  }
  func.func @transform_3(%arg0: i32, %arg1: i32, %arg2: i32) -> (i32, i32) {
    %c0_i32 = arith.constant 0 : i32
    return %arg2, %arg0 : i32, i32
  }
  func.func @transform_4(%arg0: i32, %arg1: i32, %arg2: i32) -> (i32, i32, i32) {
    %c0_i32 = arith.constant 0 : i32
    %c0_i32_0 = arith.constant 0 : i32
    %c0_i32_1 = arith.constant 0 : i32
    return %arg0, %c0_i32, %c0_i32_0 : i32, i32, i32
  }
  func.func @transform_5(%arg0: i32, %arg1: i32, %arg2: i32) -> (i32, i32) {
    %c0_i32 = arith.constant 0 : i32
    return %arg1, %arg0 : i32, i32
  }
  func.func @transform_6(%arg0: i32, %arg1: i32, %arg2: i32) -> (i32, i32) {
    %c0_i32 = arith.constant 0 : i32
    return %arg1, %arg0 : i32, i32
  }
}

module attributes {stable_mosaic.version = 11 : i64} {
  func.func @kernel(%arg0: i32, %arg1: i32, %arg2: i32, %arg3: memref<24x128xbf16, #tpu.memory_space<vmem>>, %arg4: memref<128x5xbf16, #tpu.memory_space<vmem>>, %arg5: memref<1x5xf32, #tpu.memory_space<vmem>>, %arg6: memref<24x5xf32, #tpu.memory_space<vmem>>, %arg7: memref<24x5xf32, #tpu.memory_space<vmem>>) attributes {dimension_semantics = [#tpu.dimension_semantics<parallel>, #tpu.dimension_semantics<parallel>, #tpu.dimension_semantics<arbitrary>], iteration_bounds = array<i64: 1, 1, 1>, scalar_prefetch = 0 : i64, scratch_operands = 1 : i64, tpu.core_type = #tpu.core_type<tc>, window_params = [{transform_indices = @transform_0, window_bounds = array<i64: 24, 128>}, {transform_indices = @transform_1, window_bounds = array<i64: 128, 5>}, {transform_indices = @transform_2, window_bounds = array<i64: 1, 5>}, {transform_indices = @transform_3, window_bounds = array<i64: 24, 5>}]} {
    %c0_i32 = arith.constant 0 : i32
    %0 = arith.cmpi eq, %arg2, %c0_i32 : i32
    %1 = arith.extui %0 : i1 to i32
    %c0_i32_0 = arith.constant 0 : i32
    %2 = arith.cmpi ne, %1, %c0_i32_0 : i32
    scf.if %2 {
      %cst_10 = arith.constant 0.000000e+00 : f32
      %12 = vector.broadcast %cst_10 : f32 to vector<24x5xf32>
      %c0_11 = arith.constant 0 : index
      %c0_12 = arith.constant 0 : index
      %13 = vector.load %arg7[%c0_11, %c0_12] : memref<24x5xf32, #tpu.memory_space<vmem>>, vector<24x5xf32>
      tpu.vector_store %arg7[%c0_11, %c0_12], %12 {strides = array<i32>} : memref<24x5xf32, #tpu.memory_space<vmem>>, vector<24x5xf32>,
    } else {
    }
    %c0 = arith.constant 0 : index
    %c0_1 = arith.constant 0 : index
    %3 = vector.load %arg7[%c0, %c0_1] : memref<24x5xf32, #tpu.memory_space<vmem>>, vector<24x5xf32>
    %c0_2 = arith.constant 0 : index
    %c0_3 = arith.constant 0 : index
    %4 = vector.load %arg3[%c0_2, %c0_3] : memref<24x128xbf16, #tpu.memory_space<vmem>>, vector<24x128xbf16>
    %c0_4 = arith.constant 0 : index
    %c0_5 = arith.constant 0 : index
    %5 = vector.load %arg4[%c0_4, %c0_5] : memref<128x5xbf16, #tpu.memory_space<vmem>>, vector<128x5xbf16>
    %cst = arith.constant dense<0.000000e+00> : vector<24x5xf32>
    %6 = tpu.matmul %4, %5, %cst {dimension_numbers = #tpu.dot_dimension_numbers<[1], [0], [0], [1], [0, 0, 1, 1], [], []>} : vector<24x128xbf16>, vector<128x5xbf16>, vector<24x5xf32> -> vector<24x5xf32>
    %7 = arith.addf %3, %6 : vector<24x5xf32>
    %c0_6 = arith.constant 0 : index
    %c0_7 = arith.constant 0 : index
    %8 = vector.load %arg7[%c0_6, %c0_7] : memref<24x5xf32, #tpu.memory_space<vmem>>, vector<24x5xf32>
    tpu.vector_store %arg7[%c0_6, %c0_7], %7 {strides = array<i32>} : memref<24x5xf32, #tpu.memory_space<vmem>>, vector<24x5xf32>,
    %c0_i32_8 = arith.constant 0 : i32
    %9 = arith.cmpi eq, %arg2, %c0_i32_8 : i32
    %10 = arith.extui %9 : i1 to i32
    %c0_i32_9 = arith.constant 0 : i32
    %11 = arith.cmpi ne, %10, %c0_i32_9 : i32
    scf.if %11 {
      %c0_10 = arith.constant 0 : index
      %c0_11 = arith.constant 0 : index
      %12 = vector.load %arg7[%c0_10, %c0_11] : memref<24x5xf32, #tpu.memory_space<vmem>>, vector<24x5xf32>
      %c0_12 = arith.constant 0 : index
      %c0_13 = arith.constant 0 : index
      %13 = vector.load %arg5[%c0_12, %c0_13] : memref<1x5xf32, #tpu.memory_space<vmem>>, vector<1x5xf32>
      %14 = vector.broadcast %13 : vector<1x5xf32> to vector<24x5xf32>
      %15 = arith.addf %12, %14 : vector<24x5xf32>
      %c0_14 = arith.constant 0 : index
      %c0_15 = arith.constant 0 : index
      %16 = vector.load %arg6[%c0_14, %c0_15] : memref<24x5xf32, #tpu.memory_space<vmem>>, vector<24x5xf32>
      tpu.vector_store %arg6[%c0_14, %c0_15], %15 {strides = array<i32>} : memref<24x5xf32, #tpu.memory_space<vmem>>, vector<24x5xf32>,
    } else {
    }
    return
  }
  func.func @transform_0(%arg0: i32, %arg1: i32, %arg2: i32) -> (i32, i32) {
    %c0_i32 = arith.constant 0 : i32
    return %arg0, %arg2 : i32, i32
  }
  func.func @transform_1(%arg0: i32, %arg1: i32, %arg2: i32) -> (i32, i32) {
    %c0_i32 = arith.constant 0 : i32
    return %arg2, %arg1 : i32, i32
  }
  func.func @transform_2(%arg0: i32, %arg1: i32, %arg2: i32) -> (i32, i32) {
    %c0_i32 = arith.constant 0 : i32
    %c0_i32_0 = arith.constant 0 : i32
    return %c0_i32, %arg1 : i32, i32
  }
  func.func @transform_3(%arg0: i32, %arg1: i32, %arg2: i32) -> (i32, i32) {
    %c0_i32 = arith.constant 0 : i32
    return %arg0, %arg1 : i32, i32
  }
}

</mosaic_0001>

<bundles_post_ra>
// kernel: _lambda_.11
= control target key start
LH: loop header
LB: loop body
LE: loop exit
PB: predicated region body
PF: predicated region fallthrough
CT: control target
= control target key end

     0   :  { %vm41_vm0 = vcmask 1044480   ;;  %v126_v0 = vmov 0.0   ;;  %vm127_vm1 = vmmov 0   ;;  %vm37_vm2 = vcmask 80896   ;;  %s163_s1 = inlined_call_operand.vmem [shape: bf16[10,128], index: 1, kind: input, shape index: {}]   ;;  %s164_s0 = inlined_call_operand.vmem [shape: bf16[16,10], index: 0, kind: input, shape index: {}]   ;;  %s165_s2 = inlined_call_operand.vmem [shape: f32[1,128], index: 2, kind: input, shape index: {}]   ;;  %s166_s3 = inlined_call_operand.vmem [shape: f32[16,128], index: 3, kind: output, shape index: {}]  }
   0x1   :  { %116 = vmatprep.subr.bf16.mxu0 %v126_v0  ;;  %v124_v1 = vld [vmem:[%s163_s1] sm:$0x1f]   ;;  %118 = vmatprep.mubr.msk.bf16.mxu0 %vm127_vm1, %v126_v0 }
   0x2   :  { %v43_v2 = vsel %vm41_vm0, %v124_v1, 0  ;;  %v125_v3 = vld [vmem:[%s164_s0] sm:$0xff]  }
   0x3   :  { %117 = vmatpush3.bf16.msra.mxu0 %v43_v2  ;;  %v113_v4 = vld [vmem:[%s165_s2] ss:$0 sm:$0xff] }
   0x6   :  { %119 = vmatmul.mubr.msk.bf16.vlgmr.msra.gmra.mrb[0].mxu0 %vm37_vm2, %v125_v3 }
  0xd9   :  { %v79_v5 = vpop.f32.mrb[0].mxu0 }
  0xda   :  { %v102_v6 = vadd.f32 %v113_v4, %v79_v5  ;;  %v120_v7 = vpop.f32.mrb[1].mxu0 }
  0xdb   :  { %v82_v8 = vpop.f32.mrb[2].mxu0 }
  0xdc   :  { %104 = vst [vmem:[%s166_s3] sm:$0xff] %v102_v6  ;;  %v103_v9 = vadd.f32 %v113_v4, %v82_v8  ;;  %v121_v10 = vpop.f32.mrb[3].mxu0 }
  0xde   :  { %105 = vst [vmem:[%s166_s3 + $0x8] sm:$0xff] %v103_v9 }

// kernel: _lambda_.10
= control target key start
LH: loop header
LB: loop body
LE: loop exit
PB: predicated region body
PF: predicated region fallthrough
CT: control target
= control target key end

     0   :  { %vm27_vm0 = vcmask 1042432   ;;  %v102_v0 = vmov 0.0   ;;  %vm103_vm1 = vmmov 0   ;;  %vm23_vm2 = vcmask 48128   ;;  %s136_s1 = inlined_call_operand.vmem [shape: bf16[6,128], index: 1, kind: input, shape index: {}]   ;;  %s137_s0 = inlined_call_operand.vmem [shape: bf16[8,6], index: 0, kind: input, shape index: {}]   ;;  %s138_s2 = inlined_call_operand.vmem [shape: f32[1,128], index: 2, kind: input, shape index: {}]   ;;  %s139_s3 = inlined_call_operand.vmem [shape: f32[8,128], index: 3, kind: output, shape index: {}]  }
   0x1   :  { %94 = vmatprep.subr.bf16.mxu0 %v102_v0  ;;  %v22_v1 = vld [vmem:[%s136_s1] sm:$0x7]  ;;  %96 = vmatprep.mubr.msk.bf16.mxu0 %vm103_vm1, %v102_v0 }
   0x2   :  { %v29_v2 = vsel %vm27_vm0, %v22_v1, 0  ;;  %v21_v3 = vld [vmem:[%s137_s0] sm:$0xf] }
   0x3   :  { %95 = vmatpush3.bf16.msra.mxu0 %v29_v2  ;;  %v91_v4 = vld [vmem:[%s138_s2] ss:$0 sm:$0xff] }
   0x6   :  { %97 = vmatmul.mubr.msk.bf16.vlgmr.msra.gmra.mrb[0].mxu0 %vm23_vm2, %v21_v3 }
  0xd9   :  { %v65_v5 = vpop.f32.mrb[0].mxu0 }
  0xda   :  { %v84_v6 = vadd.f32 %v91_v4, %v65_v5  ;;  %v98_v7 = vpop.f32.mrb[1].mxu0 }
  0xdb   :  { %v68_v8 = vpop.f32.mrb[2].mxu0 }
  0xdc   :  { %85 = vst [vmem:[%s139_s3] sm:$0xff] %v84_v6  ;;  %v99_v9 = vpop.f32.mrb[3].mxu0 }

// kernel: _lambda_.12
= control target key start
LH: loop header
LB: loop body
LE: loop exit
PB: predicated region body
PF: predicated region fallthrough
CT: control target
= control target key end

     0   :  { %v280_v1 = vmov 0   ;;  %s368_s1 = inlined_call_operand.vmem [shape: bf16[128,256], index: 1, kind: input, shape index: {}]   ;;  %s369_s0 = inlined_call_operand.vmem [shape: bf16[24,128], index: 0, kind: input, shape index: {}]   ;;  %s370_s2 = inlined_call_operand.vmem [shape: f32[24,256], index: 2, kind: output, shape index: {}]  }
   0x1   :  { %v254_v0 = vld [vmem:[%s368_s1 + $0x4] ss:$8 sps:$4 sm:$0xff]   ;;  %169 = vmatprep.mubr.bf16.mxu0 %v280_v1  ;;  %179 = vmatprep.mubr.bf16.mxu1 %v280_v1  ;;  %v256_v2 = vld [vmem:[%s368_s1] ss:$8 sps:$4 sm:$0xff]   ;;  %v257_v3 = vld [vmem:[%s368_s1 + $0x14] ss:$8 sps:$4 sm:$0xff]  }
   0x2   :  { %137 = vmatprep.subr.bf16.mxu0 %v254_v0  ;;  %237 = vmatprep.subr.bf16.mxu1 %v254_v0  ;;  %v259_v4 = vld [vmem:[%s368_s1 + $0x10] ss:$8 sps:$4 sm:$0xff]   ;;  %v260_v5 = vld [vmem:[%s368_s1 + $0x24] ss:$8 sps:$4 sm:$0xff]   ;;  %v262_v6 = vld [vmem:[%s368_s1 + $0x20] ss:$8 sps:$4 sm:$0xff]  }
   0x3   :  { %138 = vmatpush1.bf16.msra.mxu0 %v256_v2  ;;  %245 = vmatpush1.bf16.msra.mxu1 %v256_v2  ;;  %v263_v7 = vld [vmem:[%s368_s1 + $0x34] ss:$8 sps:$4 sm:$0xff]   ;;  %v265_v8 = vld [vmem:[%s368_s1 + $0x30] ss:$8 sps:$4 sm:$0xff]   ;;  %v266_v9 = vld [vmem:[%s368_s1 + $0x44] ss:$8 sps:$4 sm:$0xff]  }
   0x4   :  { %139 = vmatprep.subr.bf16.mxu0 %v257_v3  ;;  %238 = vmatprep.subr.bf16.mxu1 %v257_v3  ;;  %v268_v10 = vld [vmem:[%s368_s1 + $0x40] ss:$8 sps:$4 sm:$0xff]   ;;  %v269_v11 = vld [vmem:[%s368_s1 + $0x54] ss:$8 sps:$4 sm:$0xff]   ;;  %v271_v12 = vld [vmem:[%s368_s1 + $0x50] ss:$8 sps:$4 sm:$0xff]  }
   0x5   :  { %v272_v13 = vld [vmem:[%s368_s1 + $0x64] ss:$8 sps:$4 sm:$0xff]   ;;  %v274_v14 = vld [vmem:[%s368_s1 + $0x60] ss:$8 sps:$4 sm:$0xff]   ;;  %v275_v15 = vld [vmem:[%s368_s1 + $0x74] ss:$8 sps:$4 sm:$0xff]  }
   0x6   :  { %v277_v16 = vld [vmem:[%s368_s1 + $0x70] ss:$8 sps:$4 sm:$0xff]   ;;  %v278_v17 = vld [vmem:[%s369_s0] sm:$0xff]   ;;  %v279_v18 = vld [vmem:[%s369_s0 + $0x8] ss:$0 sps:$4 sm:$0xff]  }
   0x7   :  { %140 = vmatpush1.bf16.msra.mxu0 %v259_v4  ;;  %246 = vmatpush1.bf16.msra.mxu1 %v259_v4 }
   0x8   :  { %141 = vmatprep.subr.bf16.mxu0 %v260_v5  ;;  %239 = vmatprep.subr.bf16.mxu1 %v260_v5 }
   0xb   :  { %142 = vmatpush1.bf16.msra.mxu0 %v262_v6  ;;  %247 = vmatpush1.bf16.msra.mxu1 %v262_v6 }
   0xc   :  { %143 = vmatprep.subr.bf16.mxu0 %v263_v7  ;;  %240 = vmatprep.subr.bf16.mxu1 %v263_v7 }
   0xf   :  { %144 = vmatpush1.bf16.msra.mxu0 %v265_v8  ;;  %248 = vmatpush1.bf16.msra.mxu1 %v265_v8 }
  0x10   :  { %145 = vmatprep.subr.bf16.mxu0 %v266_v9  ;;  %241 = vmatprep.subr.bf16.mxu1 %v266_v9 }
  0x13   :  { %146 = vmatpush1.bf16.msra.mxu0 %v268_v10  ;;  %249 = vmatpush1.bf16.msra.mxu1 %v268_v10 }
  0x14   :  { %147 = vmatprep.subr.bf16.mxu0 %v269_v11  ;;  %242 = vmatprep.subr.bf16.mxu1 %v269_v11 }
  0x17   :  { %148 = vmatpush1.bf16.msra.mxu0 %v271_v12  ;;  %250 = vmatpush1.bf16.msra.mxu1 %v271_v12 }
  0x18   :  { %149 = vmatprep.subr.bf16.mxu0 %v272_v13  ;;  %243 = vmatprep.subr.bf16.mxu1 %v272_v13 }
  0x1b   :  { %150 = vmatpush1.bf16.msra.mxu0 %v274_v14  ;;  %251 = vmatpush1.bf16.msra.mxu1 %v274_v14 }
  0x1c   :  { %151 = vmatprep.subr.bf16.mxu0 %v275_v15  ;;  %244 = vmatprep.subr.bf16.mxu1 %v275_v15 }
  0x1f   :  { %152 = vmatpush1.bf16.msra.mxu0 %v277_v16  ;;  %252 = vmatpush1.bf16.msra.mxu1 %v277_v16 }
  0x22   :  { %170 = vmatmul.mubr.bf16.vlgmr.msra.gmra.mrb[0].mxu0 %v278_v17  ;;  %180 = vmatmul.mubr.bf16.vlgmr.msra.gmra.mrb[0].mxu1 %v279_v18 }
  0xf5   :  { %v171_v19 = vpop.f32.mrb[0].mxu0  ;;  %v181_v20 = vpop.f32.mrb[0].mxu1 }
  0xf6   :  { %209 = vst [vmem:[%s370_s2] sm:$0xff] %v171_v19  ;;  %213 = vst [vmem:[%s370_s2 + $0x20] sm:$0xff] %v181_v20  ;;  %v173_v21 = vpop.f32.mrb[1].mxu0  ;;  %v183_v22 = vpop.f32.mrb[1].mxu1 }
  0xf7   :  { %210 = vst [vmem:[%s370_s2 + $0x8] sm:$0xff] %v173_v21  ;;  %214 = vst [vmem:[%s370_s2 + $0x28] sm:$0xff] %v183_v22  ;;  %v175_v23 = vpop.f32.mrb[2].mxu0  ;;  %v185_v24 = vpop.f32.mrb[2].mxu1 }
  0xf8   :  { %211 = vst [vmem:[%s370_s2 + $0x10] sm:$0xff] %v175_v23  ;;  %v177_v25 = vpop.f32.mrb[3].mxu0  ;;  %v186_v26 = vpop.f32.mrb[3].mxu1 }
  0xf9   :  { %212 = vst [vmem:[%s370_s2 + $0x18] sm:$0xff] %v177_v25 }

// kernel: _lambda_.14
= control target key start
LH: loop header
LB: loop body
LE: loop exit
PB: predicated region body
PF: predicated region fallthrough
CT: control target
= control target key end

     0   :  { %s586_s1 = inlined_call_operand.vmem [shape: bf16[256,256], index: 1, kind: input, shape index: {}]   ;;  %s587_s0 = inlined_call_operand.vmem [shape: bf16[24,256], index: 0, kind: input, shape index: {}]   ;;  %s588_s2 = inlined_call_operand.vmem [shape: f32[24,256], index: 2, kind: output, shape index: {}]  }
   0x1   :  { %v389_v0 = vld [vmem:[%s586_s1 + $0x4] ss:$8 sps:$4 sm:$0xff]   ;;  %v391_v1 = vld [vmem:[%s586_s1] ss:$8 sps:$4 sm:$0xff]   ;;  %v392_v2 = vld [vmem:[%s586_s1 + $0x14] ss:$8 sps:$4 sm:$0xff]  }
   0x2   :  { %239 = vmatprep.subr.bf16.mxu0 %v389_v0  ;;  %357 = vmatprep.subr.bf16.mxu1 %v389_v0  ;;  %v394_v3 = vld [vmem:[%s586_s1 + $0x10] ss:$8 sps:$4 sm:$0xff]   ;;  %v395_v4 = vld [vmem:[%s586_s1 + $0x24] ss:$8 sps:$4 sm:$0xff]   ;;  %v397_v5 = vld [vmem:[%s586_s1 + $0x20] ss:$8 sps:$4 sm:$0xff]  }
   0x3   :  { %240 = vmatpush1.bf16.msra.mxu0 %v391_v1  ;;  %373 = vmatpush1.bf16.msra.mxu1 %v391_v1  ;;  %v398_v6 = vld [vmem:[%s586_s1 + $0x34] ss:$8 sps:$4 sm:$0xff]   ;;  %v400_v7 = vld [vmem:[%s586_s1 + $0x30] ss:$8 sps:$4 sm:$0xff]   ;;  %v401_v8 = vld [vmem:[%s586_s1 + $0x44] ss:$8 sps:$4 sm:$0xff]  }
   0x4   :  { %241 = vmatprep.subr.bf16.mxu0 %v392_v2  ;;  %358 = vmatprep.subr.bf16.mxu1 %v392_v2  ;;  %v403_v9 = vld [vmem:[%s586_s1 + $0x40] ss:$8 sps:$4 sm:$0xff]   ;;  %v404_v10 = vld [vmem:[%s586_s1 + $0x54] ss:$8 sps:$4 sm:$0xff]   ;;  %v406_v11 = vld [vmem:[%s586_s1 + $0x50] ss:$8 sps:$4 sm:$0xff]  }
   0x5   :  { %v407_v12 = vld [vmem:[%s586_s1 + $0x64] ss:$8 sps:$4 sm:$0xff]   ;;  %v502_v14 = vld [vmem:[%s587_s0 + $0x10] sm:$0xff]  ;;  %v409_v15 = vld [vmem:[%s586_s1 + $0x60] ss:$8 sps:$4 sm:$0xff]  }
   0x6   :  { %v439_v13 = vld [vmem:[%s587_s0 + $0x4] ss:$8 sps:$4 sm:$0xff]   ;;  %v324_v16 = vcombine.high %v502_v14, %v502_v14  ;;  %v410_v17 = vld [vmem:[%s586_s1 + $0x74] ss:$8 sps:$4 sm:$0xff]   ;;  %v412_v18 = vld [vmem:[%s586_s1 + $0x70] ss:$8 sps:$4 sm:$0xff]   ;;  %v323_v36 = vcombine.low %v502_v14, %v502_v14 }
   0x7   :  { %242 = vmatpush1.bf16.msra.mxu0 %v394_v3  ;;  %374 = vmatpush1.bf16.msra.mxu1 %v394_v3  ;;  %v413_v19 = vld [vmem:[%s586_s1 + $0x84] ss:$8 sps:$4 sm:$0xff]   ;;  %v415_v20 = vld [vmem:[%s586_s1 + $0x80] ss:$8 sps:$4 sm:$0xff]   ;;  %v416_v21 = vld [vmem:[%s586_s1 + $0x94] ss:$8 sps:$4 sm:$0xff]  }
   0x8   :  { %243 = vmatprep.subr.bf16.mxu0 %v395_v4  ;;  %359 = vmatprep.subr.bf16.mxu1 %v395_v4  ;;  %v418_v22 = vld [vmem:[%s586_s1 + $0x90] ss:$8 sps:$4 sm:$0xff]   ;;  %v419_v23 = vld [vmem:[%s586_s1 + $0xa4] ss:$8 sps:$4 sm:$0xff]   ;;  %v421_v24 = vld [vmem:[%s586_s1 + $0xa0] ss:$8 sps:$4 sm:$0xff]  }
   0x9   :  { %271 = vmatprep.mubr.bf16.mxu0 %v439_v13  ;;  %281 = vmatprep.mubr.bf16.mxu1 %v324_v16  ;;  %v422_v25 = vld [vmem:[%s586_s1 + $0xb4] ss:$8 sps:$4 sm:$0xff]   ;;  %v424_v26 = vld [vmem:[%s586_s1 + $0xb0] ss:$8 sps:$4 sm:$0xff]   ;;  %v425_v27 = vld [vmem:[%s586_s1 + $0xc4] ss:$8 sps:$4 sm:$0xff]  }
   0xa   :  { %v427_v28 = vld [vmem:[%s586_s1 + $0xc0] ss:$8 sps:$4 sm:$0xff]   ;;  %v428_v29 = vld [vmem:[%s586_s1 + $0xd4] ss:$8 sps:$4 sm:$0xff]   ;;  %v430_v30 = vld [vmem:[%s586_s1 + $0xd0] ss:$8 sps:$4 sm:$0xff]  }
   0xb   :  { %244 = vmatpush1.bf16.msra.mxu0 %v397_v5  ;;  %375 = vmatpush1.bf16.msra.mxu1 %v397_v5  ;;  %v431_v31 = vld [vmem:[%s586_s1 + $0xe4] ss:$8 sps:$4 sm:$0xff]   ;;  %v433_v32 = vld [vmem:[%s586_s1 + $0xe0] ss:$8 sps:$4 sm:$0xff]   ;;  %v434_v33 = vld [vmem:[%s586_s1 + $0xf4] ss:$8 sps:$4 sm:$0xff]  }
   0xc   :  { %245 = vmatprep.subr.bf16.mxu0 %v398_v6  ;;  %360 = vmatprep.subr.bf16.mxu1 %v398_v6  ;;  %v436_v34 = vld [vmem:[%s586_s1 + $0xf0] ss:$8 sps:$4 sm:$0xff]   ;;  %v437_v35 = vld [vmem:[%s587_s0] ss:$8 sps:$4 sm:$0xff]  }
   0xf   :  { %246 = vmatpush1.bf16.msra.mxu0 %v400_v7  ;;  %376 = vmatpush1.bf16.msra.mxu1 %v400_v7 }
  0x10   :  { %247 = vmatprep.subr.bf16.mxu0 %v401_v8  ;;  %361 = vmatprep.subr.bf16.mxu1 %v401_v8 }
  0x13   :  { %248 = vmatpush1.bf16.msra.mxu0 %v403_v9  ;;  %377 = vmatpush1.bf16.msra.mxu1 %v403_v9 }
  0x14   :  { %249 = vmatprep.subr.bf16.mxu0 %v404_v10  ;;  %362 = vmatprep.subr.bf16.mxu1 %v404_v10 }
  0x17   :  { %250 = vmatpush1.bf16.msra.mxu0 %v406_v11  ;;  %378 = vmatpush1.bf16.msra.mxu1 %v406_v11 }
  0x18   :  { %251 = vmatprep.subr.bf16.mxu0 %v407_v12  ;;  %363 = vmatprep.subr.bf16.mxu1 %v407_v12 }
  0x1b   :  { %252 = vmatpush1.bf16.msra.mxu0 %v409_v15  ;;  %379 = vmatpush1.bf16.msra.mxu1 %v409_v15 }
  0x1c   :  { %253 = vmatprep.subr.bf16.mxu0 %v410_v17  ;;  %364 = vmatprep.subr.bf16.mxu1 %v410_v17 }
  0x1f   :  { %254 = vmatpush1.bf16.msra.mxu0 %v412_v18  ;;  %380 = vmatpush1.bf16.msra.mxu1 %v412_v18 }
  0x20   :  { %255 = vmatprep.subr.bf16.mxu0 %v413_v19  ;;  %365 = vmatprep.subr.bf16.mxu1 %v413_v19 }
  0x23   :  { %256 = vmatpush1.bf16.msra.mxu0 %v415_v20  ;;  %381 = vmatpush1.bf16.msra.mxu1 %v415_v20 }
  0x24   :  { %257 = vmatprep.subr.bf16.mxu0 %v416_v21  ;;  %366 = vmatprep.subr.bf16.mxu1 %v416_v21 }
  0x27   :  { %258 = vmatpush1.bf16.msra.mxu0 %v418_v22  ;;  %382 = vmatpush1.bf16.msra.mxu1 %v418_v22 }
  0x28   :  { %259 = vmatprep.subr.bf16.mxu0 %v419_v23  ;;  %367 = vmatprep.subr.bf16.mxu1 %v419_v23 }
  0x2b   :  { %260 = vmatpush1.bf16.msra.mxu0 %v421_v24  ;;  %383 = vmatpush1.bf16.msra.mxu1 %v421_v24 }
  0x2c   :  { %261 = vmatprep.subr.bf16.mxu0 %v422_v25  ;;  %368 = vmatprep.subr.bf16.mxu1 %v422_v25 }
  0x2f   :  { %262 = vmatpush1.bf16.msra.mxu0 %v424_v26  ;;  %384 = vmatpush1.bf16.msra.mxu1 %v424_v26 }
  0x30   :  { %263 = vmatprep.subr.bf16.mxu0 %v425_v27  ;;  %369 = vmatprep.subr.bf16.mxu1 %v425_v27 }
  0x33   :  { %264 = vmatpush1.bf16.msra.mxu0 %v427_v28  ;;  %385 = vmatpush1.bf16.msra.mxu1 %v427_v28 }
  0x34   :  { %265 = vmatprep.subr.bf16.mxu0 %v428_v29  ;;  %370 = vmatprep.subr.bf16.mxu1 %v428_v29 }
  0x37   :  { %266 = vmatpush1.bf16.msra.mxu0 %v430_v30  ;;  %386 = vmatpush1.bf16.msra.mxu1 %v430_v30 }
  0x38   :  { %267 = vmatprep.subr.bf16.mxu0 %v431_v31  ;;  %371 = vmatprep.subr.bf16.mxu1 %v431_v31 }
  0x3b   :  { %268 = vmatpush1.bf16.msra.mxu0 %v433_v32  ;;  %387 = vmatpush1.bf16.msra.mxu1 %v433_v32 }
  0x3c   :  { %269 = vmatprep.subr.bf16.mxu0 %v434_v33  ;;  %372 = vmatprep.subr.bf16.mxu1 %v434_v33 }
  0x3f   :  { %270 = vmatpush1.bf16.msra.mxu0 %v436_v34  ;;  %388 = vmatpush1.bf16.msra.mxu1 %v436_v34 }
  0x42   :  { %272 = vmatmul.mubr.bf16.vlgmr.msra.gmra.mrb[0].mxu0 %v437_v35  ;;  %282 = vmatmul.mubr.bf16.vlgmr.msra.gmra.mrb[0].mxu1 %v323_v36 }
 0x115   :  { %v273_v37 = vpop.f32.mrb[0].mxu0  ;;  %v283_v38 = vpop.f32.mrb[0].mxu1 }
 0x116   :  { %311 = vst [vmem:[%s588_s2] sm:$0xff] %v273_v37  ;;  %315 = vst [vmem:[%s588_s2 + $0x20] sm:$0xff] %v283_v38  ;;  %v275_v39 = vpop.f32.mrb[1].mxu0  ;;  %v285_v40 = vpop.f32.mrb[1].mxu1 }
 0x117   :  { %312 = vst [vmem:[%s588_s2 + $0x8] sm:$0xff] %v275_v39  ;;  %316 = vst [vmem:[%s588_s2 + $0x28] sm:$0xff] %v285_v40  ;;  %v277_v41 = vpop.f32.mrb[2].mxu0  ;;  %v287_v42 = vpop.f32.mrb[2].mxu1 }
 0x118   :  { %313 = vst [vmem:[%s588_s2 + $0x10] sm:$0xff] %v277_v41  ;;  %v279_v43 = vpop.f32.mrb[3].mxu0  ;;  %v288_v44 = vpop.f32.mrb[3].mxu1 }
 0x119   :  { %314 = vst [vmem:[%s588_s2 + $0x18] sm:$0xff] %v279_v43 }

// kernel: _lambda_.13
= control target key start
LH: loop header
LB: loop body
LE: loop exit
PB: predicated region body
PF: predicated region fallthrough
CT: control target
= control target key end

     0   :  { %s1081_s18 = smov 0   ;;  %s1083_s19 = smov 0   ;;  %s1226_s0 = inlined_call_operand.vmem [shape: f32[2,1,24], index: 0, kind: input, shape index: {}]   ;;  %s1227_s1 = inlined_call_operand.vmem [shape: f32[2,24,1], index: 1, kind: input, shape index: {}]   ;;  %s1228_s2 = inlined_call_operand.vmem [shape: bf16[24,24], index: 2, kind: input, shape index: {}]   ;;  %s1229_s3 = inlined_call_operand.vmem [shape: bf16[24,256], index: 3, kind: input, shape index: {}]   ;;  %s1230_s4 = inlined_call_operand.vmem [shape: f32[2,1,128], index: 4, kind: input, shape index: {}]   ;;  %s1231_s5 = inlined_call_operand.vmem [shape: f32[24,256], index: 5, kind: output, shape index: {}]  }
   0x1   :  { %s1085_s20 = smov 0   ;;  %s1087_s21 = smov 0  }
   0x2   :  { %s1089_s22 = smov 0  }
   0x3 LB: > { %s34_s23 = sadd.s32 1, %s1042_s21  ;;  %s900_s24 = sadd.s32 4294967295, %s1046_s22   ;;  %s1046_s22 = sphi %s1089_s22, %s15_s22   ;;  %s1042_s21 = sphi %s1087_s21, %s1242_s21   ;;  %s1038_s20 = sphi %s1085_s20, %s1241_s20   ;;  %s1034_s19 = sphi %s1083_s19, %s1240_s19   ;;  %s1030_s18 = sphi %s1081_s18, %s1239_s18  }
   0x4   : > { %p36_p0 = scmp.ge.s32.totalorder %s34_s23, 2  ;;  %p134_p1 = scmp.ne.s32.totalorder %s1034_s19, %s1030_s18 }
   0x5   : > { %p135_p2 = scmp.eq.s32.totalorder %s1046_s22, 0  ;;  %p192_p4 = scmp.eq.s32.totalorder %s900_s24, 1 }
   0x6   : > { %s1244_s23 = smov (%p36_p0, %s34_s23), 0  ;;  %s127_s26 = sadd.s32 1, %s1034_s19 }
   0x7   : > { %p136_p3 = por %p135_p2, %p134_p1  ;;  %s123_s25 = ssub.s32 %s1042_s21, %s1244_s23 }
   0x8   : > { %p125_p5 = scmp.eq.s32.totalorder %s123_s25, 0  ;;  %p1116_p6 = por %p192_p4, %p134_p1 }
   0x9   : > { %p904_p7 = scmp.ge.s32.totalorder %s1046_s22, 2 }
   0xa   : > { %s1121_s28 = scalar_select %p125_p5, %s1034_s19, %s127_s26  }
   0xb   : > { %226 = sbr.rel (%p904_p7) target bundleno = 25 (0x19), region = 20 }
  0x12   : > { %251 = sbr.rel (!%p136_p3) target bundleno = 25 (0x19), region = 32  ;;  %s253_s29 = sand.u32 (%p136_p3), 1, %s1034_s19  }
  0x13   : > { %s905_s30 = sshll.u32 (%p136_p3), %s1042_s21, 2  ;;  %s933_s6 = smul.u32 (%p136_p3), 12, %s253_s29 }
  0x14   : > { %s260_s9 = scalar_lea.vmem (%p136_p3), %s1229_s3, %s905_s30 }
  0x15   : > { %v276_v0 = vld [vmem:[%s260_s9] sm:$0xf] (%p136_p3)  ;;  %v278_v1 = vld [vmem:[%s260_s9 + $0x8] sm:$0xf] (%p136_p3)  ;;  %v280_v2 = vld [vmem:[%s260_s9 + $0x10] sm:$0xf] (%p136_p3) }
  0x16   : > { %s255_s10 = scalar_lea.vmem (%p136_p3), [#allocation5], %s933_s6 }
  0x17   : > { %277 = vst [vmem:[%s255_s10] sm:$0xf] (%p136_p3), %v276_v0  ;;  %279 = vst [vmem:[%s255_s10 + $0x4] sm:$0xf] (%p136_p3), %v278_v1 }
  0x18   : > { %281 = vst [vmem:[%s255_s10 + $0x8] sm:$0xf] (%p136_p3), %v280_v2 }
  0x19 PF: > { %p906_p8 = scmp.ge.s32.totalorder %s1046_s22, 1  ;;  %p315_p9 = scmp.lt.s32.totalorder %s1046_s22, 3 }
  0x1b   : > { %p316_p10 = pnand %p906_p8, %p315_p9 }
  0x1c   : > { %p374_p11 = scmp.lt.s32.totalorder (!%p316_p10), %s1038_s20, 1  ;;  %v1048_v3 = vmov (!%p316_p10), 0   ;;  %vm411_vm0 = vcmask (!%p316_p10), 7168   ;;  %v1049_v7 = vmov (!%p316_p10), -1e+30   ;;  %vm479_vm6 = vcmask (!%p316_p10), 195584  }
  0x1d   : > { %319 = sbr.rel (%p316_p10) target bundleno = 798 (0x31e), region = 77  ;;  %980 = vset.pattern.permute.xlu0 (!%p316_p10), %v1048_v3  ;;  %981 = vset.pattern.permute.xlu1 (!%p316_p10), %v1048_v3  ;;  %412 = vst.msk [vmem:[#allocation2] sm:$0xff] (!%p316_p10), %vm411_vm0, %v1049_v7  ;;  %413 = vst.msk [vmem:[#allocation2 + $0x8] sm:$0xff] (!%p316_p10), %vm411_vm0, %v1049_v7  ;;  %v458_v8 = vld [vmem:[%s1228_s2] sm:$0xf] (!%p316_p10)  ;;  %v1050_v39 = vmov (!%p316_p10), 0.0  }
  0x1e   : > { %414 = vst.msk [vmem:[#allocation2 + $0x10] sm:$0xff] (!%p316_p10), %vm411_vm0, %v1049_v7  ;;  %vm461_vm1 = vcmp.gt.bf16.partialorder (!%p316_p10), %v458_v8, 0  ;;  %v459_v9 = vld [vmem:[%s1228_s2 + $0x4] sm:$0xf] (!%p316_p10)  ;;  %v460_v11 = vld [vmem:[%s1228_s2 + $0x8] sm:$0xf] (!%p316_p10) }
  0x1f   : > { %v464_v10 = vsel (!%p316_p10), %vm461_vm1, 65537, %v1048_v3  ;;  %vm462_vm2 = vcmp.gt.bf16.partialorder (!%p316_p10), %v459_v9, 0  ;;  %vm463_vm3 = vcmp.gt.bf16.partialorder (!%p316_p10), %v460_v11, 0  ;;  %415 = vst.msk [vmem:[#allocation3] sm:$0xff] (!%p316_p10), %vm411_vm0, %v1050_v39  ;;  %416 = vst.msk [vmem:[#allocation3 + $0x8] sm:$0xff] (!%p316_p10), %vm411_vm0, %v1050_v39  ;;  %s322_s8 = sand.u32 (!%p316_p10), 1, %s1030_s18  }
  0x20   : > { %v467_v13 = vunpack.c.l.b16 (!%p316_p10), %v464_v10  ;;  %v465_v16 = vsel (!%p316_p10), %vm462_vm2, 65537, %v1048_v3  ;;  %v466_v19 = vsel (!%p316_p10), %vm463_vm3, 65537, %v1048_v3  ;;  %417 = vst.msk [vmem:[#allocation3 + $0x10] sm:$0xff] (!%p316_p10), %vm411_vm0, %v1050_v39  ;;  %s934_s9 = smul.u32 (!%p316_p10), 12, %s322_s8  ;;  %vm591_vm11 = vcmask (!%p316_p10), 1043456  }
  0x21   : > { %v468_v22 = vunpack.c.l.b16 (!%p316_p10), %v465_v16  ;;  %v469_v27 = vunpack.c.l.b16 (!%p316_p10), %v466_v19 }
  0x22   : > { %vm1155_vm5 = vcmp.ne.s32.totalorder (!%p316_p10), %v467_v13, 0  ;;  %s324_s10 = scalar_lea.vmem (!%p316_p10), [#allocation5], %s934_s9 }
  0x23   : > { %vm1162_vm9 = vcmp.ne.s32.totalorder (!%p316_p10), %v468_v22, 0  ;;  %vm1166_vm10 = vcmp.ne.s32.totalorder (!%p316_p10), %v469_v27, 0  ;;  %v982_v52 = vld [vmem:[%s324_s10] sm:$0xff] (!%p316_p10)   ;;  %v983_v53 = vld [vmem:[%s324_s10 + $0x8] ss:$0 sps:$4 sm:$0xff] (!%p316_p10)  }
  0x24   : > { %s1133_s11 = scalar_select %p374_p11, %s1038_s20, 1  ;;  %v476_v40 = vld [vmem:[#allocation2] sm:$0xff]  ;;  %v477_v43 = vld [vmem:[#allocation2 + $0x8] sm:$0xff]  ;;  %924 = vmatprep.subr.bf16.mxu0 %v982_v52  ;;  %v593_v54 = vsel %vm591_vm11, %v983_v53, 0 }
  0x25   : > { %v478_v47 = vld [vmem:[#allocation2 + $0x10] sm:$0xff]  ;;  %925 = vmatpush3.bf16.msra.mxu0 %v982_v52  ;;  %s917_s18 = sshll.u32 (%p1116_p6), %s1038_s20, 3 }
  0x26   : > { %s936_s12 = smul.u32 24, %s1133_s11  ;;  %s379_s30 = scalar_lea.vmem %s1226_s0, %s1133_s11  ;;  %932 = vmatprep.subr.msk.bf16.mxu0 %vm591_vm11, %v983_v53 }
  0x27   : > { %v908_v12 = vld [vmem:[%s379_s30] ss:$0 sm:$0xff]  ;;  %s402_s14 = scalar_lea.vmem %s1230_s4, %s1133_s11  ;;  %s935_s11 = smul.u32 24, %s322_s8 }
  0x28   : > { %s388_s15 = scalar_lea.vmem %s1227_s1, %s936_s12  ;;  %s730_s24 = scalar_lea.vmem (%p1116_p6), %s1231_s5, %s917_s18 }
  0x29   : > { %v422_v4 = vld [vmem:[%s388_s15] sm:$0xff]  ;;  %v424_v5 = vld [vmem:[%s388_s15 + $0x10] sm:$0xff]  ;;  %v423_v6 = vld [vmem:[%s388_s15 + $0x8] sm:$0xff]  ;;  %927 = vmatpush3.bf16.msra.mxu0 %v593_v54  ;;  %s373_s15 = scalar_lea.vmem [#allocation6], %s935_s11 }
  0x2a   : > { %427 = vperm.xlu0 %980, %v422_v4   ;;  %437 = vperm.xlu1 %981, %v424_v5  }
  0x2e   : > { %432 = vperm.xlu0 %980, %v423_v6  }
  0xa9   : > { %v428_v14 = vpop.permute.xlu0 %427  ;;  %v438_v15 = vpop.permute.xlu1 %437 }
  0xaa   : > { %v446_v17 = vadd.f32 %v908_v12, %v428_v14  ;;  %v448_v18 = vadd.f32 %v908_v12, %v438_v15 }
  0xac   : > { %v452_v20 = vmul.f32 0.2, %v446_v17  ;;  %vm449_vm4 = vcmp.gt.f32.partialorder %v446_v17, 0.0  ;;  %v454_v25 = vmul.f32 0.2, %v448_v18  ;;  %vm451_vm7 = vcmp.gt.f32.partialorder %v448_v18, 0.0 }
  0xad   : > { %v433_v23 = vpop.permute.xlu0 %432 }
  0xae   : > { %v447_v24 = vadd.f32 %v908_v12, %v433_v23  ;;  %v455_v26 = vsel %vm449_vm4, %v446_v17, %v452_v20  ;;  %v457_v33 = vsel %vm451_vm7, %v448_v18, %v454_v25  ;;  %v528_v17 = vld [vmem:[#allocation3] sm:$0xff]  ;;  %v529_v20 = vld [vmem:[#allocation3 + $0x8] sm:$0xff] }
  0xaf   : > { %v473_v28 = vsel %vm1155_vm5, %v455_v26, -1e+30  ;;  %v475_v37 = vsel %vm1166_vm10, %v457_v33, -1e+30 }
  0xb0   : > { %v453_v29 = vmul.f32 0.2, %v447_v24  ;;  %v480_v30 = vsel %vm479_vm6, %v473_v28, -inf  ;;  %vm450_vm8 = vcmp.gt.f32.partialorder %v447_v24, 0.0  ;;  %v486_v38 = vsel %vm479_vm6, %v475_v37, -inf }
  0xb1   : > { %481 = vmax.xlane.f32.xlu1 %v480_v30 }
  0xb2   : > { %v456_v32 = vsel %vm450_vm8, %v447_v24, %v453_v29  ;;  %v530_v24 = vld [vmem:[#allocation3 + $0x10] sm:$0xff] }
  0xb3   : > { %v474_v35 = vsel %vm1162_vm9, %v456_v32, -1e+30 }
  0xb4   : > { %v483_v36 = vsel %vm479_vm6, %v474_v35, -inf }
  0xb5   : > { %484 = vmax.xlane.f32.xlu0 %v483_v36 }
  0xb9   : > { %487 = vmax.xlane.f32.xlu0 %v486_v38 }
 0x13e   : > { %v482_v41 = vpop.xlane.xlu1 %481 }
 0x13f   : > { %v489_v42 = vmax.f32 %v476_v40, %v482_v41 }
 0x141   : > { %v492_v44 = vsub.f32 %v476_v40, %v489_v42  ;;  %649 = vst.msk [vmem:[#allocation2] sm:$0xff] %vm411_vm0, %v489_v42  ;;  %503 = vperm.xlu1 %981, %v489_v42  }
 0x142   : > { %v485_v45 = vpop.xlane.xlu0 %484 }
 0x143   : > { %v490_v46 = vmax.f32 %v477_v43, %v485_v45  ;;  %v495_v4 = vmul.f32 1.442695, %v492_v44 }
 0x145   : > { %v493_v48 = vsub.f32 %v477_v43, %v490_v46  ;;  %650 = vst.msk [vmem:[#allocation2 + $0x8] sm:$0xff] %vm411_vm0, %v490_v46  ;;  %508 = vperm.xlu0 %980, %v490_v46  }
 0x146   : > { %v488_v49 = vpop.xlane.xlu0 %487 }
 0x147   : > { %v491_v50 = vmax.f32 %v478_v47, %v488_v49  ;;  %v497_v13 = vmul.f32 1.442695, %v493_v48 }
 0x149   : > { %v494_v51 = vsub.f32 %v478_v47, %v491_v50  ;;  %651 = vst.msk [vmem:[#allocation2 + $0x10] sm:$0xff] %vm411_vm0, %v491_v50  ;;  %513 = vperm.xlu1 %981, %v491_v50   ;;  %v913_v47 = vld [vmem:[%s402_s14] ss:$0 sm:$0xff] }
 0x14b   : > { %v499_v9 = vmul.f32 1.442695, %v494_v51 }
 0x1c0   : > { %v504_v55 = vpop.permute.xlu1 %503 }
 0x1c1   : > { %v516_v56 = vsub.f32 %v473_v28, %v504_v55 }
 0x1c3   : > { %v519_v57 = vmul.f32 1.442695, %v516_v56 }
 0x1c4   : > { %v509_v58 = vpop.permute.xlu0 %508 }
 0x1c5   : > { %984 = vpow2.f32 %v519_v57  ;;  %v517_v59 = vsub.f32 %v474_v35, %v509_v58 }
 0x1c7   : > { %v521_v60 = vmul.f32 1.442695, %v517_v59 }
 0x1c8   : > { %v514_v61 = vpop.permute.xlu1 %513 }
 0x1c9   : > { %986 = vpow2.f32 %v521_v60  ;;  %v518_v62 = vsub.f32 %v475_v37, %v514_v61 }
 0x1cb   : > { %v523_v63 = vmul.f32 1.442695, %v518_v62 }
 0x1cd   : > { %988 = vpow2.f32 %v523_v63 }
 0x1ce   : > { %990 = vpow2.f32 %v495_v4 }
 0x1cf   : > { %v985_v0 = vpop.eup %984  ;;  %992 = vpow2.f32 %v499_v9 }
 0x1d0   : > { %v525_v1 = vsel %vm1155_vm5, %v985_v0, 0.0  ;;  %994 = vpow2.f32 %v497_v13 }
 0x1d1   : > { %v534_v2 = vsel %vm479_vm6, %v525_v1, 0.0 }
 0x1d2   : > { %535 = vadd.xlane.f32.xlu1 %v534_v2 }
 0x1d3   : > { %v987_v3 = vpop.eup %986 }
 0x1d4   : > { %v526_v5 = vsel %vm1162_vm9, %v987_v3, 0.0 }
 0x1d5   : > { %v537_v6 = vsel %vm479_vm6, %v526_v5, 0.0  ;;  %v571_v7 = vpack.c.bf16 %v526_v5, %v525_v1 }
 0x1d6   : > { %538 = vadd.xlane.f32.xlu0 %v537_v6 }
 0x1d7   : > { %v989_v8 = vpop.eup %988  ;;  %928 = vmatprep.mubr.msk.bf16.mxu0 %vm479_vm6, %v571_v7 }
 0x1d8   : > { %v527_v10 = vsel %vm1166_vm10, %v989_v8, 0.0  ;;  %v991_v14 = vpop.eup %990 }
 0x1d9   : > { %v540_v11 = vsel %vm479_vm6, %v527_v10, 0.0  ;;  %v572_v12 = vpack.c.bf16 %v527_v10, %v527_v10  ;;  %v993_v15 = vpop.eup %992  ;;  %v531_v18 = vmul.f32 %v991_v14, %v528_v17 }
 0x1da   : > { %541 = vadd.xlane.f32.xlu0 %v540_v11  ;;  %v995_v16 = vpop.eup %994  ;;  %v533_v26 = vmul.f32 %v993_v15, %v530_v24 }
 0x1db   : > { %929 = vmatmul.mubr.msk.bf16.vlgmr.msra.gmra.mrb[0].mxu0 %vm479_vm6, %v572_v12  ;;  %v532_v22 = vmul.f32 %v995_v16, %v529_v20 }
 0x1e3   : > { %555 = vperm.xlu1 %981, %v991_v14  }
 0x1e7   : > { %565 = vperm.xlu1 %981, %v993_v15  }
 0x1f0   : > { %560 = vperm.xlu0 %980, %v995_v16  }
 0x25f   : > { %v536_v19 = vpop.xlane.xlu1 %535 }
 0x260   : > { %v543_v21 = vadd.f32 %v536_v19, %v531_v18 }
 0x262   : > { %547 = vst.msk [vmem:[#allocation3] sm:$0xff] %vm411_vm0, %v543_v21 }
 0x263   : > { %v539_v23 = vpop.xlane.xlu0 %538  ;;  %v556_v42 = vpop.permute.xlu1 %555 }
 0x264   : > { %v544_v25 = vadd.f32 %v539_v23, %v532_v22  ;;  %v568_v44 = vmul.f32 0.0, %v556_v42 }
 0x266   : > { %548 = vst.msk [vmem:[#allocation3 + $0x8] sm:$0xff] %vm411_vm0, %v544_v25 }
 0x267   : > { %v542_v27 = vpop.xlane.xlu0 %541  ;;  %v566_v43 = vpop.permute.xlu1 %565 }
 0x268   : > { %v545_v28 = vadd.f32 %v542_v27, %v533_v26  ;;  %v570_v54 = vmul.f32 0.0, %v566_v43 }
 0x269   : > { %v655_v29 = vld [vmem:[#allocation3] sm:$0xff] }
 0x26a   : > { %549 = vst.msk [vmem:[#allocation3 + $0x10] sm:$0xff] %vm411_vm0, %v545_v28  ;;  %vm658_vm12 = vcmp.gt.f32.partialorder %v655_v29, 0.0 }
 0x26b   : > { %v661_v30 = vsel %vm658_vm12, %v655_v29, 1.0 }
 0x26c   : > { %996 = vrcp.f32 %v661_v30 }
 0x26d   : > { %v656_v31 = vld [vmem:[#allocation3 + $0x8] sm:$0xff] }
 0x26e   : > { %vm659_vm13 = vcmp.gt.f32.partialorder %v656_v31, 0.0 }
 0x26f   : > { %v662_v32 = vsel %vm659_vm13, %v656_v31, 1.0  ;;  %v561_v45 = vpop.permute.xlu0 %560 }
 0x270   : > { %998 = vrcp.f32 %v662_v32  ;;  %v569_v49 = vmul.f32 0.0, %v561_v45 }
 0x271   : > { %v657_v33 = vld [vmem:[#allocation3 + $0x10] sm:$0xff] }
 0x272   : > { %vm660_vm14 = vcmp.gt.f32.partialorder %v657_v33, 0.0 }
 0x273   : > { %v663_v34 = vsel %vm660_vm14, %v657_v33, 1.0 }
 0x274   : > { %1000 = vrcp.f32 %v663_v34 }
 0x276   : > { %v997_v35 = vpop.eup %996 }
 0x277   : > { %672 = vperm.xlu1 %981, %v997_v35  }
 0x27a   : > { %v999_v36 = vpop.eup %998 }
 0x27b   : > { %677 = vperm.xlu0 %980, %v999_v36  }
 0x27e   : > { %v1001_v37 = vpop.eup %1000 }
 0x27f   : > { %682 = vperm.xlu1 %981, %v1001_v37  }
 0x2ae   : > { %v930_v38 = vpop.f32.mrb[0].mxu0 }
 0x2af   : > { %v629_v39 = vpop.f32.mrb[1].mxu0  ;;  %v645_v57 = vadd.f32 %v930_v38, %v570_v54 }
 0x2b0   : > { %v931_v40 = vpop.f32.mrb[2].mxu0  ;;  %v643_v46 = vadd.f32 %v629_v39, %v568_v44 }
 0x2b1   : > { %v632_v41 = vpop.f32.mrb[3].mxu0 }
 0x2b2   : > { %v644_v51 = vadd.f32 %v632_v41, %v569_v49 }
 0x2f6   : > { %v673_v48 = vpop.permute.xlu1 %672 }
 0x2f7   : > { %v685_v50 = vmul.f32 %v673_v48, %v643_v46 }
 0x2f9   : > { %v695_v52 = vadd.f32 %v913_v47, %v685_v50 }
 0x2fa   : > { %v678_v53 = vpop.permute.xlu0 %677 }
 0x2fb   : > { %v701_v55 = vmin.f32 %v695_v52, 0.0  ;;  %v686_v56 = vmul.f32 %v678_v53, %v644_v51  ;;  %vm698_vm15 = vcmp.gt.f32.partialorder %v695_v52, 0.0 }
 0x2fd   : > { %v704_v58 = vmul.f32 1.442695, %v701_v55  ;;  %v696_v59 = vadd.f32 %v913_v47, %v686_v56 }
 0x2fe   : > { %v683_v60 = vpop.permute.xlu1 %682 }
 0x2ff   : > { %1002 = vpow2.f32 %v704_v58  ;;  %v702_v61 = vmin.f32 %v696_v59, 0.0  ;;  %v687_v62 = vmul.f32 %v683_v60, %v645_v57  ;;  %vm699_vm0 = vcmp.gt.f32.partialorder %v696_v59, 0.0 }
 0x301   : > { %v706_v63 = vmul.f32 1.442695, %v702_v61  ;;  %v697_v0 = vadd.f32 %v913_v47, %v687_v62 }
 0x303   : > { %1004 = vpow2.f32 %v706_v63  ;;  %v703_v1 = vmin.f32 %v697_v0, 0.0  ;;  %vm700_vm1 = vcmp.gt.f32.partialorder %v697_v0, 0.0 }
 0x305   : > { %v708_v2 = vmul.f32 1.442695, %v703_v1 }
 0x307   : > { %1006 = vpow2.f32 %v708_v2 }
 0x309   : > { %v1003_v3 = vpop.eup %1002 }
 0x30a   : > { %v914_v4 = vadd.f32 -1.0, %v1003_v3 }
 0x30c   : > { %v713_v5 = vsel %vm698_vm15, %v695_v52, %v914_v4 }
 0x30d   : > { %v1005_v6 = vpop.eup %1004  ;;  %716 = vst [vmem:[%s373_s15] sm:$0xff] %v713_v5 }
 0x30e   : > { %v915_v7 = vadd.f32 -1.0, %v1005_v6 }
 0x30f   : > { %725 = sbr.rel (!%p1116_p6) target bundleno = 798 (0x31e), region = 93 }
 0x310   : > { %v714_v8 = vsel %vm699_vm0, %v696_v59, %v915_v7 }
 0x311   : > { %v1007_v9 = vpop.eup %1006  ;;  %717 = vst [vmem:[%s373_s15 + $0x8] sm:$0xff] %v714_v8 }
 0x312   : > { %v916_v10 = vadd.f32 -1.0, %v1007_v9 }
 0x314   : > { %v715_v11 = vsel %vm700_vm1, %v697_v0, %v916_v10  ;;  %v762_v12 = vld [vmem:[%s373_s15] sm:$0xff] (%p1116_p6) }
 0x315   : > { %718 = vst [vmem:[%s373_s15 + $0x10] sm:$0xff] %v715_v11  ;;  %763 = vst [vmem:[%s730_s24] sm:$0xff] (%p1116_p6), %v762_v12 }
 0x318   : > { %v764_v13 = vld [vmem:[%s373_s15 + $0x8] sm:$0xff] }
 0x319   : > { %765 = vst [vmem:[%s730_s24 + $0x10] sm:$0xff] %v764_v13 }
 0x31c   : > { %v766_v14 = vld [vmem:[%s373_s15 + $0x10] sm:$0xff] }
 0x31d   : > { %767 = vst [vmem:[%s730_s24 + $0x20] sm:$0xff] %v766_v14 }
 0x31e PF: > { %s15_s22 = sadd.s32 1, %s1046_s22   ;;  %s1239_s18 = smov %s1034_s19 }
 0x31f   : > { %p12_p12 = scmp.ge.s32.totalorder %s15_s22, 4   ;;  %s1240_s19 = smov %s1121_s28 }
 0x320   : > { %s1241_s20 = smov %s1042_s21  ;;  %s1242_s21 = smov %s1244_s23 }
 0x321   :  { %14 = sbr.rel (!%p12_p12) target bundleno = 3 (0x3), region = 174 }

// kernel: _lambda_.15
= control target key start
LH: loop header
LB: loop body
LE: loop exit
PB: predicated region body
PF: predicated region fallthrough
CT: control target
= control target key end

     0   :  { %s1209_s21 = smov 0   ;;  %s1211_s22 = smov 0   ;;  %s1371_s0 = inlined_call_operand.vmem [shape: f32[2,1,24], index: 0, kind: input, shape index: {}]   ;;  %s1372_s1 = inlined_call_operand.vmem [shape: f32[2,24,1], index: 1, kind: input, shape index: {}]   ;;  %s1373_s2 = inlined_call_operand.vmem [shape: bf16[24,24], index: 2, kind: input, shape index: {}]   ;;  %s1374_s3 = inlined_call_operand.vmem [shape: bf16[24,256], index: 3, kind: input, shape index: {}]   ;;  %s1375_s4 = inlined_call_operand.vmem [shape: f32[2,1,128], index: 4, kind: input, shape index: {}]   ;;  %s1376_s5 = inlined_call_operand.vmem [shape: f32[24,256], index: 5, kind: input, shape index: {}]   ;;  %s1377_s6 = inlined_call_operand.vmem [shape: f32[24,256], index: 6, kind: output, shape index: {}]  }
   0x1   :  { %s1213_s23 = smov 0   ;;  %s1215_s24 = smov 0  }
   0x2   :  { %s1217_s25 = smov 0  }
   0x3 LB: > { %s35_s26 = sadd.s32 1, %s1165_s24  ;;  %s1021_s27 = sadd.s32 4294967295, %s1169_s25   ;;  %s1169_s25 = sphi %s1217_s25, %s16_s25   ;;  %s1165_s24 = sphi %s1215_s24, %s1389_s24   ;;  %s1161_s23 = sphi %s1213_s23, %s1388_s23   ;;  %s1157_s22 = sphi %s1211_s22, %s1387_s22   ;;  %s1153_s21 = sphi %s1209_s21, %s1386_s21  }
   0x4   : > { %p37_p0 = scmp.ge.s32.totalorder %s35_s26, 2  ;;  %p135_p1 = scmp.ne.s32.totalorder %s1157_s22, %s1153_s21 }
   0x5   : > { %p136_p2 = scmp.eq.s32.totalorder %s1169_s25, 0  ;;  %p221_p4 = scmp.eq.s32.totalorder %s1021_s27, 1 }
   0x6   : > { %s1391_s26 = smov (%p37_p0, %s35_s26), 0  ;;  %s128_s30 = sadd.s32 1, %s1157_s22 }
   0x7   : > { %p1241_p3 = por %p136_p2, %p135_p1  ;;  %s124_s29 = ssub.s32 %s1165_s24, %s1391_s26 }
   0x8   : > { %p126_p5 = scmp.eq.s32.totalorder %s124_s29, 0  ;;  %p1248_p6 = por %p221_p4, %p135_p1 }
   0x9   : > { %p1025_p7 = scmp.ge.s32.totalorder %s1169_s25, 2 }
   0xa   : > { %s1253_s8 = scalar_select %p126_p5, %s1157_s22, %s128_s30  }
   0xb   : > { %255 = sbr.rel (%p1025_p7) target bundleno = 32 (0x20), region = 20 }
  0x12   : > { %280 = sbr.rel (!%p1241_p3) target bundleno = 25 (0x19), region = 32  ;;  %s282_s9 = sand.u32 (%p1241_p3), 1, %s1157_s22  }
  0x13   : > { %s1026_s10 = sshll.u32 (%p1241_p3), %s1165_s24, 2  ;;  %s1055_s11 = smul.u32 (%p1241_p3), 12, %s282_s9 }
  0x14   : > { %s289_s14 = scalar_lea.vmem (%p1241_p3), %s1374_s3, %s1026_s10 }
  0x15   : > { %v305_v0 = vld [vmem:[%s289_s14] sm:$0xf] (%p1241_p3)  ;;  %v307_v1 = vld [vmem:[%s289_s14 + $0x8] sm:$0xf] (%p1241_p3)  ;;  %v309_v2 = vld [vmem:[%s289_s14 + $0x10] sm:$0xf] (%p1241_p3) }
  0x16   : > { %s284_s15 = scalar_lea.vmem (%p1241_p3), [#allocation5], %s1055_s11 }
  0x17   : > { %306 = vst [vmem:[%s284_s15] sm:$0xf] (%p1241_p3), %v305_v0  ;;  %308 = vst [vmem:[%s284_s15 + $0x4] sm:$0xf] (%p1241_p3), %v307_v1 }
  0x18   : > { %310 = vst [vmem:[%s284_s15 + $0x8] sm:$0xf] (%p1241_p3), %v309_v2 }
  0x19 PF: > { %345 = sbr.rel (!%p1241_p3) target bundleno = 32 (0x20), region = 77  ;;  %s347_s16 = sand.u32 (%p1241_p3), 1, %s1157_s22  }
  0x1a   : > { %s1027_s17 = sshll.u32 (%p1241_p3), %s1165_s24, 3  ;;  %s1056_s18 = smul.u32 (%p1241_p3), 24, %s347_s16 }
  0x1b   : > { %s354_s27 = scalar_lea.vmem (%p1241_p3), %s1376_s5, %s1027_s17 }
  0x1c   : > { %v386_v3 = vld [vmem:[%s354_s27] sm:$0xff] (%p1241_p3)  ;;  %v388_v4 = vld [vmem:[%s354_s27 + $0x10] sm:$0xff] (%p1241_p3)  ;;  %s349_s29 = scalar_lea.vmem (%p1241_p3), [#allocation6], %s1056_s18 }
  0x1d   : > { %v390_v5 = vld [vmem:[%s354_s27 + $0x20] sm:$0xff] (%p1241_p3)  ;;  %387 = vst [vmem:[%s349_s29] sm:$0xff] (%p1241_p3), %v386_v3  ;;  %389 = vst [vmem:[%s349_s29 + $0x8] sm:$0xff] (%p1241_p3), %v388_v4 }
  0x1e   : > { %391 = vst [vmem:[%s349_s29 + $0x10] sm:$0xff] (%p1241_p3), %v390_v5 }
  0x20 PF: > { %p1028_p8 = scmp.ge.s32.totalorder %s1169_s25, 1  ;;  %p396_p9 = scmp.lt.s32.totalorder %s1169_s25, 3 }
  0x22   : > { %p397_p10 = pnand %p1028_p8, %p396_p9 }
  0x23   : > { %p468_p11 = scmp.lt.s32.totalorder (!%p397_p10), %s1161_s23, 1  ;;  %v1171_v6 = vmov (!%p397_p10), 0   ;;  %vm506_vm0 = vcmask (!%p397_p10), 7168   ;;  %v1172_v10 = vmov (!%p397_p10), -1e+30   ;;  %vm574_vm6 = vcmask (!%p397_p10), 195584  }
  0x24   : > { %400 = sbr.rel (%p397_p10) target bundleno = 807 (0x327), region = 115  ;;  %1103 = vset.pattern.permute.xlu0 (!%p397_p10), %v1171_v6  ;;  %1104 = vset.pattern.permute.xlu1 (!%p397_p10), %v1171_v6  ;;  %507 = vst.msk [vmem:[#allocation2] sm:$0xff] (!%p397_p10), %vm506_vm0, %v1172_v10  ;;  %508 = vst.msk [vmem:[#allocation2 + $0x8] sm:$0xff] (!%p397_p10), %vm506_vm0, %v1172_v10  ;;  %v553_v11 = vld [vmem:[%s1373_s2] sm:$0xf] (!%p397_p10)  ;;  %v1173_v42 = vmov (!%p397_p10), 0.0  }
  0x25   : > { %509 = vst.msk [vmem:[#allocation2 + $0x10] sm:$0xff] (!%p397_p10), %vm506_vm0, %v1172_v10  ;;  %vm556_vm1 = vcmp.gt.bf16.partialorder (!%p397_p10), %v553_v11, 0  ;;  %v554_v12 = vld [vmem:[%s1373_s2 + $0x4] sm:$0xf] (!%p397_p10)  ;;  %v555_v14 = vld [vmem:[%s1373_s2 + $0x8] sm:$0xf] (!%p397_p10) }
  0x26   : > { %v559_v13 = vsel (!%p397_p10), %vm556_vm1, 65537, %v1171_v6  ;;  %vm557_vm2 = vcmp.gt.bf16.partialorder (!%p397_p10), %v554_v12, 0  ;;  %vm558_vm3 = vcmp.gt.bf16.partialorder (!%p397_p10), %v555_v14, 0  ;;  %510 = vst.msk [vmem:[#allocation3] sm:$0xff] (!%p397_p10), %vm506_vm0, %v1173_v42  ;;  %511 = vst.msk [vmem:[#allocation3 + $0x8] sm:$0xff] (!%p397_p10), %vm506_vm0, %v1173_v42  ;;  %s403_s27 = sand.u32 (!%p397_p10), 1, %s1153_s21  }
  0x27   : > { %v562_v16 = vunpack.c.l.b16 (!%p397_p10), %v559_v13  ;;  %v560_v19 = vsel (!%p397_p10), %vm557_vm2, 65537, %v1171_v6  ;;  %v561_v22 = vsel (!%p397_p10), %vm558_vm3, 65537, %v1171_v6  ;;  %512 = vst.msk [vmem:[#allocation3 + $0x10] sm:$0xff] (!%p397_p10), %vm506_vm0, %v1173_v42  ;;  %s1057_s29 = smul.u32 (!%p397_p10), 12, %s403_s27  ;;  %vm686_vm11 = vcmask (!%p397_p10), 1043456  }
  0x28   : > { %v563_v25 = vunpack.c.l.b16 (!%p397_p10), %v560_v19  ;;  %v564_v30 = vunpack.c.l.b16 (!%p397_p10), %v561_v22  ;;  %s1342_s9 = smul.u32 (!%p397_p10), 24, %s403_s27 }
  0x29   : > { %vm1296_vm5 = vcmp.ne.s32.totalorder (!%p397_p10), %v562_v16, 0 }
  0x2a   : > { %vm1303_vm9 = vcmp.ne.s32.totalorder (!%p397_p10), %v563_v25, 0  ;;  %vm1307_vm10 = vcmp.ne.s32.totalorder (!%p397_p10), %v564_v30, 0  ;;  %s412_s13 = scalar_lea.vmem (!%p397_p10), [#allocation6], %s1342_s9  ;;  %s467_s21 = scalar_lea.vmem (!%p397_p10), [#allocation7], %s1342_s9 }
  0x2b   : > { %s1274_s28 = scalar_select %p468_p11, %s1161_s23, 1  ;;  %v571_v43 = vld [vmem:[#allocation2] sm:$0xff]  ;;  %v572_v46 = vld [vmem:[#allocation2 + $0x8] sm:$0xff] }
  0x2c   : > { %v573_v50 = vld [vmem:[#allocation2 + $0x10] sm:$0xff] }
  0x2d   : > { %s1059_s30 = smul.u32 24, %s1274_s28  ;;  %s473_s18 = scalar_lea.vmem %s1371_s0, %s1274_s28 }
  0x2e   : > { %v1030_v15 = vld [vmem:[%s473_s18] ss:$0 sm:$0xff]  ;;  %s496_s12 = scalar_lea.vmem %s1375_s4, %s1274_s28  ;;  %s1039_s28 = sshll.u32 (%p1248_p6), %s1161_s23, 3 }
  0x2f   : > { %s482_s11 = scalar_lea.vmem %s1372_s1, %s1059_s30  ;;  %s405_s30 = scalar_lea.vmem [#allocation5], %s1057_s29 }
  0x30   : > { %v517_v7 = vld [vmem:[%s482_s11] sm:$0xff]  ;;  %v519_v8 = vld [vmem:[%s482_s11 + $0x10] sm:$0xff]  ;;  %v518_v9 = vld [vmem:[%s482_s11 + $0x8] sm:$0xff]  ;;  %s831_s16 = scalar_lea.vmem (%p1248_p6), %s1377_s6, %s1039_s28 }
  0x31   : > { %522 = vperm.xlu0 %1103, %v517_v7   ;;  %532 = vperm.xlu1 %1104, %v519_v8   ;;  %v1105_v55 = vld [vmem:[%s405_s30] sm:$0xff]   ;;  %v1106_v56 = vld [vmem:[%s405_s30 + $0x8] ss:$0 sps:$4 sm:$0xff]  }
  0x32   : > { %1046 = vmatprep.subr.bf16.mxu0 %v1105_v55  ;;  %v688_v57 = vsel %vm686_vm11, %v1106_v56, 0 }
  0x33   : > { %1047 = vmatpush3.bf16.msra.mxu0 %v1105_v55 }
  0x34   : > { %1054 = vmatprep.subr.msk.bf16.mxu0 %vm686_vm11, %v1106_v56 }
  0x35   : > { %527 = vperm.xlu0 %1103, %v518_v9  }
  0x37   : > { %1049 = vmatpush3.bf16.msra.mxu0 %v688_v57 }
  0xb0   : > { %v523_v17 = vpop.permute.xlu0 %522  ;;  %v533_v18 = vpop.permute.xlu1 %532 }
  0xb1   : > { %v541_v20 = vadd.f32 %v1030_v15, %v523_v17  ;;  %v543_v21 = vadd.f32 %v1030_v15, %v533_v18 }
  0xb3   : > { %v547_v23 = vmul.f32 0.2, %v541_v20  ;;  %vm544_vm4 = vcmp.gt.f32.partialorder %v541_v20, 0.0  ;;  %v549_v28 = vmul.f32 0.2, %v543_v21  ;;  %vm546_vm7 = vcmp.gt.f32.partialorder %v543_v21, 0.0 }
  0xb4   : > { %v528_v26 = vpop.permute.xlu0 %527 }
  0xb5   : > { %v542_v27 = vadd.f32 %v1030_v15, %v528_v26  ;;  %v550_v29 = vsel %vm544_vm4, %v541_v20, %v547_v23  ;;  %v552_v36 = vsel %vm546_vm7, %v543_v21, %v549_v28  ;;  %v623_v20 = vld [vmem:[#allocation3] sm:$0xff]  ;;  %v624_v23 = vld [vmem:[#allocation3 + $0x8] sm:$0xff] }
  0xb6   : > { %v568_v31 = vsel %vm1296_vm5, %v550_v29, -1e+30  ;;  %v570_v40 = vsel %vm1307_vm10, %v552_v36, -1e+30 }
  0xb7   : > { %v548_v32 = vmul.f32 0.2, %v542_v27  ;;  %v575_v33 = vsel %vm574_vm6, %v568_v31, -inf  ;;  %vm545_vm8 = vcmp.gt.f32.partialorder %v542_v27, 0.0  ;;  %v581_v41 = vsel %vm574_vm6, %v570_v40, -inf }
  0xb8   : > { %576 = vmax.xlane.f32.xlu1 %v575_v33 }
  0xb9   : > { %v551_v35 = vsel %vm545_vm8, %v542_v27, %v548_v32  ;;  %v625_v27 = vld [vmem:[#allocation3 + $0x10] sm:$0xff] }
  0xba   : > { %v569_v38 = vsel %vm1303_vm9, %v551_v35, -1e+30 }
  0xbb   : > { %v578_v39 = vsel %vm574_vm6, %v569_v38, -inf }
  0xbc   : > { %579 = vmax.xlane.f32.xlu0 %v578_v39 }
  0xc0   : > { %582 = vmax.xlane.f32.xlu0 %v581_v41 }
 0x145   : > { %v577_v44 = vpop.xlane.xlu1 %576 }
 0x146   : > { %v584_v45 = vmax.f32 %v571_v43, %v577_v44 }
 0x148   : > { %v587_v47 = vsub.f32 %v571_v43, %v584_v45  ;;  %744 = vst.msk [vmem:[#allocation2] sm:$0xff] %vm506_vm0, %v584_v45  ;;  %598 = vperm.xlu1 %1104, %v584_v45  }
 0x149   : > { %v580_v48 = vpop.xlane.xlu0 %579 }
 0x14a   : > { %v585_v49 = vmax.f32 %v572_v46, %v580_v48  ;;  %v590_v7 = vmul.f32 1.442695, %v587_v47 }
 0x14c   : > { %v588_v51 = vsub.f32 %v572_v46, %v585_v49  ;;  %745 = vst.msk [vmem:[#allocation2 + $0x8] sm:$0xff] %vm506_vm0, %v585_v49  ;;  %603 = vperm.xlu0 %1103, %v585_v49  }
 0x14d   : > { %v583_v52 = vpop.xlane.xlu0 %582 }
 0x14e   : > { %v586_v53 = vmax.f32 %v573_v50, %v583_v52  ;;  %v592_v16 = vmul.f32 1.442695, %v588_v51 }
 0x150   : > { %v589_v54 = vsub.f32 %v573_v50, %v586_v53  ;;  %746 = vst.msk [vmem:[#allocation2 + $0x10] sm:$0xff] %vm506_vm0, %v586_v53  ;;  %608 = vperm.xlu1 %1104, %v586_v53   ;;  %v1035_v50 = vld [vmem:[%s496_s12] ss:$0 sm:$0xff] }
 0x152   : > { %v594_v12 = vmul.f32 1.442695, %v589_v54  ;;  %v793_v54 = vld [vmem:[%s412_s13] sm:$0xff] }
 0x1c7   : > { %v599_v58 = vpop.permute.xlu1 %598 }
 0x1c8   : > { %v611_v59 = vsub.f32 %v568_v31, %v599_v58 }
 0x1ca   : > { %v614_v60 = vmul.f32 1.442695, %v611_v59 }
 0x1cb   : > { %v604_v61 = vpop.permute.xlu0 %603 }
 0x1cc   : > { %1107 = vpow2.f32 %v614_v60  ;;  %v612_v62 = vsub.f32 %v569_v38, %v604_v61  ;;  %v794_v61 = vld [vmem:[%s412_s13 + $0x8] sm:$0xff] }
 0x1ce   : > { %v616_v63 = vmul.f32 1.442695, %v612_v62 }
 0x1cf   : > { %v609_v0 = vpop.permute.xlu1 %608 }
 0x1d0   : > { %1109 = vpow2.f32 %v616_v63  ;;  %v613_v1 = vsub.f32 %v570_v40, %v609_v0 }
 0x1d2   : > { %v618_v2 = vmul.f32 1.442695, %v613_v1 }
 0x1d4   : > { %1111 = vpow2.f32 %v618_v2 }
 0x1d5   : > { %1113 = vpow2.f32 %v590_v7 }
 0x1d6   : > { %v1108_v3 = vpop.eup %1107  ;;  %1115 = vpow2.f32 %v594_v12 }
 0x1d7   : > { %v620_v4 = vsel %vm1296_vm5, %v1108_v3, 0.0  ;;  %1117 = vpow2.f32 %v592_v16 }
 0x1d8   : > { %v629_v5 = vsel %vm574_vm6, %v620_v4, 0.0 }
 0x1d9   : > { %630 = vadd.xlane.f32.xlu1 %v629_v5  ;;  %v795_v5 = vld [vmem:[%s412_s13 + $0x10] sm:$0xff] }
 0x1da   : > { %v1110_v6 = vpop.eup %1109 }
 0x1db   : > { %v621_v8 = vsel %vm1303_vm9, %v1110_v6, 0.0 }
 0x1dc   : > { %v632_v9 = vsel %vm574_vm6, %v621_v8, 0.0  ;;  %v666_v10 = vpack.c.bf16 %v621_v8, %v620_v4 }
 0x1dd   : > { %633 = vadd.xlane.f32.xlu0 %v632_v9 }
 0x1de   : > { %v1112_v11 = vpop.eup %1111  ;;  %1050 = vmatprep.mubr.msk.bf16.mxu0 %vm574_vm6, %v666_v10 }
 0x1df   : > { %v622_v13 = vsel %vm1307_vm10, %v1112_v11, 0.0  ;;  %v1114_v17 = vpop.eup %1113 }
 0x1e0   : > { %v635_v14 = vsel %vm574_vm6, %v622_v13, 0.0  ;;  %v667_v15 = vpack.c.bf16 %v622_v13, %v622_v13  ;;  %v1116_v18 = vpop.eup %1115  ;;  %v626_v21 = vmul.f32 %v1114_v17, %v623_v20 }
 0x1e1   : > { %636 = vadd.xlane.f32.xlu0 %v635_v14  ;;  %v1118_v19 = vpop.eup %1117  ;;  %v628_v29 = vmul.f32 %v1116_v18, %v625_v27 }
 0x1e2   : > { %1051 = vmatmul.mubr.msk.bf16.vlgmr.msra.gmra.mrb[0].mxu0 %vm574_vm6, %v667_v15  ;;  %v627_v25 = vmul.f32 %v1118_v19, %v624_v23 }
 0x1ea   : > { %650 = vperm.xlu1 %1104, %v1114_v17  }
 0x1ee   : > { %660 = vperm.xlu1 %1104, %v1116_v18  }
 0x1f7   : > { %655 = vperm.xlu0 %1103, %v1118_v19  }
 0x266   : > { %v631_v22 = vpop.xlane.xlu1 %630 }
 0x267   : > { %v638_v24 = vadd.f32 %v631_v22, %v626_v21 }
 0x269   : > { %642 = vst.msk [vmem:[#allocation3] sm:$0xff] %vm506_vm0, %v638_v24 }
 0x26a   : > { %v634_v26 = vpop.xlane.xlu0 %633  ;;  %v651_v45 = vpop.permute.xlu1 %650 }
 0x26b   : > { %v639_v28 = vadd.f32 %v634_v26, %v627_v25  ;;  %v663_v47 = vmul.f32 0.0, %v651_v45 }
 0x26d   : > { %643 = vst.msk [vmem:[#allocation3 + $0x8] sm:$0xff] %vm506_vm0, %v639_v28 }
 0x26e   : > { %v637_v30 = vpop.xlane.xlu0 %636  ;;  %v661_v46 = vpop.permute.xlu1 %660 }
 0x26f   : > { %v640_v31 = vadd.f32 %v637_v30, %v628_v29  ;;  %v665_v58 = vmul.f32 0.0, %v661_v46 }
 0x270   : > { %v750_v32 = vld [vmem:[#allocation3] sm:$0xff] }
 0x271   : > { %644 = vst.msk [vmem:[#allocation3 + $0x10] sm:$0xff] %vm506_vm0, %v640_v31  ;;  %vm753_vm12 = vcmp.gt.f32.partialorder %v750_v32, 0.0 }
 0x272   : > { %v756_v33 = vsel %vm753_vm12, %v750_v32, 1.0 }
 0x273   : > { %1119 = vrcp.f32 %v756_v33 }
 0x274   : > { %v751_v34 = vld [vmem:[#allocation3 + $0x8] sm:$0xff] }
 0x275   : > { %vm754_vm13 = vcmp.gt.f32.partialorder %v751_v34, 0.0 }
 0x276   : > { %v757_v35 = vsel %vm754_vm13, %v751_v34, 1.0  ;;  %v656_v48 = vpop.permute.xlu0 %655 }
 0x277   : > { %1121 = vrcp.f32 %v757_v35  ;;  %v664_v52 = vmul.f32 0.0, %v656_v48 }
 0x278   : > { %v752_v36 = vld [vmem:[#allocation3 + $0x10] sm:$0xff] }
 0x279   : > { %vm755_vm14 = vcmp.gt.f32.partialorder %v752_v36, 0.0 }
 0x27a   : > { %v758_v37 = vsel %vm755_vm14, %v752_v36, 1.0 }
 0x27b   : > { %1123 = vrcp.f32 %v758_v37 }
 0x27d   : > { %v1120_v38 = vpop.eup %1119 }
 0x27e   : > { %767 = vperm.xlu1 %1104, %v1120_v38  }
 0x281   : > { %v1122_v39 = vpop.eup %1121 }
 0x282   : > { %772 = vperm.xlu0 %1103, %v1122_v39  }
 0x285   : > { %v1124_v40 = vpop.eup %1123 }
 0x286   : > { %777 = vperm.xlu1 %1104, %v1124_v40  }
 0x2b5   : > { %v1052_v41 = vpop.f32.mrb[0].mxu0 }
 0x2b6   : > { %v724_v42 = vpop.f32.mrb[1].mxu0  ;;  %v740_v62 = vadd.f32 %v1052_v41, %v665_v58 }
 0x2b7   : > { %v1053_v43 = vpop.f32.mrb[2].mxu0  ;;  %v738_v49 = vadd.f32 %v724_v42, %v663_v47 }
 0x2b8   : > { %v727_v44 = vpop.f32.mrb[3].mxu0 }
 0x2b9   : > { %v739_v55 = vadd.f32 %v727_v44, %v664_v52 }
 0x2fd   : > { %v768_v51 = vpop.permute.xlu1 %767 }
 0x2fe   : > { %v780_v53 = vmul.f32 %v768_v51, %v738_v49 }
 0x300   : > { %v790_v56 = vadd.f32 %v1035_v50, %v780_v53 }
 0x301   : > { %v773_v57 = vpop.permute.xlu0 %772 }
 0x302   : > { %v796_v59 = vadd.f32 %v793_v54, %v790_v56  ;;  %v781_v60 = vmul.f32 %v773_v57, %v739_v55 }
 0x304   : > { %v802_v63 = vmin.f32 %v796_v59, 0.0  ;;  %v791_v0 = vadd.f32 %v1035_v50, %v781_v60  ;;  %vm799_vm15 = vcmp.gt.f32.partialorder %v796_v59, 0.0 }
 0x305   : > { %v778_v1 = vpop.permute.xlu1 %777 }
 0x306   : > { %v805_v2 = vmul.f32 1.442695, %v802_v63  ;;  %v797_v3 = vadd.f32 %v794_v61, %v791_v0  ;;  %v782_v4 = vmul.f32 %v778_v1, %v740_v62 }
 0x308   : > { %1125 = vpow2.f32 %v805_v2  ;;  %v803_v6 = vmin.f32 %v797_v3, 0.0  ;;  %v792_v7 = vadd.f32 %v1035_v50, %v782_v4  ;;  %vm800_vm0 = vcmp.gt.f32.partialorder %v797_v3, 0.0 }
 0x30a   : > { %v807_v8 = vmul.f32 1.442695, %v803_v6  ;;  %v798_v9 = vadd.f32 %v795_v5, %v792_v7 }
 0x30c   : > { %1127 = vpow2.f32 %v807_v8  ;;  %v804_v10 = vmin.f32 %v798_v9, 0.0  ;;  %vm801_vm1 = vcmp.gt.f32.partialorder %v798_v9, 0.0 }
 0x30e   : > { %v809_v11 = vmul.f32 1.442695, %v804_v10 }
 0x310   : > { %1129 = vpow2.f32 %v809_v11 }
 0x312   : > { %v1126_v12 = vpop.eup %1125 }
 0x313   : > { %v1036_v13 = vadd.f32 -1.0, %v1126_v12 }
 0x315   : > { %v814_v14 = vsel %vm799_vm15, %v796_v59, %v1036_v13 }
 0x316   : > { %v1128_v15 = vpop.eup %1127  ;;  %817 = vst [vmem:[%s467_s21] sm:$0xff] %v814_v14 }
 0x317   : > { %v1037_v16 = vadd.f32 -1.0, %v1128_v15 }
 0x318   : > { %826 = sbr.rel (!%p1248_p6) target bundleno = 807 (0x327), region = 135 }
 0x319   : > { %v815_v17 = vsel %vm800_vm0, %v797_v3, %v1037_v16 }
 0x31a   : > { %v1130_v18 = vpop.eup %1129  ;;  %818 = vst [vmem:[%s467_s21 + $0x8] sm:$0xff] %v815_v17 }
 0x31b   : > { %v1038_v19 = vadd.f32 -1.0, %v1130_v18 }
 0x31d   : > { %v816_v20 = vsel %vm801_vm1, %v798_v9, %v1038_v19  ;;  %v863_v21 = vld [vmem:[%s467_s21] sm:$0xff] (%p1248_p6) }
 0x31e   : > { %819 = vst [vmem:[%s467_s21 + $0x10] sm:$0xff] %v816_v20  ;;  %864 = vst [vmem:[%s831_s16] sm:$0xff] (%p1248_p6), %v863_v21 }
 0x321   : > { %v865_v22 = vld [vmem:[%s467_s21 + $0x8] sm:$0xff] }
 0x322   : > { %866 = vst [vmem:[%s831_s16 + $0x10] sm:$0xff] %v865_v22 }
 0x325   : > { %v867_v23 = vld [vmem:[%s467_s21 + $0x10] sm:$0xff] }
 0x326   : > { %868 = vst [vmem:[%s831_s16 + $0x20] sm:$0xff] %v867_v23 }
 0x327 PF: > { %s16_s25 = sadd.s32 1, %s1169_s25   ;;  %s1386_s21 = smov %s1157_s22 }
 0x328   : > { %p13_p12 = scmp.ge.s32.totalorder %s16_s25, 4   ;;  %s1387_s22 = smov %s1253_s8 }
 0x329   : > { %s1388_s23 = smov %s1165_s24  ;;  %s1389_s24 = smov %s1391_s26 }
 0x32a   :  { %15 = sbr.rel (!%p13_p12) target bundleno = 3 (0x3), region = 224 }

// kernel: _lambda_.16
= control target key start
LH: loop header
LB: loop body
LE: loop exit
PB: predicated region body
PF: predicated region fallthrough
CT: control target
= control target key end

     0   :  { %s403_s1 = inlined_call_operand.vmem [shape: bf16[256,128], index: 1, kind: input, shape index: {}]   ;;  %s404_s0 = inlined_call_operand.vmem [shape: bf16[24,256], index: 0, kind: input, shape index: {}]   ;;  %s405_s2 = inlined_call_operand.vmem [shape: f32[24,128], index: 2, kind: output, shape index: {}]  }
   0x1   :  { %v301_v0 = vld [vmem:[%s403_s1 + $0x40] sm:$0xff]   ;;  %v303_v2 = vld [vmem:[%s403_s1 + $0x48] sm:$0xff]   ;;  %v305_v4 = vld [vmem:[%s403_s1 + $0x50] sm:$0xff]  }
   0x2   :  { %v302_v1 = vld [vmem:[%s403_s1] sm:$0xff]   ;;  %257 = vmatprep.subr.bf16.mxu0 %v301_v0  ;;  %285 = vmatprep.subr.bf16.mxu1 %v301_v0  ;;  %v304_v3 = vld [vmem:[%s403_s1 + $0x8] sm:$0xff]   ;;  %v306_v5 = vld [vmem:[%s403_s1 + $0x10] sm:$0xff]  }
   0x3   :  { %258 = vmatpush3.bf16.msra.mxu0 %v302_v1  ;;  %293 = vmatpush3.bf16.msra.mxu1 %v302_v1  ;;  %v307_v6 = vld [vmem:[%s403_s1 + $0x58] sm:$0xff]   ;;  %v309_v8 = vld [vmem:[%s403_s1 + $0x60] sm:$0xff]   ;;  %v311_v10 = vld [vmem:[%s403_s1 + $0x68] sm:$0xff]  }
   0x4   :  { %259 = vmatprep.subr.bf16.mxu0 %v303_v2  ;;  %286 = vmatprep.subr.bf16.mxu1 %v303_v2  ;;  %v308_v7 = vld [vmem:[%s403_s1 + $0x18] sm:$0xff]   ;;  %v310_v9 = vld [vmem:[%s403_s1 + $0x20] sm:$0xff]   ;;  %v24_v12 = vld [vmem:[%s404_s0 + $0x10] sm:$0xff] }
   0x5   :  { %v319_v11 = vld [vmem:[%s404_s0 + $0x4] ss:$8 sps:$4 sm:$0xff]   ;;  %v240_v13 = vcombine.high %v24_v12, %v24_v12  ;;  %v313_v15 = vld [vmem:[%s403_s1 + $0x70] sm:$0xff]   ;;  %v315_v17 = vld [vmem:[%s403_s1 + $0x78] sm:$0xff]   ;;  %v239_v20 = vcombine.low %v24_v12, %v24_v12 }
   0x6   :  { %v312_v14 = vld [vmem:[%s403_s1 + $0x28] sm:$0xff]   ;;  %202 = vmatprep.mubr.bf16.mxu0 %v319_v11  ;;  %v314_v16 = vld [vmem:[%s403_s1 + $0x30] sm:$0xff]   ;;  %v316_v18 = vld [vmem:[%s403_s1 + $0x38] sm:$0xff]  }
   0x7   :  { %260 = vmatpush3.bf16.msra.mxu0 %v304_v3  ;;  %294 = vmatpush3.bf16.msra.mxu1 %v304_v3  ;;  %v317_v19 = vld [vmem:[%s404_s0] ss:$8 sps:$4 sm:$0xff]  }
   0x8   :  { %261 = vmatprep.subr.bf16.mxu0 %v305_v4  ;;  %287 = vmatprep.subr.bf16.mxu1 %v305_v4 }
   0x9   :  { %210 = vmatprep.mubr.bf16.mxu1 %v240_v13 }
   0xb   :  { %262 = vmatpush3.bf16.msra.mxu0 %v306_v5  ;;  %295 = vmatpush3.bf16.msra.mxu1 %v306_v5 }
   0xc   :  { %263 = vmatprep.subr.bf16.mxu0 %v307_v6  ;;  %288 = vmatprep.subr.bf16.mxu1 %v307_v6 }
   0xf   :  { %264 = vmatpush3.bf16.msra.mxu0 %v308_v7  ;;  %296 = vmatpush3.bf16.msra.mxu1 %v308_v7 }
  0x10   :  { %265 = vmatprep.subr.bf16.mxu0 %v309_v8  ;;  %289 = vmatprep.subr.bf16.mxu1 %v309_v8 }
  0x13   :  { %266 = vmatpush3.bf16.msra.mxu0 %v310_v9  ;;  %297 = vmatpush3.bf16.msra.mxu1 %v310_v9 }
  0x14   :  { %267 = vmatprep.subr.bf16.mxu0 %v311_v10  ;;  %290 = vmatprep.subr.bf16.mxu1 %v311_v10 }
  0x17   :  { %268 = vmatpush3.bf16.msra.mxu0 %v312_v14  ;;  %298 = vmatpush3.bf16.msra.mxu1 %v312_v14 }
  0x18   :  { %269 = vmatprep.subr.bf16.mxu0 %v313_v15  ;;  %291 = vmatprep.subr.bf16.mxu1 %v313_v15 }
  0x1b   :  { %270 = vmatpush3.bf16.msra.mxu0 %v314_v16  ;;  %299 = vmatpush3.bf16.msra.mxu1 %v314_v16 }
  0x1c   :  { %271 = vmatprep.subr.bf16.mxu0 %v315_v17  ;;  %292 = vmatprep.subr.bf16.mxu1 %v315_v17 }
  0x1f   :  { %272 = vmatpush3.bf16.msra.mxu0 %v316_v18  ;;  %300 = vmatpush3.bf16.msra.mxu1 %v316_v18 }
  0x22   :  { %203 = vmatmul.mubr.bf16.vlgmr.msra.gmra.mrb[0].mxu0 %v317_v19  ;;  %211 = vmatmul.mubr.bf16.vlgmr.msra.gmra.mrb[0].mxu1 %v239_v20 }
  0xf5   :  { %v273_v21 = vpop.f32.mrb[0].mxu0  ;;  %v279_v22 = vpop.f32.mrb[0].mxu1 }
  0xf6   :  { %v274_v23 = vpop.f32.mrb[1].mxu0  ;;  %v280_v24 = vpop.f32.mrb[1].mxu1 }
  0xf7   :  { %v275_v25 = vadd.f32 %v274_v23, %v273_v21  ;;  %v281_v26 = vadd.f32 %v280_v24, %v279_v22  ;;  %v276_v27 = vpop.f32.mrb[2].mxu0  ;;  %v282_v28 = vpop.f32.mrb[2].mxu1 }
  0xf8   :  { %v277_v29 = vpop.f32.mrb[3].mxu0  ;;  %v283_v30 = vpop.f32.mrb[3].mxu1 }
  0xf9   :  { %230 = vst [vmem:[%s405_s2] sm:$0xff] %v275_v25  ;;  %232 = vst [vmem:[%s405_s2 + $0x10] sm:$0xff] %v281_v26  ;;  %v278_v31 = vadd.f32 %v277_v29, %v276_v27 }
  0xfb   :  { %231 = vst [vmem:[%s405_s2 + $0x8] sm:$0xff] %v278_v31 }

// kernel: _lambda_.18
= control target key start
LH: loop header
LB: loop body
LE: loop exit
PB: predicated region body
PF: predicated region fallthrough
CT: control target
= control target key end

     0   :  { %v374_v0 = vmov 0   ;;  %vm30_vm0 = vcmask 7168   ;;  %v375_v4 = vmov -1e+30   ;;  %vm98_vm6 = vcmask 195584   ;;  %s504_s1 = inlined_call_operand.vmem [shape: f32[1,24,1], index: 1, kind: input, shape index: {}]   ;;  %s505_s2 = inlined_call_operand.vmem [shape: bf16[24,24], index: 2, kind: input, shape index: {}]   ;;  %s506_s0 = inlined_call_operand.vmem [shape: f32[1,1,24], index: 0, kind: input, shape index: {}]   ;;  %s507_s3 = inlined_call_operand.vmem [shape: bf16[24,128], index: 3, kind: input, shape index: {}]   ;;  %s508_s4 = inlined_call_operand.vmem [shape: f32[1,1,128], index: 4, kind: input, shape index: {}]   ;;  %s509_s5 = inlined_call_operand.vmem [shape: f32[24,128], index: 5, kind: input, shape index: {}]   ;;  %s510_s6 = inlined_call_operand.vmem [shape: f32[24,128], index: 6, kind: output, shape index: {}]  }
   0x1   :  { %352 = vset.pattern.permute.xlu0 %v374_v0  ;;  %v41_v1 = vld [vmem:[%s504_s1] sm:$0xff]  ;;  %353 = vset.pattern.permute.xlu1 %v374_v0  ;;  %v43_v2 = vld [vmem:[%s504_s1 + $0x10] sm:$0xff]  ;;  %v42_v3 = vld [vmem:[%s504_s1 + $0x8] sm:$0xff]  ;;  %31 = vst.msk [vmem:[#allocation2] sm:$0xff] %vm30_vm0, %v375_v4  ;;  %v376_v36 = vmov 0.0   ;;  %vm210_vm11 = vcmask 1043456  }
   0x2   :  { %46 = vperm.xlu0 %352, %v41_v1   ;;  %56 = vperm.xlu1 %353, %v43_v2   ;;  %32 = vst.msk [vmem:[#allocation2 + $0x8] sm:$0xff] %vm30_vm0, %v375_v4  ;;  %33 = vst.msk [vmem:[#allocation2 + $0x10] sm:$0xff] %vm30_vm0, %v375_v4  ;;  %v77_v5 = vld [vmem:[%s505_s2] sm:$0xf]  ;;  %v78_v6 = vld [vmem:[%s505_s2 + $0x4] sm:$0xf] }
   0x3   :  { %vm80_vm1 = vcmp.gt.bf16.partialorder %v77_v5, 0  ;;  %v79_v8 = vld [vmem:[%s505_s2 + $0x8] sm:$0xf]  ;;  %vm81_vm2 = vcmp.gt.bf16.partialorder %v78_v6, 0  ;;  %v330_v9 = vld [vmem:[%s506_s0] ss:$0 sm:$0xff] }
   0x4   :  { %v83_v7 = vsel %vm80_vm1, 65537, %v374_v0  ;;  %vm82_vm3 = vcmp.gt.bf16.partialorder %v79_v8, 0  ;;  %v84_v13 = vsel %vm81_vm2, 65537, %v374_v0  ;;  %34 = vst.msk [vmem:[#allocation3] sm:$0xff] %vm30_vm0, %v376_v36  ;;  %35 = vst.msk [vmem:[#allocation3 + $0x8] sm:$0xff] %vm30_vm0, %v376_v36  ;;  %v354_v49 = vld [vmem:[%s507_s3] sm:$0xff]  }
   0x5   :  { %v86_v10 = vunpack.c.l.b16 %v83_v7  ;;  %v85_v16 = vsel %vm82_vm3, 65537, %v374_v0  ;;  %v87_v19 = vunpack.c.l.b16 %v84_v13  ;;  %36 = vst.msk [vmem:[#allocation3 + $0x10] sm:$0xff] %vm30_vm0, %v376_v36  ;;  %v355_v50 = vld [vmem:[%s507_s3 + $0x8] ss:$0 sps:$4 sm:$0xff]   ;;  %340 = vmatprep.subr.bf16.mxu0 %v354_v49 }
   0x6   :  { %51 = vperm.xlu0 %352, %v42_v3   ;;  %v88_v24 = vunpack.c.l.b16 %v85_v16  ;;  %341 = vmatpush3.bf16.msra.mxu0 %v354_v49  ;;  %v212_v51 = vsel %vm210_vm11, %v355_v50, 0 }
   0x7   :  { %vm436_vm5 = vcmp.ne.s32.totalorder %v86_v10, 0  ;;  %vm443_vm9 = vcmp.ne.s32.totalorder %v87_v19, 0  ;;  %348 = vmatprep.subr.msk.bf16.mxu0 %vm210_vm11, %v355_v50 }
   0x8   :  { %vm447_vm10 = vcmp.ne.s32.totalorder %v88_v24, 0  ;;  %v95_v37 = vld [vmem:[#allocation2] sm:$0xff] }
   0x9   :  { %v96_v40 = vld [vmem:[#allocation2 + $0x8] sm:$0xff]  ;;  %v97_v44 = vld [vmem:[#allocation2 + $0x10] sm:$0xff] }
   0xa   :  { %343 = vmatpush3.bf16.msra.mxu0 %v212_v51 }
  0x81   :  { %v47_v11 = vpop.permute.xlu0 %46  ;;  %v57_v12 = vpop.permute.xlu1 %56 }
  0x82   :  { %v65_v14 = vadd.f32 %v330_v9, %v47_v11  ;;  %v67_v15 = vadd.f32 %v330_v9, %v57_v12 }
  0x84   :  { %v71_v17 = vmul.f32 0.2, %v65_v14  ;;  %vm68_vm4 = vcmp.gt.f32.partialorder %v65_v14, 0.0  ;;  %v73_v22 = vmul.f32 0.2, %v67_v15  ;;  %vm70_vm7 = vcmp.gt.f32.partialorder %v67_v15, 0.0 }
  0x85   :  { %v52_v20 = vpop.permute.xlu0 %51 }
  0x86   :  { %v66_v21 = vadd.f32 %v330_v9, %v52_v20  ;;  %v74_v23 = vsel %vm68_vm4, %v65_v14, %v71_v17  ;;  %v76_v30 = vsel %vm70_vm7, %v67_v15, %v73_v22  ;;  %v147_v14 = vld [vmem:[#allocation3] sm:$0xff]  ;;  %v148_v17 = vld [vmem:[#allocation3 + $0x8] sm:$0xff] }
  0x87   :  { %v92_v25 = vsel %vm436_vm5, %v74_v23, -1e+30  ;;  %v94_v34 = vsel %vm447_vm10, %v76_v30, -1e+30 }
  0x88   :  { %v72_v26 = vmul.f32 0.2, %v66_v21  ;;  %v99_v27 = vsel %vm98_vm6, %v92_v25, -inf  ;;  %vm69_vm8 = vcmp.gt.f32.partialorder %v66_v21, 0.0  ;;  %v105_v35 = vsel %vm98_vm6, %v94_v34, -inf }
  0x89   :  { %100 = vmax.xlane.f32.xlu1 %v99_v27 }
  0x8a   :  { %v75_v29 = vsel %vm69_vm8, %v66_v21, %v72_v26  ;;  %v149_v21 = vld [vmem:[#allocation3 + $0x10] sm:$0xff] }
  0x8b   :  { %v93_v32 = vsel %vm443_vm9, %v75_v29, -1e+30 }
  0x8c   :  { %v102_v33 = vsel %vm98_vm6, %v93_v32, -inf }
  0x8d   :  { %103 = vmax.xlane.f32.xlu0 %v102_v33 }
  0x91   :  { %106 = vmax.xlane.f32.xlu0 %v105_v35 }
 0x116   :  { %v101_v38 = vpop.xlane.xlu1 %100 }
 0x117   :  { %v108_v39 = vmax.f32 %v95_v37, %v101_v38 }
 0x119   :  { %v111_v41 = vsub.f32 %v95_v37, %v108_v39  ;;  %268 = vst.msk [vmem:[#allocation2] sm:$0xff] %vm30_vm0, %v108_v39  ;;  %122 = vperm.xlu1 %353, %v108_v39  }
 0x11a   :  { %v104_v42 = vpop.xlane.xlu0 %103 }
 0x11b   :  { %v109_v43 = vmax.f32 %v96_v40, %v104_v42  ;;  %v114_v1 = vmul.f32 1.442695, %v111_v41 }
 0x11d   :  { %v112_v45 = vsub.f32 %v96_v40, %v109_v43  ;;  %269 = vst.msk [vmem:[#allocation2 + $0x8] sm:$0xff] %vm30_vm0, %v109_v43  ;;  %127 = vperm.xlu0 %352, %v109_v43  }
 0x11e   :  { %v107_v46 = vpop.xlane.xlu0 %106 }
 0x11f   :  { %v110_v47 = vmax.f32 %v97_v44, %v107_v46  ;;  %v116_v10 = vmul.f32 1.442695, %v112_v45 }
 0x121   :  { %v113_v48 = vsub.f32 %v97_v44, %v110_v47  ;;  %270 = vst.msk [vmem:[#allocation2 + $0x10] sm:$0xff] %vm30_vm0, %v110_v47  ;;  %132 = vperm.xlu1 %353, %v110_v47   ;;  %v335_v44 = vld [vmem:[%s508_s4] ss:$0 sm:$0xff] }
 0x123   :  { %v118_v6 = vmul.f32 1.442695, %v113_v48  ;;  %v317_v48 = vld [vmem:[%s509_s5] sm:$0xff] }
 0x198   :  { %v123_v52 = vpop.permute.xlu1 %122 }
 0x199   :  { %v135_v53 = vsub.f32 %v92_v25, %v123_v52 }
 0x19b   :  { %v138_v54 = vmul.f32 1.442695, %v135_v53 }
 0x19c   :  { %v128_v55 = vpop.permute.xlu0 %127 }
 0x19d   :  { %356 = vpow2.f32 %v138_v54  ;;  %v136_v56 = vsub.f32 %v93_v32, %v128_v55  ;;  %v318_v55 = vld [vmem:[%s509_s5 + $0x8] sm:$0xff] }
 0x19f   :  { %v140_v57 = vmul.f32 1.442695, %v136_v56 }
 0x1a0   :  { %v133_v58 = vpop.permute.xlu1 %132 }
 0x1a1   :  { %358 = vpow2.f32 %v140_v57  ;;  %v137_v59 = vsub.f32 %v94_v34, %v133_v58 }
 0x1a3   :  { %v142_v60 = vmul.f32 1.442695, %v137_v59 }
 0x1a5   :  { %360 = vpow2.f32 %v142_v60 }
 0x1a6   :  { %362 = vpow2.f32 %v114_v1 }
 0x1a7   :  { %v357_v61 = vpop.eup %356  ;;  %364 = vpow2.f32 %v118_v6 }
 0x1a8   :  { %v144_v62 = vsel %vm436_vm5, %v357_v61, 0.0  ;;  %366 = vpow2.f32 %v116_v10  ;;  %v319_v61 = vld [vmem:[%s509_s5 + $0x10] sm:$0xff] }
 0x1a9   :  { %v153_v63 = vsel %vm98_vm6, %v144_v62, 0.0 }
 0x1aa   :  { %154 = vadd.xlane.f32.xlu1 %v153_v63 }
 0x1ab   :  { %v359_v0 = vpop.eup %358 }
 0x1ac   :  { %v145_v2 = vsel %vm443_vm9, %v359_v0, 0.0 }
 0x1ad   :  { %v156_v3 = vsel %vm98_vm6, %v145_v2, 0.0  ;;  %v190_v4 = vpack.c.bf16 %v145_v2, %v144_v62 }
 0x1ae   :  { %157 = vadd.xlane.f32.xlu0 %v156_v3 }
 0x1af   :  { %v361_v5 = vpop.eup %360  ;;  %344 = vmatprep.mubr.msk.bf16.mxu0 %vm98_vm6, %v190_v4 }
 0x1b0   :  { %v146_v7 = vsel %vm447_vm10, %v361_v5, 0.0  ;;  %v363_v11 = vpop.eup %362 }
 0x1b1   :  { %v159_v8 = vsel %vm98_vm6, %v146_v7, 0.0  ;;  %v191_v9 = vpack.c.bf16 %v146_v7, %v146_v7  ;;  %v365_v12 = vpop.eup %364  ;;  %v150_v15 = vmul.f32 %v363_v11, %v147_v14 }
 0x1b2   :  { %160 = vadd.xlane.f32.xlu0 %v159_v8  ;;  %v367_v13 = vpop.eup %366  ;;  %v152_v23 = vmul.f32 %v365_v12, %v149_v21 }
 0x1b3   :  { %345 = vmatmul.mubr.msk.bf16.vlgmr.msra.gmra.mrb[0].mxu0 %vm98_vm6, %v191_v9  ;;  %v151_v19 = vmul.f32 %v367_v13, %v148_v17 }
 0x1bb   :  { %174 = vperm.xlu1 %353, %v363_v11  }
 0x1bf   :  { %184 = vperm.xlu1 %353, %v365_v12  }
 0x1c8   :  { %179 = vperm.xlu0 %352, %v367_v13  }
 0x237   :  { %v155_v16 = vpop.xlane.xlu1 %154 }
 0x238   :  { %v162_v18 = vadd.f32 %v155_v16, %v150_v15 }
 0x23a   :  { %166 = vst.msk [vmem:[#allocation3] sm:$0xff] %vm30_vm0, %v162_v18 }
 0x23b   :  { %v158_v20 = vpop.xlane.xlu0 %157  ;;  %v175_v39 = vpop.permute.xlu1 %174 }
 0x23c   :  { %v163_v22 = vadd.f32 %v158_v20, %v151_v19  ;;  %v187_v41 = vmul.f32 0.0, %v175_v39 }
 0x23e   :  { %167 = vst.msk [vmem:[#allocation3 + $0x8] sm:$0xff] %vm30_vm0, %v163_v22 }
 0x23f   :  { %v161_v24 = vpop.xlane.xlu0 %160  ;;  %v185_v40 = vpop.permute.xlu1 %184 }
 0x240   :  { %v164_v25 = vadd.f32 %v161_v24, %v152_v23  ;;  %v189_v52 = vmul.f32 0.0, %v185_v40 }
 0x241   :  { %v274_v26 = vld [vmem:[#allocation3] sm:$0xff] }
 0x242   :  { %168 = vst.msk [vmem:[#allocation3 + $0x10] sm:$0xff] %vm30_vm0, %v164_v25  ;;  %vm277_vm12 = vcmp.gt.f32.partialorder %v274_v26, 0.0 }
 0x243   :  { %v280_v27 = vsel %vm277_vm12, %v274_v26, 1.0 }
 0x244   :  { %368 = vrcp.f32 %v280_v27 }
 0x245   :  { %v275_v28 = vld [vmem:[#allocation3 + $0x8] sm:$0xff] }
 0x246   :  { %vm278_vm13 = vcmp.gt.f32.partialorder %v275_v28, 0.0 }
 0x247   :  { %v281_v29 = vsel %vm278_vm13, %v275_v28, 1.0  ;;  %v180_v42 = vpop.permute.xlu0 %179 }
 0x248   :  { %370 = vrcp.f32 %v281_v29  ;;  %v188_v46 = vmul.f32 0.0, %v180_v42 }
 0x249   :  { %v276_v30 = vld [vmem:[#allocation3 + $0x10] sm:$0xff] }
 0x24a   :  { %vm279_vm14 = vcmp.gt.f32.partialorder %v276_v30, 0.0 }
 0x24b   :  { %v282_v31 = vsel %vm279_vm14, %v276_v30, 1.0 }
 0x24c   :  { %372 = vrcp.f32 %v282_v31 }
 0x24e   :  { %v369_v32 = vpop.eup %368 }
 0x24f   :  { %291 = vperm.xlu1 %353, %v369_v32  }
 0x252   :  { %v371_v33 = vpop.eup %370 }
 0x253   :  { %296 = vperm.xlu0 %352, %v371_v33  }
 0x256   :  { %v373_v34 = vpop.eup %372 }
 0x257   :  { %301 = vperm.xlu1 %353, %v373_v34  }
 0x286   :  { %v346_v35 = vpop.f32.mrb[0].mxu0 }
 0x287   :  { %v248_v36 = vpop.f32.mrb[1].mxu0  ;;  %v264_v56 = vadd.f32 %v346_v35, %v189_v52 }
 0x288   :  { %v347_v37 = vpop.f32.mrb[2].mxu0  ;;  %v262_v43 = vadd.f32 %v248_v36, %v187_v41 }
 0x289   :  { %v251_v38 = vpop.f32.mrb[3].mxu0 }
 0x28a   :  { %v263_v49 = vadd.f32 %v251_v38, %v188_v46 }
 0x2ce   :  { %v292_v45 = vpop.permute.xlu1 %291 }
 0x2cf   :  { %v304_v47 = vmul.f32 %v292_v45, %v262_v43 }
 0x2d1   :  { %v314_v50 = vadd.f32 %v335_v44, %v304_v47 }
 0x2d2   :  { %v297_v51 = vpop.permute.xlu0 %296 }
 0x2d3   :  { %v320_v53 = vadd.f32 %v317_v48, %v314_v50  ;;  %v305_v54 = vmul.f32 %v297_v51, %v263_v49 }
 0x2d5   :  { %323 = vst [vmem:[%s510_s6] sm:$0xff] %v320_v53  ;;  %v315_v57 = vadd.f32 %v335_v44, %v305_v54 }
 0x2d6   :  { %v302_v58 = vpop.permute.xlu1 %301 }
 0x2d7   :  { %v321_v59 = vadd.f32 %v318_v55, %v315_v57  ;;  %v306_v60 = vmul.f32 %v302_v58, %v264_v56 }
 0x2d9   :  { %324 = vst [vmem:[%s510_s6 + $0x8] sm:$0xff] %v321_v59  ;;  %v316_v62 = vadd.f32 %v335_v44, %v306_v60 }
 0x2db   :  { %v322_v63 = vadd.f32 %v319_v61, %v316_v62 }
 0x2dd   :  { %325 = vst [vmem:[%s510_s6 + $0x10] sm:$0xff] %v322_v63 }

// kernel: _lambda_.19
= control target key start
LH: loop header
LB: loop body
LE: loop exit
PB: predicated region body
PF: predicated region fallthrough
CT: control target
= control target key end

     0   :  { %vm19_vm0 = vcmask 39936   ;;  %v233_v1 = vmov 0.0   ;;  %s305_s1 = inlined_call_operand.vmem [shape: bf16[128,5], index: 1, kind: input, shape index: {}]   ;;  %s306_s0 = inlined_call_operand.vmem [shape: bf16[24,128], index: 0, kind: input, shape index: {}]   ;;  %s307_s2 = inlined_call_operand.vmem [shape: f32[1,5], index: 2, kind: input, shape index: {}]   ;;  %s308_s3 = inlined_call_operand.vmem [shape: f32[24,5], index: 3, kind: output, shape index: {}]  }
   0x1   :  { %v223_v0 = vld [vmem:[%s305_s1] sm:$0xff]   ;;  %22 = vst.msk [vmem:[#allocation2 + $0x10] sm:$0xff] %vm19_vm0, %v233_v1  ;;  %20 = vst.msk [vmem:[#allocation2] sm:$0xff] %vm19_vm0, %v233_v1  ;;  %v224_v2 = vld [vmem:[%s305_s1 + $0x8] sm:$0xff]  }
   0x2   :  { %21 = vst.msk [vmem:[#allocation2 + $0x8] sm:$0xff] %vm19_vm0, %v233_v1  ;;  %202 = vmatprep.subr.bf16.mxu0 %v223_v0  ;;  %v225_v3 = vld [vmem:[%s305_s1 + $0x10] sm:$0xff]   ;;  %v226_v4 = vld [vmem:[%s305_s1 + $0x18] sm:$0xff]   ;;  %v231_v5 = vld [vmem:[%s306_s0] sm:$0xff]  }
   0x3   :  { %203 = vmatpush3.bf16.msra.mxu0 %v223_v0  ;;  %218 = vmatprep.mubr.bf16.mxu0 %v231_v5  ;;  %v227_v6 = vld [vmem:[%s305_s1 + $0x20] sm:$0xff]   ;;  %v228_v7 = vld [vmem:[%s305_s1 + $0x28] sm:$0xff]   ;;  %v229_v8 = vld [vmem:[%s305_s1 + $0x30] sm:$0xff]  }
   0x4   :  { %204 = vmatprep.subr.bf16.mxu0 %v224_v2  ;;  %v230_v9 = vld [vmem:[%s305_s1 + $0x38] sm:$0xff]   ;;  %v232_v10 = vld [vmem:[%s306_s0 + $0x8] ss:$0 sps:$4 sm:$0xff]   ;;  %v191_v21 = vld [vmem:[%s307_s2] ss:$0 sm:$0xff] }
   0x7   :  { %205 = vmatpush3.bf16.msra.mxu0 %v224_v2 }
   0x8   :  { %206 = vmatprep.subr.bf16.mxu0 %v225_v3  ;;  %v25_v11 = vld [vmem:[#allocation2 + $0x10] sm:$0xff]  ;;  %v23_v12 = vld [vmem:[#allocation2] sm:$0xff] }
   0x9   :  { %v24_v16 = vld [vmem:[#allocation2 + $0x8] sm:$0xff] }
   0xb   :  { %207 = vmatpush3.bf16.msra.mxu0 %v225_v3 }
   0xc   :  { %208 = vmatprep.subr.bf16.mxu0 %v226_v4 }
   0xf   :  { %209 = vmatpush3.bf16.msra.mxu0 %v226_v4 }
  0x10   :  { %210 = vmatprep.subr.bf16.mxu0 %v227_v6 }
  0x13   :  { %211 = vmatpush3.bf16.msra.mxu0 %v227_v6 }
  0x14   :  { %212 = vmatprep.subr.bf16.mxu0 %v228_v7 }
  0x17   :  { %213 = vmatpush3.bf16.msra.mxu0 %v228_v7 }
  0x18   :  { %214 = vmatprep.subr.bf16.mxu0 %v229_v8 }
  0x1b   :  { %215 = vmatpush3.bf16.msra.mxu0 %v229_v8 }
  0x1c   :  { %216 = vmatprep.subr.bf16.mxu0 %v230_v9 }
  0x1f   :  { %217 = vmatpush3.bf16.msra.mxu0 %v230_v9 }
  0x22   :  { %219 = vmatmul.mubr.bf16.vlgmr.msra.gmra.mrb[0].mxu0 %v232_v10 }
  0xf5   :  { %v220_v13 = vpop.f32.mrb[0].mxu0 }
  0xf6   :  { %v153_v14 = vadd.f32 %v220_v13, %v25_v11  ;;  %v137_v15 = vpop.f32.mrb[1].mxu0 }
  0xf7   :  { %v151_v17 = vadd.f32 %v137_v15, %v23_v12  ;;  %v221_v18 = vpop.f32.mrb[2].mxu0 }
  0xf8   :  { %157 = vst.msk [vmem:[#allocation2 + $0x10] sm:$0xff] %vm19_vm0, %v153_v14  ;;  %v140_v19 = vpop.f32.mrb[3].mxu0 }
  0xf9   :  { %155 = vst.msk [vmem:[#allocation2] sm:$0xff] %vm19_vm0, %v151_v17  ;;  %v152_v20 = vadd.f32 %v140_v19, %v24_v16 }
  0xfb   :  { %156 = vst.msk [vmem:[#allocation2 + $0x8] sm:$0xff] %vm19_vm0, %v152_v20 }
  0xff   :  { %v163_v22 = vld [vmem:[#allocation2 + $0x10] sm:$0xff] }
 0x100   :  { %v173_v23 = vadd.f32 %v191_v21, %v163_v22  ;;  %v161_v24 = vld [vmem:[#allocation2] sm:$0xff] }
 0x101   :  { %v171_v25 = vadd.f32 %v191_v21, %v161_v24 }
 0x102   :  { %176 = vst.msk [vmem:[%s308_s3 + $0x10] sm:$0xff] %vm19_vm0, %v173_v23  ;;  %v162_v26 = vld [vmem:[#allocation2 + $0x8] sm:$0xff] }
 0x103   :  { %174 = vst.msk [vmem:[%s308_s3] sm:$0xff] %vm19_vm0, %v171_v25  ;;  %v172_v27 = vadd.f32 %v191_v21, %v162_v26 }
 0x105   :  { %175 = vst.msk [vmem:[%s308_s3 + $0x8] sm:$0xff] %vm19_vm0, %v172_v27 }

</bundles_post_ra>
